<compile_context>
chip_gen: v5e
topology: v5e:2x2
jax: 0.10.0
libtpu: 0.0.40
codegen_flags: <defaults>
</compile_context>

<pallas_src>
import jax
import jax.numpy as jnp
from jax import lax
from jax.experimental import pallas as pl
from jax.experimental.pallas import tpu as pltpu

KH = KW = 4
EPS = 1e-5

# Tap table for ConvTranspose2d(k=4, s=2, p=1):
#   output row oy = 2*ty + py takes input rows iy with kernel index
#   ky = oy - 2*iy + 1.  With the input padded by 1 (padded row = iy + 1), the
#   window for parity py starts at padded row (py) and the two taps dy in {0,1}
#   use ky = KSEL[py][dy].  Same along x.
KSEL = ((3, 1), (2, 0))


def unet_up_kernel(xp_ref, w_ref, o_ref):
    # xp_ref: (1, H+2, W+2, Cin)   input for this batch element, padded by 1
    # w_ref : (16, Cin, Cp)        per-(parity, tap) weights, Cout padded to Cp
    # o_ref : (1, 2, 2, H*W, Cp)   per-parity output slabs (lane-dense minor dim)
    H = xp_ref.shape[1] - 2
    W = xp_ref.shape[2] - 2
    Cin = xp_ref.shape[3]
    Cp = o_ref.shape[4]
    HW = H * W

    ssum = jnp.zeros((1, Cp), jnp.float32)
    ssq = jnp.zeros((1, Cp), jnp.float32)

    # Pass 1: per-parity transposed-conv accumulation (4 MXU dots each) +
    # one-pass InstanceNorm statistics; stash pre-norm slabs in the output block.
    for py in range(2):
        for px in range(2):
            acc = jnp.zeros((HW, Cp), jnp.float32)
            for dy in range(2):
                for dx in range(2):
                    t = ((py * 2 + px) * 2 + dy) * 2 + dx
                    patch = xp_ref[0, py + dy:py + dy + H,
                                   px + dx:px + dx + W, :]          # (H, W, Cin)
                    acc = acc + jnp.dot(patch.reshape(HW, Cin), w_ref[t],
                                        preferred_element_type=jnp.float32)
            ssum = ssum + jnp.sum(acc, axis=0, keepdims=True)
            ssq = ssq + jnp.sum(acc * acc, axis=0, keepdims=True)
            o_ref[0, py, px] = acc                                   # pre-norm stash

    # InstanceNorm2d(affine=False): per-channel stats over all 2H x 2W pixels
    # (all four parities together), biased variance, eps = 1e-5.
    inv_n = 1.0 / (4.0 * HW)
    mean = ssum * inv_n
    var = ssq * inv_n - mean * mean
    inv = lax.rsqrt(var + EPS)

    # Pass 2: normalize + ReLU in place (lane-dense VPU work, lane-dense stores).
    for py in range(2):
        for px in range(2):
            y = (o_ref[0, py, px] - mean) * inv
            o_ref[0, py, px] = jnp.maximum(y, 0.0)


def unet_up_forward(x_nchw, skip_nchw, w_pt, b):
    """x_nchw: (N, Cin, H, W); skip_nchw: (N, Cskip, 2H, 2W);
    w_pt: (Cin, Cout, 4, 4) PyTorch ConvTranspose2d layout; b: (Cout,).
    `b` is accepted for API parity but not used by the kernel: InstanceNorm's
    mean subtraction cancels it exactly."""
    del b
    N, Cin, H, W = x_nchw.shape
    Cout = w_pt.shape[1]
    Cp = ((Cout + 127) // 128) * 128          # lane-dense (padded) channel count

    # NCHW -> NHWC, pad spatial by 1 (halo for the 2x2 parity taps).
    x = jnp.transpose(x_nchw, (0, 2, 3, 1))
    xp = jnp.pad(x, ((0, 0), (1, 1), (1, 1), (0, 0)))

    # Gather the 16 (parity, tap) weight matrices: (16, Cin, Cout) -> pad to Cp.
    w_list = []
    for py in range(2):
        for px in range(2):
            for dy in range(2):
                for dx in range(2):
                    w_list.append(w_pt[:, :, KSEL[py][dy], KSEL[px][dx]])
    w_flat = jnp.stack(w_list, axis=0).astype(jnp.float32)
    if Cp != Cout:
        w_flat = jnp.pad(w_flat, ((0, 0), (0, 0), (0, Cp - Cout)))

    out_k = pl.pallas_call(
        unet_up_kernel,
        out_shape=jax.ShapeDtypeStruct((N, 2, 2, H * W, Cp), jnp.float32),
        grid_spec=pltpu.PrefetchScalarGridSpec(
            num_scalar_prefetch=0,
            grid=(N,),
            in_specs=[
                pl.BlockSpec((1, H + 2, W + 2, Cin), lambda n: (n, 0, 0, 0)),
                pl.BlockSpec((16, Cin, Cp), lambda n: (0, 0, 0)),
            ],
            out_specs=pl.BlockSpec((1, 2, 2, H * W, Cp),
                                   lambda n: (n, 0, 0, 0, 0)),
        ),
        compiler_params=pltpu.CompilerParams(
            dimension_semantics=("parallel",)),
    )(xp, w_flat)

    # Strip channel padding, de-interleave parity planes to NCHW:
    #   out_k[n, py, px, ty*W + tx, co] -> y[n, co, 2*ty + py, 2*tx + px]
    y = out_k[..., :Cout].reshape(N, 2, 2, H, W, Cout)
    y = jnp.transpose(y, (0, 5, 3, 1, 4, 2)).reshape(N, Cout, 2 * H, 2 * W)

    # torch.cat((x, skip), dim=1): concat directly in NCHW (no skip transposes).
    return jnp.concatenate([y.astype(x_nchw.dtype), skip_nchw], axis=1)


def reference_forward(x_nchw, skip_nchw, w_pt, b):
    """Pure-JAX reference (no Pallas) for validation."""
    x = jnp.transpose(x_nchw, (0, 2, 3, 1))
    w_hwio = jnp.transpose(w_pt, (2, 3, 0, 1))[::-1, ::-1, :, :]
    y = lax.conv_general_dilated(
        x, w_hwio, window_strides=(1, 1),
        padding=((2, 2), (2, 2)), lhs_dilation=(2, 2),
        dimension_numbers=('NHWC', 'HWIO', 'NHWC'))
    y = y + b[None, None, None, :]
    mean = jnp.mean(y, axis=(1, 2), keepdims=True)
    var = jnp.mean((y - mean) ** 2, axis=(1, 2), keepdims=True)
    y = (y - mean) / jnp.sqrt(var + EPS)
    y = jnp.maximum(y, 0.0)
    y = jnp.transpose(y, (0, 3, 1, 2))
    return jnp.concatenate([y, skip_nchw], axis=1)


if __name__ == "__main__":
    key = jax.random.PRNGKey(0)
    k1, k2, k3, k4 = jax.random.split(key, 4)

    N, Cin, H, W = 2, 4, 16, 16
    Cout = 8  # out_channels; skip_input carries Cout channels at 2x resolution

    x = jax.random.normal(k1, (N, Cin, H, W), jnp.float32)
    skip = jax.random.normal(k2, (N, Cout, 2 * H, 2 * W), jnp.float32)
    # Deterministic synthetic parameters (PyTorch ConvTranspose2d weight layout).
    w_pt = jax.random.normal(k3, (Cin, Cout, KH, KW), jnp.float32) * 0.1
    b = jax.random.normal(k4, (Cout,), jnp.float32) * 0.1

    out = unet_up_forward(x, skip, w_pt, b)
    out = jax.block_until_ready(out)

    assert out.shape == (N, Cout + skip.shape[1], 2 * H, 2 * W), out.shape

    ref = reference_forward(x, skip, w_pt, b)
    if not jnp.allclose(out, ref, atol=1e-4, rtol=1e-4):
        raise AssertionError("Pallas kernel output mismatch vs JAX reference")

    print("KERNEL_OK")
</pallas_src>

<mosaic_0001>
module attributes {stable_mosaic.version = 11 : i64} {
  func.func @unet_up_kernel(%arg0: i32, %arg1: memref<1x18x18x4xf32, #tpu.memory_space<vmem>>, %arg2: memref<16x4x128xf32, #tpu.memory_space<vmem>>, %arg3: memref<1x2x2x256x128xf32, #tpu.memory_space<vmem>>) attributes {dimension_semantics = [#tpu.dimension_semantics<parallel>], iteration_bounds = array<i64: 2>, scalar_prefetch = 0 : i64, scratch_operands = 0 : i64, tpu.core_type = #tpu.core_type<tc>, window_params = [{transform_indices = @transform_0, window_bounds = array<i64: 1, 18, 18, 4>}, {pipeline_mode = #tpu.pipeline_mode<synchronous>, transform_indices = @transform_1, window_bounds = array<i64: 16, 4, 128>}, {transform_indices = @transform_2, window_bounds = array<i64: 1, 2, 2, 256, 128>}]} {
    %cst = arith.constant 0.000000e+00 : f32
    %0 = vector.broadcast %cst : f32 to vector<1x128xf32>
    %cst_0 = arith.constant 0.000000e+00 : f32
    %1 = vector.broadcast %cst_0 : f32 to vector<1x128xf32>
    %cst_1 = arith.constant 0.000000e+00 : f32
    %2 = vector.broadcast %cst_1 : f32 to vector<256x128xf32>
    %c0 = arith.constant 0 : index
    %c0_2 = arith.constant 0 : index
    %c0_3 = arith.constant 0 : index
    %c0_4 = arith.constant 0 : index
    %3 = vector.load %arg1[%c0, %c0_2, %c0_3, %c0_4] : memref<1x18x18x4xf32, #tpu.memory_space<vmem>>, vector<1x16x16x4xf32>
    %4 = vector.shape_cast %3 : vector<1x16x16x4xf32> to vector<16x16x4xf32>
    %5 = vector.shape_cast %4 : vector<16x16x4xf32> to vector<256x4xf32>
    %c0_5 = arith.constant 0 : index
    %c0_6 = arith.constant 0 : index
    %c0_7 = arith.constant 0 : index
    %6 = vector.load %arg2[%c0_5, %c0_6, %c0_7] : memref<16x4x128xf32, #tpu.memory_space<vmem>>, vector<1x4x128xf32>
    %7 = vector.shape_cast %6 : vector<1x4x128xf32> to vector<4x128xf32>
    %cst_8 = arith.constant dense<0.000000e+00> : vector<256x128xf32>
    %8 = tpu.matmul %5, %7, %cst_8 {dimension_numbers = #tpu.dot_dimension_numbers<[1], [0], [0], [1], [0, 0, 1, 1], [], []>} : vector<256x4xf32>, vector<4x128xf32>, vector<256x128xf32> -> vector<256x128xf32>
    %9 = arith.addf %2, %8 : vector<256x128xf32>
    %c0_9 = arith.constant 0 : index
    %c0_10 = arith.constant 0 : index
    %c1 = arith.constant 1 : index
    %c0_11 = arith.constant 0 : index
    %10 = vector.load %arg1[%c0_9, %c0_10, %c1, %c0_11] : memref<1x18x18x4xf32, #tpu.memory_space<vmem>>, vector<1x16x16x4xf32>
    %11 = vector.shape_cast %10 : vector<1x16x16x4xf32> to vector<16x16x4xf32>
    %12 = vector.shape_cast %11 : vector<16x16x4xf32> to vector<256x4xf32>
    %c1_12 = arith.constant 1 : index
    %c0_13 = arith.constant 0 : index
    %c0_14 = arith.constant 0 : index
    %13 = vector.load %arg2[%c1_12, %c0_13, %c0_14] : memref<16x4x128xf32, #tpu.memory_space<vmem>>, vector<1x4x128xf32>
    %14 = vector.shape_cast %13 : vector<1x4x128xf32> to vector<4x128xf32>
    %cst_15 = arith.constant dense<0.000000e+00> : vector<256x128xf32>
    %15 = tpu.matmul %12, %14, %cst_15 {dimension_numbers = #tpu.dot_dimension_numbers<[1], [0], [0], [1], [0, 0, 1, 1], [], []>} : vector<256x4xf32>, vector<4x128xf32>, vector<256x128xf32> -> vector<256x128xf32>
    %16 = arith.addf %9, %15 : vector<256x128xf32>
    %c0_16 = arith.constant 0 : index
    %c1_17 = arith.constant 1 : index
    %c0_18 = arith.constant 0 : index
    %c0_19 = arith.constant 0 : index
    %17 = vector.load %arg1[%c0_16, %c1_17, %c0_18, %c0_19] : memref<1x18x18x4xf32, #tpu.memory_space<vmem>>, vector<1x16x16x4xf32>
    %18 = vector.shape_cast %17 : vector<1x16x16x4xf32> to vector<16x16x4xf32>
    %19 = vector.shape_cast %18 : vector<16x16x4xf32> to vector<256x4xf32>
    %c2 = arith.constant 2 : index
    %c0_20 = arith.constant 0 : index
    %c0_21 = arith.constant 0 : index
    %20 = vector.load %arg2[%c2, %c0_20, %c0_21] : memref<16x4x128xf32, #tpu.memory_space<vmem>>, vector<1x4x128xf32>
    %21 = vector.shape_cast %20 : vector<1x4x128xf32> to vector<4x128xf32>
    %cst_22 = arith.constant dense<0.000000e+00> : vector<256x128xf32>
    %22 = tpu.matmul %19, %21, %cst_22 {dimension_numbers = #tpu.dot_dimension_numbers<[1], [0], [0], [1], [0, 0, 1, 1], [], []>} : vector<256x4xf32>, vector<4x128xf32>, vector<256x128xf32> -> vector<256x128xf32>
    %23 = arith.addf %16, %22 : vector<256x128xf32>
    %c0_23 = arith.constant 0 : index
    %c1_24 = arith.constant 1 : index
    %c1_25 = arith.constant 1 : index
    %c0_26 = arith.constant 0 : index
    %24 = vector.load %arg1[%c0_23, %c1_24, %c1_25, %c0_26] : memref<1x18x18x4xf32, #tpu.memory_space<vmem>>, vector<1x16x16x4xf32>
    %25 = vector.shape_cast %24 : vector<1x16x16x4xf32> to vector<16x16x4xf32>
    %26 = vector.shape_cast %25 : vector<16x16x4xf32> to vector<256x4xf32>
    %c3 = arith.constant 3 : index
    %c0_27 = arith.constant 0 : index
    %c0_28 = arith.constant 0 : index
    %27 = vector.load %arg2[%c3, %c0_27, %c0_28] : memref<16x4x128xf32, #tpu.memory_space<vmem>>, vector<1x4x128xf32>
    %28 = vector.shape_cast %27 : vector<1x4x128xf32> to vector<4x128xf32>
    %cst_29 = arith.constant dense<0.000000e+00> : vector<256x128xf32>
    %29 = tpu.matmul %26, %28, %cst_29 {dimension_numbers = #tpu.dot_dimension_numbers<[1], [0], [0], [1], [0, 0, 1, 1], [], []>} : vector<256x4xf32>, vector<4x128xf32>, vector<256x128xf32> -> vector<256x128xf32>
    %30 = arith.addf %23, %29 : vector<256x128xf32>
    %cst_30 = arith.constant dense<0.000000e+00> : vector<128xf32>
    %31 = vector.multi_reduction <add>, %30, %cst_30 [0] : vector<256x128xf32> to vector<128xf32>
    %32 = vector.shape_cast %31 : vector<128xf32> to vector<1x128xf32>
    %33 = arith.addf %0, %32 : vector<1x128xf32>
    %34 = arith.mulf %30, %30 : vector<256x128xf32>
    %cst_31 = arith.constant dense<0.000000e+00> : vector<128xf32>
    %35 = vector.multi_reduction <add>, %34, %cst_31 [0] : vector<256x128xf32> to vector<128xf32>
    %36 = vector.shape_cast %35 : vector<128xf32> to vector<1x128xf32>
    %37 = arith.addf %1, %36 : vector<1x128xf32>
    %c0_32 = arith.constant 0 : index
    %c0_33 = arith.constant 0 : index
    %c0_34 = arith.constant 0 : index
    %c0_35 = arith.constant 0 : index
    %c0_36 = arith.constant 0 : index
    %38 = vector.load %arg3[%c0_32, %c0_33, %c0_34, %c0_35, %c0_36] : memref<1x2x2x256x128xf32, #tpu.memory_space<vmem>>, vector<1x1x1x256x128xf32>
    %39 = vector.shape_cast %38 : vector<1x1x1x256x128xf32> to vector<256x128xf32>
    %40 = vector.shape_cast %30 : vector<256x128xf32> to vector<1x1x1x256x128xf32>
    tpu.vector_store %arg3[%c0_32, %c0_33, %c0_34, %c0_35, %c0_36], %40 {strides = array<i32>} : memref<1x2x2x256x128xf32, #tpu.memory_space<vmem>>, vector<1x1x1x256x128xf32>,
    %cst_37 = arith.constant 0.000000e+00 : f32
    %41 = vector.broadcast %cst_37 : f32 to vector<256x128xf32>
    %c0_38 = arith.constant 0 : index
    %c0_39 = arith.constant 0 : index
    %c1_40 = arith.constant 1 : index
    %c0_41 = arith.constant 0 : index
    %42 = vector.load %arg1[%c0_38, %c0_39, %c1_40, %c0_41] : memref<1x18x18x4xf32, #tpu.memory_space<vmem>>, vector<1x16x16x4xf32>
    %43 = vector.shape_cast %42 : vector<1x16x16x4xf32> to vector<16x16x4xf32>
    %44 = vector.shape_cast %43 : vector<16x16x4xf32> to vector<256x4xf32>
    %c4 = arith.constant 4 : index
    %c0_42 = arith.constant 0 : index
    %c0_43 = arith.constant 0 : index
    %45 = vector.load %arg2[%c4, %c0_42, %c0_43] : memref<16x4x128xf32, #tpu.memory_space<vmem>>, vector<1x4x128xf32>
    %46 = vector.shape_cast %45 : vector<1x4x128xf32> to vector<4x128xf32>
    %cst_44 = arith.constant dense<0.000000e+00> : vector<256x128xf32>
    %47 = tpu.matmul %44, %46, %cst_44 {dimension_numbers = #tpu.dot_dimension_numbers<[1], [0], [0], [1], [0, 0, 1, 1], [], []>} : vector<256x4xf32>, vector<4x128xf32>, vector<256x128xf32> -> vector<256x128xf32>
    %48 = arith.addf %41, %47 : vector<256x128xf32>
    %c0_45 = arith.constant 0 : index
    %c0_46 = arith.constant 0 : index
    %c2_47 = arith.constant 2 : index
    %c0_48 = arith.constant 0 : index
    %49 = vector.load %arg1[%c0_45, %c0_46, %c2_47, %c0_48] : memref<1x18x18x4xf32, #tpu.memory_space<vmem>>, vector<1x16x16x4xf32>
    %50 = vector.shape_cast %49 : vector<1x16x16x4xf32> to vector<16x16x4xf32>
    %51 = vector.shape_cast %50 : vector<16x16x4xf32> to vector<256x4xf32>
    %c5 = arith.constant 5 : index
    %c0_49 = arith.constant 0 : index
    %c0_50 = arith.constant 0 : index
    %52 = vector.load %arg2[%c5, %c0_49, %c0_50] : memref<16x4x128xf32, #tpu.memory_space<vmem>>, vector<1x4x128xf32>
    %53 = vector.shape_cast %52 : vector<1x4x128xf32> to vector<4x128xf32>
    %cst_51 = arith.constant dense<0.000000e+00> : vector<256x128xf32>
    %54 = tpu.matmul %51, %53, %cst_51 {dimension_numbers = #tpu.dot_dimension_numbers<[1], [0], [0], [1], [0, 0, 1, 1], [], []>} : vector<256x4xf32>, vector<4x128xf32>, vector<256x128xf32> -> vector<256x128xf32>
    %55 = arith.addf %48, %54 : vector<256x128xf32>
    %c0_52 = arith.constant 0 : index
    %c1_53 = arith.constant 1 : index
    %c1_54 = arith.constant 1 : index
    %c0_55 = arith.constant 0 : index
    %56 = vector.load %arg1[%c0_52, %c1_53, %c1_54, %c0_55] : memref<1x18x18x4xf32, #tpu.memory_space<vmem>>, vector<1x16x16x4xf32>
    %57 = vector.shape_cast %56 : vector<1x16x16x4xf32> to vector<16x16x4xf32>
    %58 = vector.shape_cast %57 : vector<16x16x4xf32> to vector<256x4xf32>
    %c6 = arith.constant 6 : index
    %c0_56 = arith.constant 0 : index
    %c0_57 = arith.constant 0 : index
    %59 = vector.load %arg2[%c6, %c0_56, %c0_57] : memref<16x4x128xf32, #tpu.memory_space<vmem>>, vector<1x4x128xf32>
    %60 = vector.shape_cast %59 : vector<1x4x128xf32> to vector<4x128xf32>
    %cst_58 = arith.constant dense<0.000000e+00> : vector<256x128xf32>
    %61 = tpu.matmul %58, %60, %cst_58 {dimension_numbers = #tpu.dot_dimension_numbers<[1], [0], [0], [1], [0, 0, 1, 1], [], []>} : vector<256x4xf32>, vector<4x128xf32>, vector<256x128xf32> -> vector<256x128xf32>
    %62 = arith.addf %55, %61 : vector<256x128xf32>
    %c0_59 = arith.constant 0 : index
    %c1_60 = arith.constant 1 : index
    %c2_61 = arith.constant 2 : index
    %c0_62 = arith.constant 0 : index
    %63 = vector.load %arg1[%c0_59, %c1_60, %c2_61, %c0_62] : memref<1x18x18x4xf32, #tpu.memory_space<vmem>>, vector<1x16x16x4xf32>
    %64 = vector.shape_cast %63 : vector<1x16x16x4xf32> to vector<16x16x4xf32>
    %65 = vector.shape_cast %64 : vector<16x16x4xf32> to vector<256x4xf32>
    %c7 = arith.constant 7 : index
    %c0_63 = arith.constant 0 : index
    %c0_64 = arith.constant 0 : index
    %66 = vector.load %arg2[%c7, %c0_63, %c0_64] : memref<16x4x128xf32, #tpu.memory_space<vmem>>, vector<1x4x128xf32>
    %67 = vector.shape_cast %66 : vector<1x4x128xf32> to vector<4x128xf32>
    %cst_65 = arith.constant dense<0.000000e+00> : vector<256x128xf32>
    %68 = tpu.matmul %65, %67, %cst_65 {dimension_numbers = #tpu.dot_dimension_numbers<[1], [0], [0], [1], [0, 0, 1, 1], [], []>} : vector<256x4xf32>, vector<4x128xf32>, vector<256x128xf32> -> vector<256x128xf32>
    %69 = arith.addf %62, %68 : vector<256x128xf32>
    %cst_66 = arith.constant dense<0.000000e+00> : vector<128xf32>
    %70 = vector.multi_reduction <add>, %69, %cst_66 [0] : vector<256x128xf32> to vector<128xf32>
    %71 = vector.shape_cast %70 : vector<128xf32> to vector<1x128xf32>
    %72 = arith.addf %33, %71 : vector<1x128xf32>
    %73 = arith.mulf %69, %69 : vector<256x128xf32>
    %cst_67 = arith.constant dense<0.000000e+00> : vector<128xf32>
    %74 = vector.multi_reduction <add>, %73, %cst_67 [0] : vector<256x128xf32> to vector<128xf32>
    %75 = vector.shape_cast %74 : vector<128xf32> to vector<1x128xf32>
    %76 = arith.addf %37, %75 : vector<1x128xf32>
    %c0_68 = arith.constant 0 : index
    %c0_69 = arith.constant 0 : index
    %c1_70 = arith.constant 1 : index
    %c0_71 = arith.constant 0 : index
    %c0_72 = arith.constant 0 : index
    %77 = vector.load %arg3[%c0_68, %c0_69, %c1_70, %c0_71, %c0_72] : memref<1x2x2x256x128xf32, #tpu.memory_space<vmem>>, vector<1x1x1x256x128xf32>
    %78 = vector.shape_cast %77 : vector<1x1x1x256x128xf32> to vector<256x128xf32>
    %79 = vector.shape_cast %69 : vector<256x128xf32> to vector<1x1x1x256x128xf32>
    tpu.vector_store %arg3[%c0_68, %c0_69, %c1_70, %c0_71, %c0_72], %79 {strides = array<i32>} : memref<1x2x2x256x128xf32, #tpu.memory_space<vmem>>, vector<1x1x1x256x128xf32>,
    %cst_73 = arith.constant 0.000000e+00 : f32
    %80 = vector.broadcast %cst_73 : f32 to vector<256x128xf32>
    %c0_74 = arith.constant 0 : index
    %c1_75 = arith.constant 1 : index
    %c0_76 = arith.constant 0 : index
    %c0_77 = arith.constant 0 : index
    %81 = vector.load %arg1[%c0_74, %c1_75, %c0_76, %c0_77] : memref<1x18x18x4xf32, #tpu.memory_space<vmem>>, vector<1x16x16x4xf32>
    %82 = vector.shape_cast %81 : vector<1x16x16x4xf32> to vector<16x16x4xf32>
    %83 = vector.shape_cast %82 : vector<16x16x4xf32> to vector<256x4xf32>
    %c8 = arith.constant 8 : index
    %c0_78 = arith.constant 0 : index
    %c0_79 = arith.constant 0 : index
    %84 = vector.load %arg2[%c8, %c0_78, %c0_79] : memref<16x4x128xf32, #tpu.memory_space<vmem>>, vector<1x4x128xf32>
    %85 = vector.shape_cast %84 : vector<1x4x128xf32> to vector<4x128xf32>
    %cst_80 = arith.constant dense<0.000000e+00> : vector<256x128xf32>
    %86 = tpu.matmul %83, %85, %cst_80 {dimension_numbers = #tpu.dot_dimension_numbers<[1], [0], [0], [1], [0, 0, 1, 1], [], []>} : vector<256x4xf32>, vector<4x128xf32>, vector<256x128xf32> -> vector<256x128xf32>
    %87 = arith.addf %80, %86 : vector<256x128xf32>
    %c0_81 = arith.constant 0 : index
    %c1_82 = arith.constant 1 : index
    %c1_83 = arith.constant 1 : index
    %c0_84 = arith.constant 0 : index
    %88 = vector.load %arg1[%c0_81, %c1_82, %c1_83, %c0_84] : memref<1x18x18x4xf32, #tpu.memory_space<vmem>>, vector<1x16x16x4xf32>
    %89 = vector.shape_cast %88 : vector<1x16x16x4xf32> to vector<16x16x4xf32>
    %90 = vector.shape_cast %89 : vector<16x16x4xf32> to vector<256x4xf32>
    %c9 = arith.constant 9 : index
    %c0_85 = arith.constant 0 : index
    %c0_86 = arith.constant 0 : index
    %91 = vector.load %arg2[%c9, %c0_85, %c0_86] : memref<16x4x128xf32, #tpu.memory_space<vmem>>, vector<1x4x128xf32>
    %92 = vector.shape_cast %91 : vector<1x4x128xf32> to vector<4x128xf32>
    %cst_87 = arith.constant dense<0.000000e+00> : vector<256x128xf32>
    %93 = tpu.matmul %90, %92, %cst_87 {dimension_numbers = #tpu.dot_dimension_numbers<[1], [0], [0], [1], [0, 0, 1, 1], [], []>} : vector<256x4xf32>, vector<4x128xf32>, vector<256x128xf32> -> vector<256x128xf32>
    %94 = arith.addf %87, %93 : vector<256x128xf32>
    %c0_88 = arith.constant 0 : index
    %c2_89 = arith.constant 2 : index
    %c0_90 = arith.constant 0 : index
    %c0_91 = arith.constant 0 : index
    %95 = vector.load %arg1[%c0_88, %c2_89, %c0_90, %c0_91] : memref<1x18x18x4xf32, #tpu.memory_space<vmem>>, vector<1x16x16x4xf32>
    %96 = vector.shape_cast %95 : vector<1x16x16x4xf32> to vector<16x16x4xf32>
    %97 = vector.shape_cast %96 : vector<16x16x4xf32> to vector<256x4xf32>
    %c10 = arith.constant 10 : index
    %c0_92 = arith.constant 0 : index
    %c0_93 = arith.constant 0 : index
    %98 = vector.load %arg2[%c10, %c0_92, %c0_93] : memref<16x4x128xf32, #tpu.memory_space<vmem>>, vector<1x4x128xf32>
    %99 = vector.shape_cast %98 : vector<1x4x128xf32> to vector<4x128xf32>
    %cst_94 = arith.constant dense<0.000000e+00> : vector<256x128xf32>
    %100 = tpu.matmul %97, %99, %cst_94 {dimension_numbers = #tpu.dot_dimension_numbers<[1], [0], [0], [1], [0, 0, 1, 1], [], []>} : vector<256x4xf32>, vector<4x128xf32>, vector<256x128xf32> -> vector<256x128xf32>
    %101 = arith.addf %94, %100 : vector<256x128xf32>
    %c0_95 = arith.constant 0 : index
    %c2_96 = arith.constant 2 : index
    %c1_97 = arith.constant 1 : index
    %c0_98 = arith.constant 0 : index
    %102 = vector.load %arg1[%c0_95, %c2_96, %c1_97, %c0_98] : memref<1x18x18x4xf32, #tpu.memory_space<vmem>>, vector<1x16x16x4xf32>
    %103 = vector.shape_cast %102 : vector<1x16x16x4xf32> to vector<16x16x4xf32>
    %104 = vector.shape_cast %103 : vector<16x16x4xf32> to vector<256x4xf32>
    %c11 = arith.constant 11 : index
    %c0_99 = arith.constant 0 : index
    %c0_100 = arith.constant 0 : index
    %105 = vector.load %arg2[%c11, %c0_99, %c0_100] : memref<16x4x128xf32, #tpu.memory_space<vmem>>, vector<1x4x128xf32>
    %106 = vector.shape_cast %105 : vector<1x4x128xf32> to vector<4x128xf32>
    %cst_101 = arith.constant dense<0.000000e+00> : vector<256x128xf32>
    %107 = tpu.matmul %104, %106, %cst_101 {dimension_numbers = #tpu.dot_dimension_numbers<[1], [0], [0], [1], [0, 0, 1, 1], [], []>} : vector<256x4xf32>, vector<4x128xf32>, vector<256x128xf32> -> vector<256x128xf32>
    %108 = arith.addf %101, %107 : vector<256x128xf32>
    %cst_102 = arith.constant dense<0.000000e+00> : vector<128xf32>
    %109 = vector.multi_reduction <add>, %108, %cst_102 [0] : vector<256x128xf32> to vector<128xf32>
    %110 = vector.shape_cast %109 : vector<128xf32> to vector<1x128xf32>
    %111 = arith.addf %72, %110 : vector<1x128xf32>
    %112 = arith.mulf %108, %108 : vector<256x128xf32>
    %cst_103 = arith.constant dense<0.000000e+00> : vector<128xf32>
    %113 = vector.multi_reduction <add>, %112, %cst_103 [0] : vector<256x128xf32> to vector<128xf32>
    %114 = vector.shape_cast %113 : vector<128xf32> to vector<1x128xf32>
    %115 = arith.addf %76, %114 : vector<1x128xf32>
    %c0_104 = arith.constant 0 : index
    %c1_105 = arith.constant 1 : index
    %c0_106 = arith.constant 0 : index
    %c0_107 = arith.constant 0 : index
    %c0_108 = arith.constant 0 : index
    %116 = vector.load %arg3[%c0_104, %c1_105, %c0_106, %c0_107, %c0_108] : memref<1x2x2x256x128xf32, #tpu.memory_space<vmem>>, vector<1x1x1x256x128xf32>
    %117 = vector.shape_cast %116 : vector<1x1x1x256x128xf32> to vector<256x128xf32>
    %118 = vector.shape_cast %108 : vector<256x128xf32> to vector<1x1x1x256x128xf32>
    tpu.vector_store %arg3[%c0_104, %c1_105, %c0_106, %c0_107, %c0_108], %118 {strides = array<i32>} : memref<1x2x2x256x128xf32, #tpu.memory_space<vmem>>, vector<1x1x1x256x128xf32>,
    %cst_109 = arith.constant 0.000000e+00 : f32
    %119 = vector.broadcast %cst_109 : f32 to vector<256x128xf32>
    %c0_110 = arith.constant 0 : index
    %c1_111 = arith.constant 1 : index
    %c1_112 = arith.constant 1 : index
    %c0_113 = arith.constant 0 : index
    %120 = vector.load %arg1[%c0_110, %c1_111, %c1_112, %c0_113] : memref<1x18x18x4xf32, #tpu.memory_space<vmem>>, vector<1x16x16x4xf32>
    %121 = vector.shape_cast %120 : vector<1x16x16x4xf32> to vector<16x16x4xf32>
    %122 = vector.shape_cast %121 : vector<16x16x4xf32> to vector<256x4xf32>
    %c12 = arith.constant 12 : index
    %c0_114 = arith.constant 0 : index
    %c0_115 = arith.constant 0 : index
    %123 = vector.load %arg2[%c12, %c0_114, %c0_115] : memref<16x4x128xf32, #tpu.memory_space<vmem>>, vector<1x4x128xf32>
    %124 = vector.shape_cast %123 : vector<1x4x128xf32> to vector<4x128xf32>
    %cst_116 = arith.constant dense<0.000000e+00> : vector<256x128xf32>
    %125 = tpu.matmul %122, %124, %cst_116 {dimension_numbers = #tpu.dot_dimension_numbers<[1], [0], [0], [1], [0, 0, 1, 1], [], []>} : vector<256x4xf32>, vector<4x128xf32>, vector<256x128xf32> -> vector<256x128xf32>
    %126 = arith.addf %119, %125 : vector<256x128xf32>
    %c0_117 = arith.constant 0 : index
    %c1_118 = arith.constant 1 : index
    %c2_119 = arith.constant 2 : index
    %c0_120 = arith.constant 0 : index
    %127 = vector.load %arg1[%c0_117, %c1_118, %c2_119, %c0_120] : memref<1x18x18x4xf32, #tpu.memory_space<vmem>>, vector<1x16x16x4xf32>
    %128 = vector.shape_cast %127 : vector<1x16x16x4xf32> to vector<16x16x4xf32>
    %129 = vector.shape_cast %128 : vector<16x16x4xf32> to vector<256x4xf32>
    %c13 = arith.constant 13 : index
    %c0_121 = arith.constant 0 : index
    %c0_122 = arith.constant 0 : index
    %130 = vector.load %arg2[%c13, %c0_121, %c0_122] : memref<16x4x128xf32, #tpu.memory_space<vmem>>, vector<1x4x128xf32>
    %131 = vector.shape_cast %130 : vector<1x4x128xf32> to vector<4x128xf32>
    %cst_123 = arith.constant dense<0.000000e+00> : vector<256x128xf32>
    %132 = tpu.matmul %129, %131, %cst_123 {dimension_numbers = #tpu.dot_dimension_numbers<[1], [0], [0], [1], [0, 0, 1, 1], [], []>} : vector<256x4xf32>, vector<4x128xf32>, vector<256x128xf32> -> vector<256x128xf32>
    %133 = arith.addf %126, %132 : vector<256x128xf32>
    %c0_124 = arith.constant 0 : index
    %c2_125 = arith.constant 2 : index
    %c1_126 = arith.constant 1 : index
    %c0_127 = arith.constant 0 : index
    %134 = vector.load %arg1[%c0_124, %c2_125, %c1_126, %c0_127] : memref<1x18x18x4xf32, #tpu.memory_space<vmem>>, vector<1x16x16x4xf32>
    %135 = vector.shape_cast %134 : vector<1x16x16x4xf32> to vector<16x16x4xf32>
    %136 = vector.shape_cast %135 : vector<16x16x4xf32> to vector<256x4xf32>
    %c14 = arith.constant 14 : index
    %c0_128 = arith.constant 0 : index
    %c0_129 = arith.constant 0 : index
    %137 = vector.load %arg2[%c14, %c0_128, %c0_129] : memref<16x4x128xf32, #tpu.memory_space<vmem>>, vector<1x4x128xf32>
    %138 = vector.shape_cast %137 : vector<1x4x128xf32> to vector<4x128xf32>
    %cst_130 = arith.constant dense<0.000000e+00> : vector<256x128xf32>
    %139 = tpu.matmul %136, %138, %cst_130 {dimension_numbers = #tpu.dot_dimension_numbers<[1], [0], [0], [1], [0, 0, 1, 1], [], []>} : vector<256x4xf32>, vector<4x128xf32>, vector<256x128xf32> -> vector<256x128xf32>
    %140 = arith.addf %133, %139 : vector<256x128xf32>
    %c0_131 = arith.constant 0 : index
    %c2_132 = arith.constant 2 : index
    %c2_133 = arith.constant 2 : index
    %c0_134 = arith.constant 0 : index
    %141 = vector.load %arg1[%c0_131, %c2_132, %c2_133, %c0_134] : memref<1x18x18x4xf32, #tpu.memory_space<vmem>>, vector<1x16x16x4xf32>
    %142 = vector.shape_cast %141 : vector<1x16x16x4xf32> to vector<16x16x4xf32>
    %143 = vector.shape_cast %142 : vector<16x16x4xf32> to vector<256x4xf32>
    %c15 = arith.constant 15 : index
    %c0_135 = arith.constant 0 : index
    %c0_136 = arith.constant 0 : index
    %144 = vector.load %arg2[%c15, %c0_135, %c0_136] : memref<16x4x128xf32, #tpu.memory_space<vmem>>, vector<1x4x128xf32>
    %145 = vector.shape_cast %144 : vector<1x4x128xf32> to vector<4x128xf32>
    %cst_137 = arith.constant dense<0.000000e+00> : vector<256x128xf32>
    %146 = tpu.matmul %143, %145, %cst_137 {dimension_numbers = #tpu.dot_dimension_numbers<[1], [0], [0], [1], [0, 0, 1, 1], [], []>} : vector<256x4xf32>, vector<4x128xf32>, vector<256x128xf32> -> vector<256x128xf32>
    %147 = arith.addf %140, %146 : vector<256x128xf32>
    %cst_138 = arith.constant dense<0.000000e+00> : vector<128xf32>
    %148 = vector.multi_reduction <add>, %147, %cst_138 [0] : vector<256x128xf32> to vector<128xf32>
    %149 = vector.shape_cast %148 : vector<128xf32> to vector<1x128xf32>
    %150 = arith.addf %111, %149 : vector<1x128xf32>
    %151 = arith.mulf %147, %147 : vector<256x128xf32>
    %cst_139 = arith.constant dense<0.000000e+00> : vector<128xf32>
    %152 = vector.multi_reduction <add>, %151, %cst_139 [0] : vector<256x128xf32> to vector<128xf32>
    %153 = vector.shape_cast %152 : vector<128xf32> to vector<1x128xf32>
    %154 = arith.addf %115, %153 : vector<1x128xf32>
    %c0_140 = arith.constant 0 : index
    %c1_141 = arith.constant 1 : index
    %c1_142 = arith.constant 1 : index
    %c0_143 = arith.constant 0 : index
    %c0_144 = arith.constant 0 : index
    %155 = vector.load %arg3[%c0_140, %c1_141, %c1_142, %c0_143, %c0_144] : memref<1x2x2x256x128xf32, #tpu.memory_space<vmem>>, vector<1x1x1x256x128xf32>
    %156 = vector.shape_cast %155 : vector<1x1x1x256x128xf32> to vector<256x128xf32>
    %157 = vector.shape_cast %147 : vector<256x128xf32> to vector<1x1x1x256x128xf32>
    tpu.vector_store %arg3[%c0_140, %c1_141, %c1_142, %c0_143, %c0_144], %157 {strides = array<i32>} : memref<1x2x2x256x128xf32, #tpu.memory_space<vmem>>, vector<1x1x1x256x128xf32>,
    %cst_145 = arith.constant 9.765625E-4 : f32
    %158 = vector.broadcast %cst_145 : f32 to vector<1x128xf32>
    %159 = arith.mulf %150, %158 : vector<1x128xf32>
    %cst_146 = arith.constant 9.765625E-4 : f32
    %160 = vector.broadcast %cst_146 : f32 to vector<1x128xf32>
    %161 = arith.mulf %154, %160 : vector<1x128xf32>
    %162 = arith.mulf %159, %159 : vector<1x128xf32>
    %163 = arith.subf %161, %162 : vector<1x128xf32>
    %cst_147 = arith.constant 9.99999974E-6 : f32
    %164 = vector.broadcast %cst_147 : f32 to vector<1x128xf32>
    %165 = arith.addf %163, %164 : vector<1x128xf32>
    %166 = math.rsqrt %165 : vector<1x128xf32>
    %c0_148 = arith.constant 0 : index
    %c0_149 = arith.constant 0 : index
    %c0_150 = arith.constant 0 : index
    %c0_151 = arith.constant 0 : index
    %c0_152 = arith.constant 0 : index
    %167 = vector.load %arg3[%c0_148, %c0_149, %c0_150, %c0_151, %c0_152] : memref<1x2x2x256x128xf32, #tpu.memory_space<vmem>>, vector<1x1x1x256x128xf32>
    %168 = vector.shape_cast %167 : vector<1x1x1x256x128xf32> to vector<256x128xf32>
    %169 = vector.broadcast %159 : vector<1x128xf32> to vector<256x128xf32>
    %170 = arith.subf %168, %169 : vector<256x128xf32>
    %171 = vector.broadcast %166 : vector<1x128xf32> to vector<256x128xf32>
    %172 = arith.mulf %170, %171 : vector<256x128xf32>
    %cst_153 = arith.constant 0.000000e+00 : f32
    %173 = vector.broadcast %cst_153 : f32 to vector<256x128xf32>
    %174 = arith.maximumf %172, %173 : vector<256x128xf32>
    %c0_154 = arith.constant 0 : index
    %c0_155 = arith.constant 0 : index
    %c0_156 = arith.constant 0 : index
    %c0_157 = arith.constant 0 : index
    %c0_158 = arith.constant 0 : index
    %175 = vector.load %arg3[%c0_154, %c0_155, %c0_156, %c0_157, %c0_158] : memref<1x2x2x256x128xf32, #tpu.memory_space<vmem>>, vector<1x1x1x256x128xf32>
    %176 = vector.shape_cast %175 : vector<1x1x1x256x128xf32> to vector<256x128xf32>
    %177 = vector.shape_cast %174 : vector<256x128xf32> to vector<1x1x1x256x128xf32>
    tpu.vector_store %arg3[%c0_154, %c0_155, %c0_156, %c0_157, %c0_158], %177 {strides = array<i32>} : memref<1x2x2x256x128xf32, #tpu.memory_space<vmem>>, vector<1x1x1x256x128xf32>,
    %c0_159 = arith.constant 0 : index
    %c0_160 = arith.constant 0 : index
    %c1_161 = arith.constant 1 : index
    %c0_162 = arith.constant 0 : index
    %c0_163 = arith.constant 0 : index
    %178 = vector.load %arg3[%c0_159, %c0_160, %c1_161, %c0_162, %c0_163] : memref<1x2x2x256x128xf32, #tpu.memory_space<vmem>>, vector<1x1x1x256x128xf32>
    %179 = vector.shape_cast %178 : vector<1x1x1x256x128xf32> to vector<256x128xf32>
    %180 = vector.broadcast %159 : vector<1x128xf32> to vector<256x128xf32>
    %181 = arith.subf %179, %180 : vector<256x128xf32>
    %182 = vector.broadcast %166 : vector<1x128xf32> to vector<256x128xf32>
    %183 = arith.mulf %181, %182 : vector<256x128xf32>
    %cst_164 = arith.constant 0.000000e+00 : f32
    %184 = vector.broadcast %cst_164 : f32 to vector<256x128xf32>
    %185 = arith.maximumf %183, %184 : vector<256x128xf32>
    %c0_165 = arith.constant 0 : index
    %c0_166 = arith.constant 0 : index
    %c1_167 = arith.constant 1 : index
    %c0_168 = arith.constant 0 : index
    %c0_169 = arith.constant 0 : index
    %186 = vector.load %arg3[%c0_165, %c0_166, %c1_167, %c0_168, %c0_169] : memref<1x2x2x256x128xf32, #tpu.memory_space<vmem>>, vector<1x1x1x256x128xf32>
    %187 = vector.shape_cast %186 : vector<1x1x1x256x128xf32> to vector<256x128xf32>
    %188 = vector.shape_cast %185 : vector<256x128xf32> to vector<1x1x1x256x128xf32>
    tpu.vector_store %arg3[%c0_165, %c0_166, %c1_167, %c0_168, %c0_169], %188 {strides = array<i32>} : memref<1x2x2x256x128xf32, #tpu.memory_space<vmem>>, vector<1x1x1x256x128xf32>,
    %c0_170 = arith.constant 0 : index
    %c1_171 = arith.constant 1 : index
    %c0_172 = arith.constant 0 : index
    %c0_173 = arith.constant 0 : index
    %c0_174 = arith.constant 0 : index
    %189 = vector.load %arg3[%c0_170, %c1_171, %c0_172, %c0_173, %c0_174] : memref<1x2x2x256x128xf32, #tpu.memory_space<vmem>>, vector<1x1x1x256x128xf32>
    %190 = vector.shape_cast %189 : vector<1x1x1x256x128xf32> to vector<256x128xf32>
    %191 = vector.broadcast %159 : vector<1x128xf32> to vector<256x128xf32>
    %192 = arith.subf %190, %191 : vector<256x128xf32>
    %193 = vector.broadcast %166 : vector<1x128xf32> to vector<256x128xf32>
    %194 = arith.mulf %192, %193 : vector<256x128xf32>
    %cst_175 = arith.constant 0.000000e+00 : f32
    %195 = vector.broadcast %cst_175 : f32 to vector<256x128xf32>
    %196 = arith.maximumf %194, %195 : vector<256x128xf32>
    %c0_176 = arith.constant 0 : index
    %c1_177 = arith.constant 1 : index
    %c0_178 = arith.constant 0 : index
    %c0_179 = arith.constant 0 : index
    %c0_180 = arith.constant 0 : index
    %197 = vector.load %arg3[%c0_176, %c1_177, %c0_178, %c0_179, %c0_180] : memref<1x2x2x256x128xf32, #tpu.memory_space<vmem>>, vector<1x1x1x256x128xf32>
    %198 = vector.shape_cast %197 : vector<1x1x1x256x128xf32> to vector<256x128xf32>
    %199 = vector.shape_cast %196 : vector<256x128xf32> to vector<1x1x1x256x128xf32>
    tpu.vector_store %arg3[%c0_176, %c1_177, %c0_178, %c0_179, %c0_180], %199 {strides = array<i32>} : memref<1x2x2x256x128xf32, #tpu.memory_space<vmem>>, vector<1x1x1x256x128xf32>,
    %c0_181 = arith.constant 0 : index
    %c1_182 = arith.constant 1 : index
    %c1_183 = arith.constant 1 : index
    %c0_184 = arith.constant 0 : index
    %c0_185 = arith.constant 0 : index
    %200 = vector.load %arg3[%c0_181, %c1_182, %c1_183, %c0_184, %c0_185] : memref<1x2x2x256x128xf32, #tpu.memory_space<vmem>>, vector<1x1x1x256x128xf32>
    %201 = vector.shape_cast %200 : vector<1x1x1x256x128xf32> to vector<256x128xf32>
    %202 = vector.broadcast %159 : vector<1x128xf32> to vector<256x128xf32>
    %203 = arith.subf %201, %202 : vector<256x128xf32>
    %204 = vector.broadcast %166 : vector<1x128xf32> to vector<256x128xf32>
    %205 = arith.mulf %203, %204 : vector<256x128xf32>
    %cst_186 = arith.constant 0.000000e+00 : f32
    %206 = vector.broadcast %cst_186 : f32 to vector<256x128xf32>
    %207 = arith.maximumf %205, %206 : vector<256x128xf32>
    %c0_187 = arith.constant 0 : index
    %c1_188 = arith.constant 1 : index
    %c1_189 = arith.constant 1 : index
    %c0_190 = arith.constant 0 : index
    %c0_191 = arith.constant 0 : index
    %208 = vector.load %arg3[%c0_187, %c1_188, %c1_189, %c0_190, %c0_191] : memref<1x2x2x256x128xf32, #tpu.memory_space<vmem>>, vector<1x1x1x256x128xf32>
    %209 = vector.shape_cast %208 : vector<1x1x1x256x128xf32> to vector<256x128xf32>
    %210 = vector.shape_cast %207 : vector<256x128xf32> to vector<1x1x1x256x128xf32>
    tpu.vector_store %arg3[%c0_187, %c1_188, %c1_189, %c0_190, %c0_191], %210 {strides = array<i32>} : memref<1x2x2x256x128xf32, #tpu.memory_space<vmem>>, vector<1x1x1x256x128xf32>,
    return
  }
  func.func @transform_0(%arg0: i32) -> (i32, i32, i32, i32) {
    %c0_i32 = arith.constant 0 : i32
    %c0_i32_0 = arith.constant 0 : i32
    %c0_i32_1 = arith.constant 0 : i32
    %c0_i32_2 = arith.constant 0 : i32
    return %arg0, %c0_i32, %c0_i32_0, %c0_i32_1 : i32, i32, i32, i32
  }
  func.func @transform_1(%arg0: i32) -> (i32, i32, i32) {
    %c0_i32 = arith.constant 0 : i32
    %c0_i32_0 = arith.constant 0 : i32
    %c0_i32_1 = arith.constant 0 : i32
    %c0_i32_2 = arith.constant 0 : i32
    return %c0_i32, %c0_i32_0, %c0_i32_1 : i32, i32, i32
  }
  func.func @transform_2(%arg0: i32) -> (i32, i32, i32, i32, i32) {
    %c0_i32 = arith.constant 0 : i32
    %c0_i32_0 = arith.constant 0 : i32
    %c0_i32_1 = arith.constant 0 : i32
    %c0_i32_2 = arith.constant 0 : i32
    %c0_i32_3 = arith.constant 0 : i32
    return %arg0, %c0_i32, %c0_i32_0, %c0_i32_1, %c0_i32_2 : i32, i32, i32, i32, i32
  }
}

</mosaic_0001>

<bundles_post_ra>
// kernel: tpu_custom_call.1
= control target key start
LH: loop header
LB: loop body
LE: loop exit
PB: predicated region body
PF: predicated region fallthrough
CT: control target
= control target key end

     0   :  { %7 = vsyncpa [#allocation3], 0  ;;  %s9223_s0 = inlined_call_operand.vmem [shape: f32[2,18,18,4], index: 0, kind: input, shape index: {}]   ;;  %s9224_s1 = inlined_call_operand.vmem [shape: f32[16,4,128], index: 1, kind: input, shape index: {}]   ;;  %s9225_s2 = inlined_call_operand.hbm [shape: f32[2,2,2,256,128], index: 2, kind: output, shape index: {}]  }
   0x1   :  { %9 = vsyncpa [#allocation3 + $0x1], 0  ;;  %s6985_s9 = smov 0   ;;  %s6987_s10 = smov 0  }
   0x2   :  { %s6989_s11 = smov 0   ;;  %s6991_s12 = smov 0  }
   0x3 LB: > { %s7006_s13 = sadd.s32 4294967295, %s6966_s12   ;;  %s5633_s14 = sadd.s32 4294967294, %s6966_s12   ;;  %s6966_s12 = sphi %s6991_s12, %s9679_s12   ;;  %s6962_s11 = sphi %s6989_s11, %s9678_s11   ;;  %s6958_s10 = sphi %s6987_s10, %s9677_s10   ;;  %s6954_s9 = sphi %s6985_s9, %s9676_s9  }
   0x4   : > { %s7010_s15 = sadd.s32 1, %s6966_s12   ;;  %s69_s16 = sadd.s32 1, %s6962_s11 }
   0x5   : > { %s66_s17 = ssub.s32 %s6966_s12, %s7010_s15  ;;  %p79_p0 = scmp.ne.s32.totalorder %s6962_s11, %s6958_s10 }
   0x6   : > { %p67_p1 = scmp.eq.s32.totalorder %s66_s17, 0  ;;  %p80_p2 = scmp.eq.s32.totalorder %s7006_s13, 1 }
   0x7   : > { %p85_p3 = scmp.ne.s32.totalorder %s6958_s10, %s6954_s9  ;;  %p86_p4 = scmp.eq.s32.totalorder %s5633_s14, 1 }
   0x8   : > { %s7021_s18 = scalar_select %p67_p1, %s6962_s11, %s69_s16  }
   0x9   : > { %p7023_p5 = por %p80_p2, %p79_p0  ;;  %p7027_p6 = por %p86_p4, %p85_p3 }
   0xa   : > { %p5636_p7 = scmp.ge.s32.totalorder %s6966_s12, 1  ;;  %p115_p8 = scmp.lt.s32.totalorder %s6966_s12, 3 }
   0xc   : > { %p116_p9 = pnand %p5636_p7, %p115_p8 }
   0xe   : > { %119 = sbr.rel (%p116_p9) target bundleno = 1356 (0x54c), region = 28 }
  0x13   : > { %vm306_vm0 = vcmask 1043456   ;;  %v5738_v0 = vld [vmem:[%s9224_s1 + $0x8] sm:$0xf]  ;;  %p137_p10 = scmp.lt.s32.totalorder %s7006_s13, 1  ;;  %v5938_v1 = vld [vmem:[%s9224_s1 + $0x18] sm:$0xf] }
  0x14   : > { %5739 = vmatpush.msk.msra.mxu2 %vm306_vm0, %v5738_v0  ;;  %v5804_v2 = vld [vmem:[%s9224_s1 + $0xc] sm:$0xf]  ;;  %v6004_v3 = vld [vmem:[%s9224_s1 + $0x1c] sm:$0xf]  ;;  %v5639_v4 = vld [vmem:[%s9224_s1 + $0x4] sm:$0xf] }
  0x15   : > { %s138_s29 = scalar_select %p137_p10, %s7006_s13, 1  ;;  %5805 = vmatpush.msk.msra.mxu3 %vm306_vm0, %v5804_v2  ;;  %v174_v5 = vld [vmem:[%s9224_s1] sm:$0xf]  ;;  %5640 = vmatpush.msk.msra.mxu0 %vm306_vm0, %v5639_v4  ;;  %v5839_v6 = vld [vmem:[%s9224_s1 + $0x14] sm:$0xf]  ;;  %vm209_vm1 = vcmask 31744  }
  0x16   : > { %5939 = vmatpush.msk.msrb.mxu2 %vm306_vm0, %v5938_v1  ;;  %v5838_v7 = vld [vmem:[%s9224_s1 + $0x10] sm:$0xf]  ;;  %5673 = vmatpush.msk.msra.mxu1 %vm306_vm0, %v174_v5  ;;  %s134_s17 = sand.u32 1, %s6958_s10   ;;  %s6859_s23 = sshll.u32 %s7006_s13, 10 }
  0x17   : > { %6005 = vmatpush.msk.msrb.mxu3 %vm306_vm0, %v6004_v3  ;;  %s6860_s16 = smul.u32 432, %s138_s29  ;;  %5840 = vmatpush.msk.msrb.mxu0 %vm306_vm0, %v5839_v6  ;;  %s5637_s21 = sshll.u32 %s134_s17, 10 }
  0x18   : > { %5873 = vmatpush.msk.msrb.mxu1 %vm306_vm0, %v5838_v7  ;;  %s5567_s25 = scalar_lea.hbm %s9225_s2, %s6859_s23  ;;  %s5556_s28 = scalar_lea.sflag [#allocation3], %s134_s17 }
  0x19   : > { %s7070_s22 = scalar_lea.vmem %s9223_s0, %s6860_s16  ;;  %s5570_s27 = sshll.u32 %s5567_s25, 4  ;;  %s5571_s27 = int_to_ptr.hbm [resolvable:$true] %s5570_s27 }
  0x1a   : > { %v5706_v8 = vld [vmem:[%s7070_s22 + $0x18] sm:$0xff]  ;;  %v7077_v10 = vld [vmem:[%s7070_s22 + $0x1] sm:$0xff]  ;;  %v7091_v14 = vld [vmem:[%s7070_s22 + $0x9] sm:$0xff]  ;;  %s6918_s29 = sshra.s32 %s5571_s27, 4  ;;  %s6924_s5 = scalar_lea.hbm %s9225_s2, 2048  ;;  %s6919_s29 = int_to_ptr.hbm [resolvable:$true] %s6918_s29 }
  0x1b   : > { %v7074_v9 = vld [vmem:[%s7070_s22 + $0x19] sm:$0xff]  ;;  %5740 = vmatmul.msk.f32.vlgmr.msra.gmra.mxu2 %vm209_vm1, %v5706_v8  ;;  %5641 = vmatmul.msk.f32.vlgmr.msra.gmra.mxu0 %vm209_vm1, %v7077_v10  ;;  %v7088_v13 = vld [vmem:[%s7070_s22 + $0x21] sm:$0xff]  ;;  %v5708_v16 = vld [vmem:[%s7070_s22 + $0x30] sm:$0xff]  ;;  %s6920_s30 = scalar_lea.hbm %s6919_s29, 1024  ;;  %p6925_p0 = scmp.lt.s32.totalorder %s6919_s29, %s9225_s2 }
  0x1c   : > { %5806 = vmatmul.msk.f32.vlgmr.msra.gmra.mxu3 %vm209_vm1, %v7074_v9  ;;  %v142_v11 = vld [vmem:[%s7070_s22] sm:$0xff]  ;;  %v143_v15 = vld [vmem:[%s7070_s22 + $0x8] sm:$0xff]  ;;  %v7102_v17 = vld [vmem:[%s7070_s22 + $0x31] sm:$0xff]  ;;  %p6921_p11 = scmp.ne.s32.totalorder %s6919_s29, %s6920_s30  ;;  %p6926_p1 = scmp.lt.s32.totalorder %s6924_s5, %s6920_s30 }
  0x1d   : > { %5674 = vmatmul.msk.f32.vlgmr.msra.gmra.mxu1 %vm209_vm1, %v142_v11  ;;  %v5707_v12 = vld [vmem:[%s7070_s22 + $0x20] sm:$0xff]  ;;  %v5709_v18 = vld [vmem:[%s7070_s22 + $0x38] sm:$0xff]  ;;  %v5710_v20 = vld [vmem:[%s7070_s22 + $0x48] sm:$0xff] }
  0x1e   : > { %v7112_v19 = vld [vmem:[%s7070_s22 + $0x39] sm:$0xff]  ;;  %v7122_v21 = vld [vmem:[%s7070_s22 + $0x49] sm:$0xff]  ;;  %v5777_v23 = vld [vmem:[%s7070_s22 + $0x51] sm:$0xff]  ;;  %p6922_p12 = pnand %p6921_p11, %p7023_p5  ;;  %p6927_p2 = por %p6926_p1, %p6925_p0 }
  0x1f   : > { %v5711_v22 = vld [vmem:[%s7070_s22 + $0x50] sm:$0xff]  ;;  %v5712_v24 = vld [vmem:[%s7070_s22 + $0x60] sm:$0xff]  ;;  %v5713_v26 = vld [vmem:[%s7070_s22 + $0x68] sm:$0xff] }
  0x20   : > { %v5778_v25 = vld [vmem:[%s7070_s22 + $0x61] sm:$0xff]  ;;  %v5779_v27 = vld [vmem:[%s7070_s22 + $0x69] sm:$0xff]  ;;  %v5714_v28 = vld [vmem:[%s7070_s22 + $0x78] sm:$0xff]  ;;  %p6923_p13 = pneg %p6922_p12 }
  0x21   : > { %v5780_v29 = vld [vmem:[%s7070_s22 + $0x79] sm:$0xff]  ;;  %v5781_v31 = vld [vmem:[%s7070_s22 + $0x81] sm:$0xff]  ;;  %v5716_v32 = vld [vmem:[%s7070_s22 + $0x90] sm:$0xff] }
  0x22   : > { %v5715_v30 = vld [vmem:[%s7070_s22 + $0x80] sm:$0xff]  ;;  %v5782_v33 = vld [vmem:[%s7070_s22 + $0x91] sm:$0xff]  ;;  %v5718_v36 = vld [vmem:[%s7070_s22 + $0xa8] sm:$0xff]  ;;  %p6928_p3 = pnand %p6927_p2, %p6923_p13 }
  0x23   : > { %5741 = vmatmul.msk.f32.gmra.mxu2 %vm209_vm1, %v5707_v12  ;;  %5642 = vmatmul.msk.f32.gmra.mxu0 %vm209_vm1, %v7091_v14  ;;  %v5717_v34 = vld [vmem:[%s7070_s22 + $0x98] sm:$0xff]  ;;  %v5784_v37 = vld [vmem:[%s7070_s22 + $0xa9] sm:$0xff]  ;;  %v5720_v40 = vld [vmem:[%s7070_s22 + $0xc0] sm:$0xff] }
  0x24   : > { %5807 = vmatmul.msk.f32.gmra.mxu3 %vm209_vm1, %v7088_v13  ;;  %v5783_v35 = vld [vmem:[%s7070_s22 + $0x99] sm:$0xff]  ;;  %v5719_v38 = vld [vmem:[%s7070_s22 + $0xb0] sm:$0xff]  ;;  %v5786_v41 = vld [vmem:[%s7070_s22 + $0xc1] sm:$0xff] }
  0x25   : > { %5675 = vmatmul.msk.f32.gmra.mxu1 %vm209_vm1, %v143_v15  ;;  %v5785_v39 = vld [vmem:[%s7070_s22 + $0xb1] sm:$0xff]  ;;  %v5721_v42 = vld [vmem:[%s7070_s22 + $0xc8] sm:$0xff]  ;;  %v5788_v45 = vld [vmem:[%s7070_s22 + $0xd9] sm:$0xff] }
  0x26   : > { %v5787_v43 = vld [vmem:[%s7070_s22 + $0xc9] sm:$0xff]  ;;  %v5722_v44 = vld [vmem:[%s7070_s22 + $0xd8] sm:$0xff]  ;;  %v5723_v52 = vld [vmem:[%s7070_s22 + $0xe0] sm:$0xff] }
  0x27   : > { %v5789_v53 = vld [vmem:[%s7070_s22 + $0xe1] sm:$0xff]  ;;  %v5724_v61 = vld [vmem:[%s7070_s22 + $0xf0] sm:$0xff]  ;;  %v5725_v6 = vld [vmem:[%s7070_s22 + $0xf8] sm:$0xff] }
  0x28   : > { %v5790_v62 = vld [vmem:[%s7070_s22 + $0xf1] sm:$0xff]  ;;  %v5791_v7 = vld [vmem:[%s7070_s22 + $0xf9] sm:$0xff] }
  0x2b   : > { %5742 = vmatmul.msk.f32.gmra.mxu2 %vm209_vm1, %v5708_v16  ;;  %5643 = vmatmul.msk.f32.gmra.mxu0 %vm209_vm1, %v7074_v9 }
  0x2c   : > { %5808 = vmatmul.msk.f32.gmra.mxu3 %vm209_vm1, %v7102_v17 }
  0x2d   : > { %5676 = vmatmul.msk.f32.gmra.mxu1 %vm209_vm1, %v5706_v8 }
  0x33   : > { %5743 = vmatmul.msk.f32.gmra.mxu2 %vm209_vm1, %v5709_v18  ;;  %5644 = vmatmul.msk.f32.gmra.mxu0 %vm209_vm1, %v7088_v13 }
  0x34   : > { %5809 = vmatmul.msk.f32.gmra.mxu3 %vm209_vm1, %v7112_v19 }
  0x35   : > { %5677 = vmatmul.msk.f32.gmra.mxu1 %vm209_vm1, %v5707_v12 }
  0x3b   : > { %5744 = vmatmul.msk.f32.gmra.mxu2 %vm209_vm1, %v5710_v20  ;;  %5645 = vmatmul.msk.f32.gmra.mxu0 %vm209_vm1, %v7102_v17 }
  0x3c   : > { %5810 = vmatmul.msk.f32.gmra.mxu3 %vm209_vm1, %v7122_v21 }
  0x3d   : > { %5678 = vmatmul.msk.f32.gmra.mxu1 %vm209_vm1, %v5708_v16 }
  0x43   : > { %5745 = vmatmul.msk.f32.gmra.mxu2 %vm209_vm1, %v5711_v22  ;;  %5646 = vmatmul.msk.f32.gmra.mxu0 %vm209_vm1, %v7112_v19 }
  0x44   : > { %5811 = vmatmul.msk.f32.gmra.mxu3 %vm209_vm1, %v5777_v23 }
  0x45   : > { %5679 = vmatmul.msk.f32.gmra.mxu1 %vm209_vm1, %v5709_v18 }
  0x4b   : > { %5746 = vmatmul.msk.f32.gmra.mxu2 %vm209_vm1, %v5712_v24  ;;  %5647 = vmatmul.msk.f32.gmra.mxu0 %vm209_vm1, %v7122_v21 }
  0x4c   : > { %5812 = vmatmul.msk.f32.gmra.mxu3 %vm209_vm1, %v5778_v25 }
  0x4d   : > { %5680 = vmatmul.msk.f32.gmra.mxu1 %vm209_vm1, %v5710_v20 }
  0x53   : > { %5747 = vmatmul.msk.f32.gmra.mxu2 %vm209_vm1, %v5713_v26  ;;  %5648 = vmatmul.msk.f32.gmra.mxu0 %vm209_vm1, %v5777_v23  ;;  %v5792_v23 = vld [vmem:[%s7070_s22 + $0x109] sm:$0xff] }
  0x54   : > { %5813 = vmatmul.msk.f32.gmra.mxu3 %vm209_vm1, %v5779_v27 }
  0x55   : > { %5681 = vmatmul.msk.f32.gmra.mxu1 %vm209_vm1, %v5711_v22  ;;  %v5726_v22 = vld [vmem:[%s7070_s22 + $0x108] sm:$0xff] }
  0x5b   : > { %5748 = vmatmul.msk.f32.gmra.mxu2 %vm209_vm1, %v5714_v28  ;;  %5649 = vmatmul.msk.f32.gmra.mxu0 %vm209_vm1, %v5778_v25 }
  0x5c   : > { %5814 = vmatmul.msk.f32.gmra.mxu3 %vm209_vm1, %v5780_v29 }
  0x5d   : > { %5682 = vmatmul.msk.f32.gmra.mxu1 %vm209_vm1, %v5712_v24 }
  0x63   : > { %5749 = vmatmul.msk.f32.gmra.mxu2 %vm209_vm1, %v5715_v30  ;;  %5650 = vmatmul.msk.f32.gmra.mxu0 %vm209_vm1, %v5779_v27 }
  0x64   : > { %5815 = vmatmul.msk.f32.gmra.mxu3 %vm209_vm1, %v5781_v31 }
  0x65   : > { %5683 = vmatmul.msk.f32.gmra.mxu1 %vm209_vm1, %v5713_v26 }
  0x6b   : > { %5750 = vmatmul.msk.f32.gmra.mxu2 %vm209_vm1, %v5716_v32  ;;  %5651 = vmatmul.msk.f32.gmra.mxu0 %vm209_vm1, %v5780_v29 }
  0x6c   : > { %5816 = vmatmul.msk.f32.gmra.mxu3 %vm209_vm1, %v5782_v33 }
  0x6d   : > { %5684 = vmatmul.msk.f32.gmra.mxu1 %vm209_vm1, %v5714_v28 }
  0x73   : > { %5751 = vmatmul.msk.f32.gmra.mxu2 %vm209_vm1, %v5717_v34  ;;  %5652 = vmatmul.msk.f32.gmra.mxu0 %vm209_vm1, %v5781_v31  ;;  %v5727_v31 = vld [vmem:[%s7070_s22 + $0x110] sm:$0xff] }
  0x74   : > { %5817 = vmatmul.msk.f32.gmra.mxu3 %vm209_vm1, %v5783_v35 }
  0x75   : > { %5685 = vmatmul.msk.f32.gmra.mxu1 %vm209_vm1, %v5715_v30 }
  0x7b   : > { %5752 = vmatmul.msk.f32.gmra.mxu2 %vm209_vm1, %v5718_v36  ;;  %5653 = vmatmul.msk.f32.gmra.mxu0 %vm209_vm1, %v5782_v33 }
  0x7c   : > { %5818 = vmatmul.msk.f32.gmra.mxu3 %vm209_vm1, %v5784_v37 }
  0x7d   : > { %5686 = vmatmul.msk.f32.gmra.mxu1 %vm209_vm1, %v5716_v32  ;;  %v5793_v32 = vld [vmem:[%s7070_s22 + $0x111] sm:$0xff] }
  0x83   : > { %5753 = vmatmul.msk.f32.gmra.mxu2 %vm209_vm1, %v5719_v38  ;;  %5654 = vmatmul.msk.f32.gmra.mxu0 %vm209_vm1, %v5783_v35 }
  0x84   : > { %5819 = vmatmul.msk.f32.gmra.mxu3 %vm209_vm1, %v5785_v39 }
  0x85   : > { %5687 = vmatmul.msk.f32.gmra.mxu1 %vm209_vm1, %v5717_v34 }
  0x8b   : > { %5754 = vmatmul.msk.f32.gmra.mxu2 %vm209_vm1, %v5720_v40  ;;  %5655 = vmatmul.msk.f32.gmra.mxu0 %vm209_vm1, %v5784_v37 }
  0x8c   : > { %5820 = vmatmul.msk.f32.gmra.mxu3 %vm209_vm1, %v5786_v41 }
  0x8d   : > { %5688 = vmatmul.msk.f32.gmra.mxu1 %vm209_vm1, %v5718_v36 }
  0x93   : > { %5755 = vmatmul.msk.f32.gmra.mxu2 %vm209_vm1, %v5721_v42  ;;  %5656 = vmatmul.msk.f32.gmra.mxu0 %vm209_vm1, %v5785_v39 }
  0x94   : > { %5821 = vmatmul.msk.f32.gmra.mxu3 %vm209_vm1, %v5787_v43 }
  0x95   : > { %5689 = vmatmul.msk.f32.gmra.mxu1 %vm209_vm1, %v5719_v38 }
  0x98   : > { %v327_v46 = vpop.f32.mrf.mxu0 }
  0x9a   : > { %v539_v47 = vpop.f32.mrf.mxu1 }
  0x9b   : > { %5756 = vmatmul.msk.f32.gmra.mxu2 %vm209_vm1, %v5722_v44  ;;  %v540_v48 = vadd.f32 %v539_v47, %v327_v46  ;;  %5657 = vmatmul.msk.f32.gmra.mxu0 %vm209_vm1, %v5786_v41  ;;  %v5794_v41 = vld [vmem:[%s7070_s22 + $0x121] sm:$0xff] }
  0x9c   : > { %5822 = vmatmul.msk.f32.gmra.mxu3 %vm209_vm1, %v5788_v45 }
  0x9d   : > { %5690 = vmatmul.msk.f32.gmra.mxu1 %vm209_vm1, %v5720_v40  ;;  %v5728_v40 = vld [vmem:[%s7070_s22 + $0x120] sm:$0xff] }
  0x9e   : > { %v786_v49 = vpop.f32.mrf.mxu2 }
  0x9f   : > { %v1064_v50 = vpop.f32.mrf.mxu3  ;;  %v882_v51 = vadd.f32 %v786_v49, %v540_v48  ;;  %v5729_v49 = vld [vmem:[%s7070_s22 + $0x128] sm:$0xff] }
  0xa0   : > { %v330_v55 = vpop.f32.mrf.mxu0 }
  0xa1   : > { %v7206_v54 = vadd.f32 %v1064_v50, %v882_v51  ;;  %v5795_v50 = vld [vmem:[%s7070_s22 + $0x129] sm:$0xff] }
  0xa2   : > { %v542_v56 = vpop.f32.mrf.mxu1 }
  0xa3   : > { %9393 = vst [vmem:[#allocation5_spill] sm:$0xff] %v7206_v54  ;;  %5757 = vmatmul.msk.f32.gmra.mxu2 %vm209_vm1, %v5723_v52  ;;  %v543_v57 = vadd.f32 %v542_v56, %v330_v55  ;;  %5658 = vmatmul.msk.f32.gmra.mxu0 %vm209_vm1, %v5787_v43 }
  0xa4   : > { %5823 = vmatmul.msk.f32.gmra.mxu3 %vm209_vm1, %v5789_v53 }
  0xa5   : > { %5691 = vmatmul.msk.f32.gmra.mxu1 %vm209_vm1, %v5721_v42 }
  0xa6   : > { %v789_v58 = vpop.f32.mrf.mxu2 }
  0xa7   : > { %v1067_v59 = vpop.f32.mrf.mxu3  ;;  %v883_v60 = vadd.f32 %v789_v58, %v543_v57 }
  0xa8   : > { %v333_v0 = vpop.f32.mrf.mxu0 }
  0xa9   : > { %v7214_v63 = vadd.f32 %v1067_v59, %v883_v60  ;;  %v5730_v59 = vld [vmem:[%s7070_s22 + $0x138] sm:$0xff] }
  0xaa   : > { %v545_v1 = vpop.f32.mrf.mxu1  ;;  %v5796_v60 = vld [vmem:[%s7070_s22 + $0x139] sm:$0xff] }
  0xab   : > { %9394 = vst [vmem:[#allocation6_spill] sm:$0xff] %v7214_v63  ;;  %5758 = vmatmul.msk.f32.gmra.mxu2 %vm209_vm1, %v5724_v61  ;;  %v546_v2 = vadd.f32 %v545_v1, %v333_v0  ;;  %5659 = vmatmul.msk.f32.gmra.mxu0 %vm209_vm1, %v5788_v45 }
  0xac   : > { %5824 = vmatmul.msk.f32.gmra.mxu3 %vm209_vm1, %v5790_v62 }
  0xad   : > { %5692 = vmatmul.msk.f32.gmra.mxu1 %vm209_vm1, %v5722_v44 }
  0xae   : > { %v792_v3 = vpop.f32.mrf.mxu2 }
  0xaf   : > { %v1070_v4 = vpop.f32.mrf.mxu3  ;;  %v884_v5 = vadd.f32 %v792_v3, %v546_v2 }
  0xb0   : > { %v336_v11 = vpop.f32.mrf.mxu0 }
  0xb1   : > { %v7222_v8 = vadd.f32 %v1070_v4, %v884_v5  ;;  %v5731_v5 = vld [vmem:[%s7070_s22 + $0x140] sm:$0xff] }
  0xb2   : > { %v548_v12 = vpop.f32.mrf.mxu1 }
  0xb3   : > { %9395 = vst [vmem:[#allocation7_spill] sm:$0xff] %v7222_v8  ;;  %5759 = vmatmul.msk.f32.gmra.mxu2 %vm209_vm1, %v5725_v6  ;;  %v549_v15 = vadd.f32 %v548_v12, %v336_v11  ;;  %5660 = vmatmul.msk.f32.gmra.mxu0 %vm209_vm1, %v5789_v53 }
  0xb4   : > { %5825 = vmatmul.msk.f32.gmra.mxu3 %vm209_vm1, %v5791_v7 }
  0xb5   : > { %5693 = vmatmul.msk.f32.gmra.mxu1 %vm209_vm1, %v5723_v52 }
  0xb6   : > { %v795_v16 = vpop.f32.mrf.mxu2 }
  0xb7   : > { %v1073_v18 = vpop.f32.mrf.mxu3  ;;  %v885_v20 = vadd.f32 %v795_v16, %v549_v15 }
  0xb8   : > { %v339_v25 = vpop.f32.mrf.mxu0 }
  0xb9   : > { %v7230_v24 = vadd.f32 %v1073_v18, %v885_v20 }
  0xba   : > { %v551_v26 = vpop.f32.mrf.mxu1 }
  0xbb   : > { %9396 = vst [vmem:[#allocation8_spill] sm:$0xff] %v7230_v24  ;;  %5760 = vmatmul.msk.f32.gmra.mxu2 %vm209_vm1, %v5726_v22  ;;  %v552_v27 = vadd.f32 %v551_v26, %v339_v25  ;;  %5661 = vmatmul.msk.f32.gmra.mxu0 %vm209_vm1, %v5790_v62 }
  0xbc   : > { %5826 = vmatmul.msk.f32.gmra.mxu3 %vm209_vm1, %v5792_v23 }
  0xbd   : > { %5694 = vmatmul.msk.f32.gmra.mxu1 %vm209_vm1, %v5724_v61 }
  0xbe   : > { %v798_v28 = vpop.f32.mrf.mxu2 }
  0xbf   : > { %v1076_v29 = vpop.f32.mrf.mxu3  ;;  %v886_v30 = vadd.f32 %v798_v28, %v552_v27 }
  0xc0   : > { %v342_v34 = vpop.f32.mrf.mxu0 }
  0xc1   : > { %v7238_v33 = vadd.f32 %v1076_v29, %v886_v30 }
  0xc2   : > { %v554_v35 = vpop.f32.mrf.mxu1 }
  0xc3   : > { %9397 = vst [vmem:[#allocation9_spill] sm:$0xff] %v7238_v33  ;;  %5761 = vmatmul.msk.f32.gmra.mxu2 %vm209_vm1, %v5727_v31  ;;  %v555_v36 = vadd.f32 %v554_v35, %v342_v34  ;;  %5662 = vmatmul.msk.f32.gmra.mxu0 %vm209_vm1, %v5791_v7  ;;  %v5799_v34 = vld [vmem:[%s7070_s22 + $0x159] sm:$0xff] }
  0xc4   : > { %5827 = vmatmul.msk.f32.gmra.mxu3 %vm209_vm1, %v5793_v32 }
  0xc5   : > { %5695 = vmatmul.msk.f32.gmra.mxu1 %vm209_vm1, %v5725_v6  ;;  %v5797_v6 = vld [vmem:[%s7070_s22 + $0x141] sm:$0xff] }
  0xc6   : > { %v801_v37 = vpop.f32.mrf.mxu2 }
  0xc7   : > { %v1079_v38 = vpop.f32.mrf.mxu3  ;;  %v887_v39 = vadd.f32 %v801_v37, %v555_v36 }
  0xc8   : > { %v345_v43 = vpop.f32.mrf.mxu0 }
  0xc9   : > { %v7246_v42 = vadd.f32 %v1079_v38, %v887_v39 }
  0xca   : > { %v557_v44 = vpop.f32.mrf.mxu1 }
  0xcb   : > { %9398 = vst [vmem:[#allocation10_spill] sm:$0xff] %v7246_v42  ;;  %5762 = vmatmul.msk.f32.gmra.mxu2 %vm209_vm1, %v5728_v40  ;;  %v558_v45 = vadd.f32 %v557_v44, %v345_v43  ;;  %5663 = vmatmul.msk.f32.gmra.mxu0 %vm209_vm1, %v5792_v23  ;;  %v5798_v23 = vld [vmem:[%s7070_s22 + $0x151] sm:$0xff]  ;;  %v5734_v43 = vld [vmem:[%s7070_s22 + $0x168] sm:$0xff] }
  0xcc   : > { %5828 = vmatmul.msk.f32.gmra.mxu3 %vm209_vm1, %v5794_v41  ;;  %v5800_v44 = vld [vmem:[%s7070_s22 + $0x169] sm:$0xff] }
  0xcd   : > { %5696 = vmatmul.msk.f32.gmra.mxu1 %vm209_vm1, %v5726_v22  ;;  %v5732_v22 = vld [vmem:[%s7070_s22 + $0x150] sm:$0xff] }
  0xce   : > { %v804_v46 = vpop.f32.mrf.mxu2 }
  0xcf   : > { %v1082_v47 = vpop.f32.mrf.mxu3  ;;  %v888_v48 = vadd.f32 %v804_v46, %v558_v45 }
  0xd0   : > { %v348_v52 = vpop.f32.mrf.mxu0 }
  0xd1   : > { %v7254_v51 = vadd.f32 %v1082_v47, %v888_v48 }
  0xd2   : > { %v560_v53 = vpop.f32.mrf.mxu1 }
  0xd3   : > { %9399 = vst [vmem:[#allocation11_spill] sm:$0xff] %v7254_v51  ;;  %5763 = vmatmul.msk.f32.gmra.mxu2 %vm209_vm1, %v5729_v49  ;;  %v561_v55 = vadd.f32 %v560_v53, %v348_v52  ;;  %5664 = vmatmul.msk.f32.gmra.mxu0 %vm209_vm1, %v5793_v32  ;;  %v5733_v32 = vld [vmem:[%s7070_s22 + $0x158] sm:$0xff] }
  0xd4   : > { %5829 = vmatmul.msk.f32.gmra.mxu3 %vm209_vm1, %v5795_v50 }
  0xd5   : > { %5697 = vmatmul.msk.f32.gmra.mxu1 %vm209_vm1, %v5727_v31 }
  0xd6   : > { %v807_v56 = vpop.f32.mrf.mxu2 }
  0xd7   : > { %v1085_v57 = vpop.f32.mrf.mxu3  ;;  %v889_v58 = vadd.f32 %v807_v56, %v561_v55  ;;  %v6135_v56 = vld [vmem:[%s9224_s1 + $0x24] sm:$0xf] }
  0xd8   : > { %v351_v62 = vpop.f32.mrf.mxu0  ;;  %6136 = vmatpush.msk.msra.mxu0 %vm306_vm0, %v6135_v56  ;;  %v5974_v56 = vld [vmem:[%s7070_s22 + $0x32] sm:$0xff] }
  0xd9   : > { %v7262_v61 = vadd.f32 %v1085_v57, %v889_v58  ;;  %v6102_v57 = vld [vmem:[%s9224_s1 + $0x20] sm:$0xf]  ;;  %v5735_v58 = vld [vmem:[%s7070_s22 + $0x170] sm:$0xff] }
  0xda   : > { %v563_v0 = vpop.f32.mrf.mxu1  ;;  %6169 = vmatpush.msk.msra.mxu1 %vm306_vm0, %v6102_v57 }
  0xdb   : > { %9400 = vst [vmem:[#allocation12_spill] sm:$0xff] %v7262_v61  ;;  %5764 = vmatmul.msk.f32.gmra.mxu2 %vm209_vm1, %v5730_v59  ;;  %v564_v1 = vadd.f32 %v563_v0, %v351_v62  ;;  %5665 = vmatmul.msk.f32.gmra.mxu0 %vm209_vm1, %v5794_v41 }
  0xdc   : > { %5830 = vmatmul.msk.f32.gmra.mxu3 %vm209_vm1, %v5796_v60 }
  0xdd   : > { %5698 = vmatmul.msk.f32.gmra.mxu1 %vm209_vm1, %v5728_v40 }
  0xde   : > { %v810_v2 = vpop.f32.mrf.mxu2 }
  0xdf   : > { %v1088_v3 = vpop.f32.mrf.mxu3  ;;  %v890_v4 = vadd.f32 %v810_v2, %v564_v1 }
  0xe0   : > { %v354_v11 = vpop.f32.mrf.mxu0 }
  0xe1   : > { %v7270_v7 = vadd.f32 %v1088_v3, %v890_v4 }
  0xe2   : > { %v566_v12 = vpop.f32.mrf.mxu1 }
  0xe3   : > { %9401 = vst [vmem:[#allocation13_spill] sm:$0xff] %v7270_v7  ;;  %5765 = vmatmul.msk.f32.gmra.mxu2 %vm209_vm1, %v5731_v5  ;;  %v567_v15 = vadd.f32 %v566_v12, %v354_v11  ;;  %5666 = vmatmul.msk.f32.gmra.mxu0 %vm209_vm1, %v5795_v50  ;;  %v6300_v50 = vld [vmem:[%s9224_s1 + $0x2c] sm:$0xf] }
  0xe4   : > { %5831 = vmatmul.msk.f32.gmra.mxu3 %vm209_vm1, %v5797_v6 }
  0xe5   : > { %5699 = vmatmul.msk.f32.gmra.mxu1 %vm209_vm1, %v5729_v49  ;;  %v6234_v49 = vld [vmem:[%s9224_s1 + $0x28] sm:$0xf]  ;;  %6301 = vmatpush.msk.msra.mxu3 %vm306_vm0, %v6300_v50 }
  0xe6   : > { %v813_v16 = vpop.f32.mrf.mxu2  ;;  %6235 = vmatpush.msk.msra.mxu2 %vm306_vm0, %v6234_v49 }
  0xe7   : > { %v1091_v18 = vpop.f32.mrf.mxu3  ;;  %v891_v20 = vadd.f32 %v813_v16, %v567_v15 }
  0xe8   : > { %v357_v26 = vpop.f32.mrf.mxu0 }
  0xe9   : > { %v7278_v25 = vadd.f32 %v1091_v18, %v891_v20 }
  0xea   : > { %v569_v27 = vpop.f32.mrf.mxu1 }
  0xeb   : > { %9402 = vst [vmem:[#allocation14_spill] sm:$0xff] %v7278_v25  ;;  %5766 = vmatmul.msk.f32.gmra.mxu2 %vm209_vm1, %v5732_v22  ;;  %v570_v28 = vadd.f32 %v569_v27, %v357_v26  ;;  %5667 = vmatmul.msk.f32.gmra.mxu0 %vm209_vm1, %v5796_v60  ;;  %v5803_v26 = vld [vmem:[%s7070_s22 + $0x189] sm:$0xff] }
  0xec   : > { %5832 = vmatmul.msk.f32.gmra.mxu3 %vm209_vm1, %v5798_v23 }
  0xed   : > { %5700 = vmatmul.msk.f32.gmra.mxu1 %vm209_vm1, %v5730_v59  ;;  %v5801_v59 = vld [vmem:[%s7070_s22 + $0x171] sm:$0xff] }
  0xee   : > { %v816_v29 = vpop.f32.mrf.mxu2 }
  0xef   : > { %v1094_v30 = vpop.f32.mrf.mxu3  ;;  %v892_v31 = vadd.f32 %v816_v29, %v570_v28 }
  0xf0   : > { %v360_v36 = vpop.f32.mrf.mxu0 }
  0xf1   : > { %v7286_v35 = vadd.f32 %v1094_v30, %v892_v31 }
  0xf2   : > { %v572_v37 = vpop.f32.mrf.mxu1 }
  0xf3   : > { %9403 = vst [vmem:[#allocation15_spill] sm:$0xff] %v7286_v35  ;;  %5767 = vmatmul.msk.f32.gmra.mxu2 %vm209_vm1, %v5733_v32  ;;  %v573_v38 = vadd.f32 %v572_v37, %v360_v36  ;;  %5668 = vmatmul.msk.f32.gmra.mxu0 %vm209_vm1, %v5797_v6  ;;  %v5802_v6 = vld [vmem:[%s7070_s22 + $0x181] sm:$0xff] }
  0xf4   : > { %5833 = vmatmul.msk.f32.gmra.mxu3 %vm209_vm1, %v5799_v34  ;;  %v5972_v36 = vld [vmem:[%s7070_s22 + $0x1a] sm:$0xff] }
  0xf5   : > { %5701 = vmatmul.msk.f32.gmra.mxu1 %vm209_vm1, %v5731_v5  ;;  %v5736_v5 = vld [vmem:[%s7070_s22 + $0x180] sm:$0xff] }
  0xf6   : > { %v819_v39 = vpop.f32.mrf.mxu2 }
  0xf7   : > { %v1097_v40 = vpop.f32.mrf.mxu3  ;;  %v893_v41 = vadd.f32 %v819_v39, %v573_v38 }
  0xf8   : > { %v363_v46 = vpop.f32.mrf.mxu0 }
  0xf9   : > { %v7294_v45 = vadd.f32 %v1097_v40, %v893_v41  ;;  %v1366_v40 = vld [vmem:[%s7070_s22 + $0x2] sm:$0xff] }
  0xfa   : > { %v575_v47 = vpop.f32.mrf.mxu1 }
  0xfb   : > { %9404 = vst [vmem:[#allocation16_spill] sm:$0xff] %v7294_v45  ;;  %5768 = vmatmul.msk.f32.gmra.mxu2 %vm209_vm1, %v5734_v43  ;;  %v576_v48 = vadd.f32 %v575_v47, %v363_v46  ;;  %5669 = vmatmul.msk.f32.gmra.mxu0 %vm209_vm1, %v5798_v23  ;;  %v5737_v23 = vld [vmem:[%s7070_s22 + $0x188] sm:$0xff] }
  0xfc   : > { %5834 = vmatmul.msk.f32.gmra.mxu3 %vm209_vm1, %v5800_v44  ;;  %v5973_v47 = vld [vmem:[%s7070_s22 + $0x22] sm:$0xff] }
  0xfd   : > { %5702 = vmatmul.msk.f32.gmra.mxu1 %vm209_vm1, %v5732_v22 }
  0xfe   : > { %v822_v52 = vpop.f32.mrf.mxu2 }
  0xff   : > { %v1100_v53 = vpop.f32.mrf.mxu3  ;;  %v894_v55 = vadd.f32 %v822_v52, %v576_v48  ;;  %v1367_v52 = vld [vmem:[%s7070_s22 + $0xa] sm:$0xff] }
 0x100   : > { %v366_v62 = vpop.f32.mrf.mxu0 }
 0x101   : > { %v7318_v60 = vadd.f32 %v1100_v53, %v894_v55 }
 0x102   : > { %v578_v0 = vpop.f32.mrf.mxu1 }
 0x103   : > { %9405 = vst [vmem:[#allocation17_spill] sm:$0xff] %v7318_v60  ;;  %5769 = vmatmul.msk.f32.gmra.mxu2 %vm209_vm1, %v5735_v58  ;;  %v579_v1 = vadd.f32 %v578_v0, %v366_v62  ;;  %5670 = vmatmul.msk.f32.gmra.mxu0 %vm209_vm1, %v5799_v34  ;;  %v1334_v62 = vld [vmem:[%s7070_s22 + $0x19] sm:$0xff] }
 0x104   : > { %5835 = vmatmul.msk.f32.gmra.mxu3 %vm209_vm1, %v5801_v59 }
 0x105   : > { %5703 = vmatmul.msk.f32.gmra.mxu1 %vm209_vm1, %v5733_v32 }
 0x106   : > { %v825_v2 = vpop.f32.mrf.mxu2 }
 0x107   : > { %v1103_v3 = vpop.f32.mrf.mxu3  ;;  %v895_v4 = vadd.f32 %v825_v2, %v579_v1  ;;  %v5975_v2 = vld [vmem:[%s7070_s22 + $0x3a] sm:$0xff] }
 0x108   : > { %v369_v12 = vpop.f32.mrf.mxu0 }
 0x109   : > { %v7326_v11 = vadd.f32 %v1103_v3, %v895_v4 }
 0x10a   : > { %v581_v15 = vpop.f32.mrf.mxu1 }
 0x10b   : > { %9406 = vst [vmem:[#allocation18_spill] sm:$0xff] %v7326_v11  ;;  %5770 = vmatmul.msk.f32.gmra.mxu2 %vm209_vm1, %v5736_v5  ;;  %v582_v16 = vadd.f32 %v581_v15, %v369_v12  ;;  %5671 = vmatmul.msk.f32.gmra.mxu0 %vm209_vm1, %v5800_v44 }
 0x10c   : > { %5836 = vmatmul.msk.f32.gmra.mxu3 %vm209_vm1, %v5802_v6  ;;  %v1335_v6 = vld [vmem:[%s7070_s22 + $0x21] sm:$0xff] }
 0x10d   : > { %5704 = vmatmul.msk.f32.gmra.mxu1 %vm209_vm1, %v5734_v43 }
 0x10e   : > { %v828_v18 = vpop.f32.mrf.mxu2 }
 0x10f   : > { %v1106_v20 = vpop.f32.mrf.mxu3  ;;  %v896_v22 = vadd.f32 %v828_v18, %v582_v16  ;;  %v5976_v18 = vld [vmem:[%s7070_s22 + $0x4a] sm:$0xff] }
 0x110   : > { %v372_v28 = vpop.f32.mrf.mxu0 }
 0x111   : > { %v7334_v27 = vadd.f32 %v1106_v20, %v896_v22 }
 0x112   : > { %v584_v29 = vpop.f32.mrf.mxu1 }
 0x113   : > { %9407 = vst [vmem:[#allocation19_spill] sm:$0xff] %v7334_v27  ;;  %5771 = vmatmul.msk.f32.gmra.mxu2 %vm209_vm1, %v5737_v23  ;;  %v585_v30 = vadd.f32 %v584_v29, %v372_v28  ;;  %5672 = vmatmul.msk.f32.gmra.mxu0 %vm209_vm1, %v5801_v59 }
 0x114   : > { %5837 = vmatmul.msk.f32.gmra.mxu3 %vm209_vm1, %v5803_v26  ;;  %v1336_v26 = vld [vmem:[%s7070_s22 + $0x31] sm:$0xff] }
 0x115   : > { %5705 = vmatmul.msk.f32.gmra.mxu1 %vm209_vm1, %v5735_v58 }
 0x116   : > { %v831_v31 = vpop.f32.mrf.mxu2 }
 0x117   : > { %v1109_v32 = vpop.f32.mrf.mxu3  ;;  %v897_v34 = vadd.f32 %v831_v31, %v585_v30  ;;  %v5911_v31 = vld [vmem:[%s7070_s22 + $0x51] sm:$0xff] }
 0x118   : > { %v375_v38 = vpop.f32.mrf.mxu0 }
 0x119   : > { %v7341_v37 = vadd.f32 %v1109_v32, %v897_v34  ;;  %v5977_v32 = vld [vmem:[%s7070_s22 + $0x52] sm:$0xff] }
 0x11a   : > { %v587_v39 = vpop.f32.mrf.mxu1 }
 0x11b   : > { %9408 = vst [vmem:[#allocation20_spill] sm:$0xff] %v7341_v37  ;;  %5940 = vmatmul.msk.f32.vlgmr.msrb.gmra.mxu2 %vm209_vm1, %v7074_v9  ;;  %v588_v41 = vadd.f32 %v587_v39, %v375_v38  ;;  %5841 = vmatmul.msk.f32.vlgmr.msrb.gmra.mxu0 %vm209_vm1, %v1366_v40 }
 0x11c   : > { %6006 = vmatmul.msk.f32.vlgmr.msrb.gmra.mxu3 %vm209_vm1, %v5972_v36 }
 0x11d   : > { %5874 = vmatmul.msk.f32.vlgmr.msrb.gmra.mxu1 %vm209_vm1, %v7077_v10 }
 0x11e   : > { %v834_v43 = vpop.f32.mrf.mxu2 }
 0x11f   : > { %v1112_v44 = vpop.f32.mrf.mxu3  ;;  %v898_v46 = vadd.f32 %v834_v43, %v588_v41 }
 0x120   : > { %v378_v49 = vpop.f32.mrf.mxu0 }
 0x121   : > { %v7351_v48 = vadd.f32 %v1112_v44, %v898_v46  ;;  %v5912_v44 = vld [vmem:[%s7070_s22 + $0x61] sm:$0xff] }
 0x122   : > { %v590_v50 = vpop.f32.mrf.mxu1  ;;  %v5978_v46 = vld [vmem:[%s7070_s22 + $0x62] sm:$0xff] }
 0x123   : > { %9409 = vst [vmem:[#allocation21_spill] sm:$0xff] %v7351_v48  ;;  %5941 = vmatmul.msk.f32.gmra.mxu2 %vm209_vm1, %v7088_v13  ;;  %v591_v9 = vadd.f32 %v590_v50, %v378_v49  ;;  %5842 = vmatmul.msk.f32.gmra.mxu0 %vm209_vm1, %v1367_v52  ;;  %v1338_v52 = vld [vmem:[%s7070_s22 + $0x49] sm:$0xff] }
 0x124   : > { %6007 = vmatmul.msk.f32.gmra.mxu3 %vm209_vm1, %v5973_v47 }
 0x125   : > { %5875 = vmatmul.msk.f32.gmra.mxu1 %vm209_vm1, %v7091_v14 }
 0x126   : > { %v837_v10 = vpop.f32.mrf.mxu2 }
 0x127   : > { %v1115_v53 = vpop.f32.mrf.mxu3  ;;  %v899_v55 = vadd.f32 %v837_v10, %v591_v9 }
 0x128   : > { %v381_v58 = vpop.f32.mrf.mxu0 }
 0x129   : > { %v7361_v57 = vadd.f32 %v1115_v53, %v899_v55 }
 0x12a   : > { %v593_v59 = vpop.f32.mrf.mxu1 }
 0x12b   : > { %9410 = vst [vmem:[#allocation22_spill] sm:$0xff] %v7361_v57  ;;  %5942 = vmatmul.msk.f32.gmra.mxu2 %vm209_vm1, %v7102_v17  ;;  %v594_v13 = vadd.f32 %v593_v59, %v381_v58  ;;  %5843 = vmatmul.msk.f32.gmra.mxu0 %vm209_vm1, %v5972_v36  ;;  %v5979_v58 = vld [vmem:[%s7070_s22 + $0x6a] sm:$0xff] }
 0x12c   : > { %6008 = vmatmul.msk.f32.gmra.mxu3 %vm209_vm1, %v5974_v56 }
 0x12d   : > { %5876 = vmatmul.msk.f32.gmra.mxu1 %vm209_vm1, %v1334_v62 }
 0x12e   : > { %v840_v14 = vpop.f32.mrf.mxu2 }
 0x12f   : > { %v1118_v0 = vpop.f32.mrf.mxu3  ;;  %v900_v1 = vadd.f32 %v840_v14, %v594_v13 }
 0x130   : > { %v384_v4 = vpop.f32.mrf.mxu0 }
 0x131   : > { %v7370_v3 = vadd.f32 %v1118_v0, %v900_v1 }
 0x132   : > { %v596_v5 = vpop.f32.mrf.mxu1 }
 0x133   : > { %9411 = vst [vmem:[#allocation23_spill] sm:$0xff] %v7370_v3  ;;  %5943 = vmatmul.msk.f32.gmra.mxu2 %vm209_vm1, %v7112_v19  ;;  %v597_v17 = vadd.f32 %v596_v5, %v384_v4  ;;  %5844 = vmatmul.msk.f32.gmra.mxu0 %vm209_vm1, %v5973_v47  ;;  %v5914_v4 = vld [vmem:[%s7070_s22 + $0x79] sm:$0xff] }
 0x134   : > { %6009 = vmatmul.msk.f32.gmra.mxu3 %vm209_vm1, %v5975_v2  ;;  %v5980_v5 = vld [vmem:[%s7070_s22 + $0x7a] sm:$0xff] }
 0x135   : > { %5877 = vmatmul.msk.f32.gmra.mxu1 %vm209_vm1, %v1335_v6 }
 0x136   : > { %v843_v12 = vpop.f32.mrf.mxu2 }
 0x137   : > { %v1121_v15 = vpop.f32.mrf.mxu3  ;;  %v901_v16 = vadd.f32 %v843_v12, %v597_v17 }
 0x138   : > { %v387_v22 = vpop.f32.mrf.mxu0 }
 0x139   : > { %v7379_v20 = vadd.f32 %v1121_v15, %v901_v16 }
 0x13a   : > { %v599_v23 = vpop.f32.mrf.mxu1 }
 0x13b   : > { %9412 = vst [vmem:[#allocation24_spill] sm:$0xff] %v7379_v20  ;;  %5944 = vmatmul.msk.f32.gmra.mxu2 %vm209_vm1, %v7122_v21  ;;  %v600_v19 = vadd.f32 %v599_v23, %v387_v22  ;;  %5845 = vmatmul.msk.f32.gmra.mxu0 %vm209_vm1, %v5974_v56  ;;  %v1337_v21 = vld [vmem:[%s7070_s22 + $0x39] sm:$0xff]  ;;  %v5913_v56 = vld [vmem:[%s7070_s22 + $0x69] sm:$0xff]  ;;  %v5915_v23 = vld [vmem:[%s7070_s22 + $0x81] sm:$0xff] }
 0x13c   : > { %6010 = vmatmul.msk.f32.gmra.mxu3 %vm209_vm1, %v5976_v18 }
 0x13d   : > { %5878 = vmatmul.msk.f32.gmra.mxu1 %vm209_vm1, %v1336_v26  ;;  %v5981_v26 = vld [vmem:[%s7070_s22 + $0x82] sm:$0xff] }
 0x13e   : > { %v846_v28 = vpop.f32.mrf.mxu2 }
 0x13f   : > { %v1124_v29 = vpop.f32.mrf.mxu3  ;;  %v902_v30 = vadd.f32 %v846_v28, %v600_v19 }
 0x140   : > { %v390_v36 = vpop.f32.mrf.mxu0 }
 0x141   : > { %v7389_v34 = vadd.f32 %v1124_v29, %v902_v30 }
 0x142   : > { %v602_v38 = vpop.f32.mrf.mxu1 }
 0x143   : > { %9413 = vst [vmem:[#allocation25_spill] sm:$0xff] %v7389_v34  ;;  %5945 = vmatmul.msk.f32.gmra.mxu2 %vm209_vm1, %v5911_v31  ;;  %v603_v39 = vadd.f32 %v602_v38, %v390_v36  ;;  %5846 = vmatmul.msk.f32.gmra.mxu0 %vm209_vm1, %v5975_v2  ;;  %v5916_v38 = vld [vmem:[%s7070_s22 + $0x91] sm:$0xff] }
 0x144   : > { %6011 = vmatmul.msk.f32.gmra.mxu3 %vm209_vm1, %v5977_v32 }
 0x145   : > { %5879 = vmatmul.msk.f32.gmra.mxu1 %vm209_vm1, %v1337_v21  ;;  %v5982_v21 = vld [vmem:[%s7070_s22 + $0x92] sm:$0xff] }
 0x146   : > { %v849_v40 = vpop.f32.mrf.mxu2 }
 0x147   : > { %v1127_v41 = vpop.f32.mrf.mxu3  ;;  %v903_v43 = vadd.f32 %v849_v40, %v603_v39 }
 0x148   : > { %v393_v49 = vpop.f32.mrf.mxu0 }
 0x149   : > { %v7398_v47 = vadd.f32 %v1127_v41, %v903_v43 }
 0x14a   : > { %v605_v50 = vpop.f32.mrf.mxu1 }
 0x14b   : > { %9414 = vst [vmem:[#allocation26_spill] sm:$0xff] %v7398_v47  ;;  %5946 = vmatmul.msk.f32.gmra.mxu2 %vm209_vm1, %v5912_v44  ;;  %v606_v9 = vadd.f32 %v605_v50, %v393_v49  ;;  %5847 = vmatmul.msk.f32.gmra.mxu0 %vm209_vm1, %v5976_v18  ;;  %v5917_v50 = vld [vmem:[%s7070_s22 + $0x99] sm:$0xff] }
 0x14c   : > { %6012 = vmatmul.msk.f32.gmra.mxu3 %vm209_vm1, %v5978_v46 }
 0x14d   : > { %5880 = vmatmul.msk.f32.gmra.mxu1 %vm209_vm1, %v1338_v52  ;;  %v5983_v52 = vld [vmem:[%s7070_s22 + $0x9a] sm:$0xff] }
 0x14e   : > { %v852_v10 = vpop.f32.mrf.mxu2 }
 0x14f   : > { %v1130_v53 = vpop.f32.mrf.mxu3  ;;  %v904_v55 = vadd.f32 %v852_v10, %v606_v9 }
 0x150   : > { %v396_v62 = vpop.f32.mrf.mxu0 }
 0x151   : > { %v7407_v59 = vadd.f32 %v1130_v53, %v904_v55 }
 0x152   : > { %v608_v13 = vpop.f32.mrf.mxu1 }
 0x153   : > { %9415 = vst [vmem:[#allocation27_spill] sm:$0xff] %v7407_v59  ;;  %5947 = vmatmul.msk.f32.gmra.mxu2 %vm209_vm1, %v5913_v56  ;;  %v609_v14 = vadd.f32 %v608_v13, %v396_v62  ;;  %5848 = vmatmul.msk.f32.gmra.mxu0 %vm209_vm1, %v5977_v32  ;;  %v5918_v13 = vld [vmem:[%s7070_s22 + $0xa9] sm:$0xff] }
 0x154   : > { %6013 = vmatmul.msk.f32.gmra.mxu3 %vm209_vm1, %v5979_v58 }
 0x155   : > { %5881 = vmatmul.msk.f32.gmra.mxu1 %vm209_vm1, %v5911_v31 }
 0x156   : > { %v855_v0 = vpop.f32.mrf.mxu2 }
 0x157   : > { %v1133_v1 = vpop.f32.mrf.mxu3  ;;  %v905_v2 = vadd.f32 %v855_v0, %v609_v14  ;;  %v5984_v14 = vld [vmem:[%s7070_s22 + $0xaa] sm:$0xff] }
 0x158   : > { %v399_v17 = vpop.f32.mrf.mxu0 }
 0x159   : > { %v7415_v6 = vadd.f32 %v1133_v1, %v905_v2 }
 0x15a   : > { %v611_v12 = vpop.f32.mrf.mxu1 }
 0x15b   : > { %9416 = vst [vmem:[#allocation28_spill] sm:$0xff] %v7415_v6  ;;  %5948 = vmatmul.msk.f32.gmra.mxu2 %vm209_vm1, %v5914_v4  ;;  %v612_v15 = vadd.f32 %v611_v12, %v399_v17  ;;  %5849 = vmatmul.msk.f32.gmra.mxu0 %vm209_vm1, %v5978_v46 }
 0x15c   : > { %6014 = vmatmul.msk.f32.gmra.mxu3 %vm209_vm1, %v5980_v5 }
 0x15d   : > { %5882 = vmatmul.msk.f32.gmra.mxu1 %vm209_vm1, %v5912_v44 }
 0x15e   : > { %v858_v16 = vpop.f32.mrf.mxu2 }
 0x15f   : > { %v1136_v18 = vpop.f32.mrf.mxu3  ;;  %v906_v22 = vadd.f32 %v858_v16, %v612_v15  ;;  %v5919_v15 = vld [vmem:[%s7070_s22 + $0xb1] sm:$0xff] }
 0x160   : > { %v402_v28 = vpop.f32.mrf.mxu0  ;;  %v5985_v16 = vld [vmem:[%s7070_s22 + $0xb2] sm:$0xff] }
 0x161   : > { %v7423_v19 = vadd.f32 %v1136_v18, %v906_v22 }
 0x162   : > { %v614_v29 = vpop.f32.mrf.mxu1 }
 0x163   : > { %9417 = vst [vmem:[#allocation29_spill] sm:$0xff] %v7423_v19  ;;  %5949 = vmatmul.msk.f32.gmra.mxu2 %vm209_vm1, %v5915_v23  ;;  %v615_v30 = vadd.f32 %v614_v29, %v402_v28  ;;  %5850 = vmatmul.msk.f32.gmra.mxu0 %vm209_vm1, %v5979_v58 }
 0x164   : > { %6015 = vmatmul.msk.f32.gmra.mxu3 %vm209_vm1, %v5981_v26 }
 0x165   : > { %5883 = vmatmul.msk.f32.gmra.mxu1 %vm209_vm1, %v5913_v56 }
 0x166   : > { %v861_v31 = vpop.f32.mrf.mxu2 }
 0x167   : > { %v1139_v32 = vpop.f32.mrf.mxu3  ;;  %v907_v36 = vadd.f32 %v861_v31, %v615_v30  ;;  %v5920_v31 = vld [vmem:[%s7070_s22 + $0xc1] sm:$0xff] }
 0x168   : > { %v405_v40 = vpop.f32.mrf.mxu0 }
 0x169   : > { %v7431_v39 = vadd.f32 %v1139_v32, %v907_v36  ;;  %v5986_v32 = vld [vmem:[%s7070_s22 + $0xc2] sm:$0xff] }
 0x16a   : > { %v617_v41 = vpop.f32.mrf.mxu1 }
 0x16b   : > { %9418 = vst [vmem:[#allocation30_spill] sm:$0xff] %v7431_v39  ;;  %5950 = vmatmul.msk.f32.gmra.mxu2 %vm209_vm1, %v5916_v38  ;;  %v618_v43 = vadd.f32 %v617_v41, %v405_v40  ;;  %5851 = vmatmul.msk.f32.gmra.mxu0 %vm209_vm1, %v5980_v5 }
 0x16c   : > { %6016 = vmatmul.msk.f32.gmra.mxu3 %vm209_vm1, %v5982_v21 }
 0x16d   : > { %5884 = vmatmul.msk.f32.gmra.mxu1 %vm209_vm1, %v5914_v4 }
 0x16e   : > { %v864_v44 = vpop.f32.mrf.mxu2 }
 0x16f   : > { %v1142_v46 = vpop.f32.mrf.mxu3  ;;  %v908_v49 = vadd.f32 %v864_v44, %v618_v43 }
 0x170   : > { %v408_v10 = vpop.f32.mrf.mxu0 }
 0x171   : > { %v7439_v9 = vadd.f32 %v1142_v46, %v908_v49  ;;  %v5921_v46 = vld [vmem:[%s7070_s22 + $0xc9] sm:$0xff] }
 0x172   : > { %v620_v53 = vpop.f32.mrf.mxu1  ;;  %v5987_v49 = vld [vmem:[%s7070_s22 + $0xca] sm:$0xff] }
 0x173   : > { %9419 = vst [vmem:[#allocation31_spill] sm:$0xff] %v7439_v9  ;;  %5951 = vmatmul.msk.f32.gmra.mxu2 %vm209_vm1, %v5917_v50  ;;  %v621_v55 = vadd.f32 %v620_v53, %v408_v10  ;;  %5852 = vmatmul.msk.f32.gmra.mxu0 %vm209_vm1, %v5981_v26 }
 0x174   : > { %6017 = vmatmul.msk.f32.gmra.mxu3 %vm209_vm1, %v5983_v52 }
 0x175   : > { %5885 = vmatmul.msk.f32.gmra.mxu1 %vm209_vm1, %v5915_v23 }
 0x176   : > { %v867_v56 = vpop.f32.mrf.mxu2 }
 0x177   : > { %v1145_v58 = vpop.f32.mrf.mxu3  ;;  %v909_v62 = vadd.f32 %v867_v56, %v621_v55 }
 0x178   : > { %v411_v1 = vpop.f32.mrf.mxu0 }
 0x179   : > { %v7447_v0 = vadd.f32 %v1145_v58, %v909_v62  ;;  %v5922_v62 = vld [vmem:[%s7070_s22 + $0xd9] sm:$0xff] }
 0x17a   : > { %v623_v2 = vpop.f32.mrf.mxu1 }
 0x17b   : > { %9420 = vst [vmem:[#allocation32_spill] sm:$0xff] %v7447_v0  ;;  %5952 = vmatmul.msk.f32.gmra.mxu2 %vm209_vm1, %v5918_v13  ;;  %v624_v4 = vadd.f32 %v623_v2, %v411_v1  ;;  %5853 = vmatmul.msk.f32.gmra.mxu0 %vm209_vm1, %v5982_v21 }
 0x17c   : > { %6018 = vmatmul.msk.f32.gmra.mxu3 %vm209_vm1, %v5984_v14 }
 0x17d   : > { %5886 = vmatmul.msk.f32.gmra.mxu1 %vm209_vm1, %v5916_v38 }
 0x17e   : > { %v870_v5 = vpop.f32.mrf.mxu2 }
 0x17f   : > { %v1148_v17 = vpop.f32.mrf.mxu3  ;;  %v910_v12 = vadd.f32 %v870_v5, %v624_v4 }
 0x180   : > { %v414_v22 = vpop.f32.mrf.mxu0 }
 0x181   : > { %v7455_v18 = vadd.f32 %v1148_v17, %v910_v12 }
 0x182   : > { %v626_v23 = vpop.f32.mrf.mxu1 }
 0x183   : > { %9421 = vst [vmem:[#allocation33_spill] sm:$0xff] %v7455_v18  ;;  %5953 = vmatmul.msk.f32.gmra.mxu2 %vm209_vm1, %v5919_v15  ;;  %v627_v26 = vadd.f32 %v626_v23, %v414_v22  ;;  %5854 = vmatmul.msk.f32.gmra.mxu0 %vm209_vm1, %v5983_v52 }
 0x184   : > { %6019 = vmatmul.msk.f32.gmra.mxu3 %vm209_vm1, %v5985_v16 }
 0x185   : > { %5887 = vmatmul.msk.f32.gmra.mxu1 %vm209_vm1, %v5917_v50 }
 0x186   : > { %v873_v28 = vpop.f32.mrf.mxu2 }
 0x187   : > { %v1151_v29 = vpop.f32.mrf.mxu3  ;;  %v911_v30 = vadd.f32 %v873_v28, %v627_v26 }
 0x188   : > { %v417_v38 = vpop.f32.mrf.mxu0 }
 0x189   : > { %v7463_v36 = vadd.f32 %v1151_v29, %v911_v30 }
 0x18a   : > { %v629_v21 = vpop.f32.mrf.mxu1 }
 0x18b   : > { %9422 = vst [vmem:[#allocation34_spill] sm:$0xff] %v7463_v36  ;;  %5954 = vmatmul.msk.f32.gmra.mxu2 %vm209_vm1, %v5920_v31  ;;  %v630_v40 = vadd.f32 %v629_v21, %v417_v38  ;;  %5855 = vmatmul.msk.f32.gmra.mxu0 %vm209_vm1, %v5984_v14  ;;  %v5990_v38 = vld [vmem:[%s7070_s22 + $0xf2] sm:$0xff] }
 0x18c   : > { %6020 = vmatmul.msk.f32.gmra.mxu3 %vm209_vm1, %v5986_v32 }
 0x18d   : > { %5888 = vmatmul.msk.f32.gmra.mxu1 %vm209_vm1, %v5918_v13  ;;  %v5988_v13 = vld [vmem:[%s7070_s22 + $0xda] sm:$0xff] }
 0x18e   : > { %v876_v41 = vpop.f32.mrf.mxu2 }
 0x18f   : > { %v1154_v43 = vpop.f32.mrf.mxu3  ;;  %v912_v44 = vadd.f32 %v876_v41, %v630_v40 }
 0x190   : > { %v420_v52 = vpop.f32.mrf.mxu0 }
 0x191   : > { %v7471_v50 = vadd.f32 %v1154_v43, %v912_v44 }
 0x192   : > { %v632_v10 = vpop.f32.mrf.mxu1 }
 0x193   : > { %9423 = vst [vmem:[#allocation35_spill] sm:$0xff] %v7471_v50  ;;  %5955 = vmatmul.msk.f32.gmra.mxu2 %vm209_vm1, %v5921_v46  ;;  %v633_v53 = vadd.f32 %v632_v10, %v420_v52  ;;  %5856 = vmatmul.msk.f32.gmra.mxu0 %vm209_vm1, %v5985_v16  ;;  %v5989_v16 = vld [vmem:[%s7070_s22 + $0xe2] sm:$0xff]  ;;  %v5925_v52 = vld [vmem:[%s7070_s22 + $0xf9] sm:$0xff] }
 0x194   : > { %6021 = vmatmul.msk.f32.gmra.mxu3 %vm209_vm1, %v5987_v49  ;;  %v5991_v10 = vld [vmem:[%s7070_s22 + $0xfa] sm:$0xff] }
 0x195   : > { %5889 = vmatmul.msk.f32.gmra.mxu1 %vm209_vm1, %v5919_v15  ;;  %v5923_v15 = vld [vmem:[%s7070_s22 + $0xe1] sm:$0xff] }
 0x196   : > { %v879_v55 = vpop.f32.mrf.mxu2 }
 0x197   : > { %v1157_v56 = vpop.f32.mrf.mxu3  ;;  %v913_v58 = vadd.f32 %v879_v55, %v633_v53 }
 0x198   : > { %v1516_v1 = vpop.f32.mrf.mxu0 }
 0x199   : > { %v7479_v14 = vadd.f32 %v1157_v56, %v913_v58 }
 0x19a   : > { %v1728_v2 = vpop.f32.mrf.mxu1 }
 0x19b   : > { %9424 = vst [vmem:[#allocation36_spill] sm:$0xff] %v7479_v14  ;;  %5956 = vmatmul.msk.f32.gmra.mxu2 %vm209_vm1, %v5922_v62  ;;  %v1729_v4 = vadd.f32 %v1728_v2, %v1516_v1  ;;  %5857 = vmatmul.msk.f32.gmra.mxu0 %vm209_vm1, %v5986_v32  ;;  %v5924_v32 = vld [vmem:[%s7070_s22 + $0xf1] sm:$0xff]  ;;  %v5926_v2 = vld [vmem:[%s7070_s22 + $0x109] sm:$0xff]  ;;  %v6071_v14 = vld [vmem:[%s7070_s22 + $0x20] sm:$0xff] }
 0x19c   : > { %6022 = vmatmul.msk.f32.gmra.mxu3 %vm209_vm1, %v5988_v13 }
 0x19d   : > { %5890 = vmatmul.msk.f32.gmra.mxu1 %vm209_vm1, %v5920_v31 }
 0x19e   : > { %v1974_v5 = vpop.f32.mrf.mxu2 }
 0x19f   : > { %v2252_v17 = vpop.f32.mrf.mxu3  ;;  %v2070_v12 = vadd.f32 %v1974_v5, %v1729_v4  ;;  %v5992_v4 = vld [vmem:[%s7070_s22 + $0x10a] sm:$0xff] }
 0x1a0   : > { %v1519_v23 = vpop.f32.mrf.mxu0 }
 0x1a1   : > { %v7487_v22 = vadd.f32 %v2252_v17, %v2070_v12 }
 0x1a2   : > { %v1731_v26 = vpop.f32.mrf.mxu1 }
 0x1a3   : > { %9425 = vst [vmem:[#allocation37_spill] sm:$0xff] %v7487_v22  ;;  %5957 = vmatmul.msk.f32.gmra.mxu2 %vm209_vm1, %v5923_v15  ;;  %v1732_v28 = vadd.f32 %v1731_v26, %v1519_v23  ;;  %5858 = vmatmul.msk.f32.gmra.mxu0 %vm209_vm1, %v5987_v49 }
 0x1a4   : > { %6023 = vmatmul.msk.f32.gmra.mxu3 %vm209_vm1, %v5989_v16 }
 0x1a5   : > { %5891 = vmatmul.msk.f32.gmra.mxu1 %vm209_vm1, %v5921_v46 }
 0x1a6   : > { %v1977_v29 = vpop.f32.mrf.mxu2 }
 0x1a7   : > { %v2255_v30 = vpop.f32.mrf.mxu3  ;;  %v2071_v31 = vadd.f32 %v1977_v29, %v1732_v28  ;;  %v5927_v28 = vld [vmem:[%s7070_s22 + $0x111] sm:$0xff] }
 0x1a8   : > { %v1522_v40 = vpop.f32.mrf.mxu0  ;;  %v5993_v29 = vld [vmem:[%s7070_s22 + $0x112] sm:$0xff] }
 0x1a9   : > { %v7495_v21 = vadd.f32 %v2255_v30, %v2071_v31 }
 0x1aa   : > { %v1734_v41 = vpop.f32.mrf.mxu1 }
 0x1ab   : > { %9426 = vst [vmem:[#allocation38_spill] sm:$0xff] %v7495_v21  ;;  %5958 = vmatmul.msk.f32.gmra.mxu2 %vm209_vm1, %v5924_v32  ;;  %v1735_v43 = vadd.f32 %v1734_v41, %v1522_v40  ;;  %5859 = vmatmul.msk.f32.gmra.mxu0 %vm209_vm1, %v5988_v13 }
 0x1ac   : > { %6024 = vmatmul.msk.f32.gmra.mxu3 %vm209_vm1, %v5990_v38 }
 0x1ad   : > { %5892 = vmatmul.msk.f32.gmra.mxu1 %vm209_vm1, %v5922_v62 }
 0x1ae   : > { %v1980_v44 = vpop.f32.mrf.mxu2 }
 0x1af   : > { %v2258_v46 = vpop.f32.mrf.mxu3  ;;  %v2072_v49 = vadd.f32 %v1980_v44, %v1735_v43  ;;  %v5928_v44 = vld [vmem:[%s7070_s22 + $0x121] sm:$0xff] }
 0x1b0   : > { %v1525_v55 = vpop.f32.mrf.mxu0 }
 0x1b1   : > { %v7503_v53 = vadd.f32 %v2258_v46, %v2072_v49  ;;  %v5994_v46 = vld [vmem:[%s7070_s22 + $0x122] sm:$0xff] }
 0x1b2   : > { %v1737_v56 = vpop.f32.mrf.mxu1 }
 0x1b3   : > { %9427 = vst [vmem:[#allocation39_spill] sm:$0xff] %v7503_v53  ;;  %5959 = vmatmul.msk.f32.gmra.mxu2 %vm209_vm1, %v5925_v52  ;;  %v1738_v58 = vadd.f32 %v1737_v56, %v1525_v55  ;;  %5860 = vmatmul.msk.f32.gmra.mxu0 %vm209_vm1, %v5989_v16 }
 0x1b4   : > { %6025 = vmatmul.msk.f32.gmra.mxu3 %vm209_vm1, %v5991_v10 }
 0x1b5   : > { %5893 = vmatmul.msk.f32.gmra.mxu1 %vm209_vm1, %v5923_v15 }
 0x1b6   : > { %v1983_v62 = vpop.f32.mrf.mxu2 }
 0x1b7   : > { %v2261_v13 = vpop.f32.mrf.mxu3  ;;  %v2073_v1 = vadd.f32 %v1983_v62, %v1738_v58 }
 0x1b8   : > { %v1528_v17 = vpop.f32.mrf.mxu0 }
 0x1b9   : > { %v7511_v5 = vadd.f32 %v2261_v13, %v2073_v1  ;;  %v5929_v13 = vld [vmem:[%s7070_s22 + $0x129] sm:$0xff] }
 0x1ba   : > { %v1740_v12 = vpop.f32.mrf.mxu1  ;;  %v5995_v1 = vld [vmem:[%s7070_s22 + $0x12a] sm:$0xff] }
 0x1bb   : > { %9428 = vst [vmem:[#allocation40_spill] sm:$0xff] %v7511_v5  ;;  %5960 = vmatmul.msk.f32.gmra.mxu2 %vm209_vm1, %v5926_v2  ;;  %v1741_v23 = vadd.f32 %v1740_v12, %v1528_v17  ;;  %5861 = vmatmul.msk.f32.gmra.mxu0 %vm209_vm1, %v5990_v38 }
 0x1bc   : > { %6026 = vmatmul.msk.f32.gmra.mxu3 %vm209_vm1, %v5992_v4 }
 0x1bd   : > { %5894 = vmatmul.msk.f32.gmra.mxu1 %vm209_vm1, %v5924_v32 }
 0x1be   : > { %v1986_v15 = vpop.f32.mrf.mxu2 }
 0x1bf   : > { %v2264_v16 = vpop.f32.mrf.mxu3  ;;  %v2074_v26 = vadd.f32 %v1986_v15, %v1741_v23 }
 0x1c0   : > { %v1531_v31 = vpop.f32.mrf.mxu0 }
 0x1c1   : > { %v7519_v30 = vadd.f32 %v2264_v16, %v2074_v26  ;;  %v5930_v26 = vld [vmem:[%s7070_s22 + $0x139] sm:$0xff] }
 0x1c2   : > { %v1743_v40 = vpop.f32.mrf.mxu1 }
 0x1c3   : > { %9429 = vst [vmem:[#allocation41_spill] sm:$0xff] %v7519_v30  ;;  %5961 = vmatmul.msk.f32.gmra.mxu2 %vm209_vm1, %v5927_v28  ;;  %v1744_v41 = vadd.f32 %v1743_v40, %v1531_v31  ;;  %5862 = vmatmul.msk.f32.gmra.mxu0 %vm209_vm1, %v5991_v10  ;;  %v5996_v31 = vld [vmem:[%s7070_s22 + $0x13a] sm:$0xff] }
 0x1c4   : > { %6027 = vmatmul.msk.f32.gmra.mxu3 %vm209_vm1, %v5993_v29 }
 0x1c5   : > { %5895 = vmatmul.msk.f32.gmra.mxu1 %vm209_vm1, %v5925_v52 }
 0x1c6   : > { %v1989_v32 = vpop.f32.mrf.mxu2 }
 0x1c7   : > { %v2267_v38 = vpop.f32.mrf.mxu3  ;;  %v2075_v43 = vadd.f32 %v1989_v32, %v1744_v41 }
 0x1c8   : > { %v1534_v55 = vpop.f32.mrf.mxu0 }
 0x1c9   : > { %v7527_v49 = vadd.f32 %v2267_v38, %v2075_v43 }
 0x1ca   : > { %v1746_v56 = vpop.f32.mrf.mxu1 }
 0x1cb   : > { %9430 = vst [vmem:[#allocation42_spill] sm:$0xff] %v7527_v49  ;;  %5962 = vmatmul.msk.f32.gmra.mxu2 %vm209_vm1, %v5928_v44  ;;  %v1747_v58 = vadd.f32 %v1746_v56, %v1534_v55  ;;  %5863 = vmatmul.msk.f32.gmra.mxu0 %vm209_vm1, %v5992_v4  ;;  %v5931_v55 = vld [vmem:[%s7070_s22 + $0x141] sm:$0xff] }
 0x1cc   : > { %6028 = vmatmul.msk.f32.gmra.mxu3 %vm209_vm1, %v5994_v46  ;;  %v5997_v56 = vld [vmem:[%s7070_s22 + $0x142] sm:$0xff] }
 0x1cd   : > { %5896 = vmatmul.msk.f32.gmra.mxu1 %vm209_vm1, %v5926_v2 }
 0x1ce   : > { %v1992_v52 = vpop.f32.mrf.mxu2 }
 0x1cf   : > { %v2270_v10 = vpop.f32.mrf.mxu3  ;;  %v2076_v62 = vadd.f32 %v1992_v52, %v1747_v58 }
 0x1d0   : > { %v1537_v12 = vpop.f32.mrf.mxu0 }
 0x1d1   : > { %v7535_v17 = vadd.f32 %v2270_v10, %v2076_v62 }
 0x1d2   : > { %v1749_v23 = vpop.f32.mrf.mxu1 }
 0x1d3   : > { %9431 = vst [vmem:[#allocation43_spill] sm:$0xff] %v7535_v17  ;;  %5963 = vmatmul.msk.f32.gmra.mxu2 %vm209_vm1, %v5929_v13  ;;  %v1750_v15 = vadd.f32 %v1749_v23, %v1537_v12  ;;  %5864 = vmatmul.msk.f32.gmra.mxu0 %vm209_vm1, %v5993_v29  ;;  %v5932_v23 = vld [vmem:[%s7070_s22 + $0x151] sm:$0xff] }
 0x1d4   : > { %6029 = vmatmul.msk.f32.gmra.mxu3 %vm209_vm1, %v5995_v1 }
 0x1d5   : > { %5897 = vmatmul.msk.f32.gmra.mxu1 %vm209_vm1, %v5927_v28 }
 0x1d6   : > { %v1995_v2 = vpop.f32.mrf.mxu2 }
 0x1d7   : > { %v2273_v4 = vpop.f32.mrf.mxu3  ;;  %v2077_v16 = vadd.f32 %v1995_v2, %v1750_v15  ;;  %v5998_v15 = vld [vmem:[%s7070_s22 + $0x152] sm:$0xff] }
 0x1d8   : > { %v1540_v41 = vpop.f32.mrf.mxu0 }
 0x1d9   : > { %v7543_v40 = vadd.f32 %v2273_v4, %v2077_v16 }
 0x1da   : > { %v1752_v32 = vpop.f32.mrf.mxu1 }
 0x1db   : > { %9432 = vst [vmem:[#allocation44_spill] sm:$0xff] %v7543_v40  ;;  %5964 = vmatmul.msk.f32.gmra.mxu2 %vm209_vm1, %v5930_v26  ;;  %v1753_v38 = vadd.f32 %v1752_v32, %v1540_v41  ;;  %5865 = vmatmul.msk.f32.gmra.mxu0 %vm209_vm1, %v5994_v46 }
 0x1dc   : > { %6030 = vmatmul.msk.f32.gmra.mxu3 %vm209_vm1, %v5996_v31 }
 0x1dd   : > { %5898 = vmatmul.msk.f32.gmra.mxu1 %vm209_vm1, %v5928_v44 }
 0x1de   : > { %v1998_v28 = vpop.f32.mrf.mxu2 }
 0x1df   : > { %v2276_v29 = vpop.f32.mrf.mxu3  ;;  %v2078_v43 = vadd.f32 %v1998_v28, %v1753_v38  ;;  %v5933_v38 = vld [vmem:[%s7070_s22 + $0x159] sm:$0xff] }
 0x1e0   : > { %v1543_v52 = vpop.f32.mrf.mxu0  ;;  %v5999_v28 = vld [vmem:[%s7070_s22 + $0x15a] sm:$0xff] }
 0x1e1   : > { %v7551_v58 = vadd.f32 %v2276_v29, %v2078_v43 }
 0x1e2   : > { %v1755_v10 = vpop.f32.mrf.mxu1 }
 0x1e3   : > { %9433 = vst [vmem:[#allocation45_spill] sm:$0xff] %v7551_v58  ;;  %5965 = vmatmul.msk.f32.gmra.mxu2 %vm209_vm1, %v5931_v55  ;;  %v1756_v62 = vadd.f32 %v1755_v10, %v1543_v52  ;;  %5866 = vmatmul.msk.f32.gmra.mxu0 %vm209_vm1, %v5995_v1 }
 0x1e4   : > { %6031 = vmatmul.msk.f32.gmra.mxu3 %vm209_vm1, %v5997_v56 }
 0x1e5   : > { %5899 = vmatmul.msk.f32.gmra.mxu1 %vm209_vm1, %v5929_v13 }
 0x1e6   : > { %v2001_v44 = vpop.f32.mrf.mxu2 }
 0x1e7   : > { %v2279_v46 = vpop.f32.mrf.mxu3  ;;  %v2079_v12 = vadd.f32 %v2001_v44, %v1756_v62  ;;  %v5934_v44 = vld [vmem:[%s7070_s22 + $0x169] sm:$0xff] }
 0x1e8   : > { %v1546_v4 = vpop.f32.mrf.mxu0 }
 0x1e9   : > { %v7559_v2 = vadd.f32 %v2279_v46, %v2079_v12  ;;  %v6000_v46 = vld [vmem:[%s7070_s22 + $0x16a] sm:$0xff] }
 0x1ea   : > { %v1758_v16 = vpop.f32.mrf.mxu1 }
 0x1eb   : > { %9434 = vst [vmem:[#allocation46_spill] sm:$0xff] %v7559_v2  ;;  %5966 = vmatmul.msk.f32.gmra.mxu2 %vm209_vm1, %v5932_v23  ;;  %v1759_v41 = vadd.f32 %v1758_v16, %v1546_v4  ;;  %5867 = vmatmul.msk.f32.gmra.mxu0 %vm209_vm1, %v5996_v31 }
 0x1ec   : > { %6032 = vmatmul.msk.f32.gmra.mxu3 %vm209_vm1, %v5998_v15 }
 0x1ed   : > { %5900 = vmatmul.msk.f32.gmra.mxu1 %vm209_vm1, %v5930_v26 }
 0x1ee   : > { %v2004_v13 = vpop.f32.mrf.mxu2 }
 0x1ef   : > { %v2282_v1 = vpop.f32.mrf.mxu3  ;;  %v2080_v32 = vadd.f32 %v2004_v13, %v1759_v41 }
 0x1f0   : > { %v1549_v43 = vpop.f32.mrf.mxu0 }
 0x1f1   : > { %v7567_v29 = vadd.f32 %v2282_v1, %v2080_v32 }
 0x1f2   : > { %v1761_v52 = vpop.f32.mrf.mxu1 }
 0x1f3   : > { %9435 = vst [vmem:[#allocation47_spill] sm:$0xff] %v7567_v29  ;;  %5967 = vmatmul.msk.f32.gmra.mxu2 %vm209_vm1, %v5933_v38  ;;  %v1762_v10 = vadd.f32 %v1761_v52, %v1549_v43  ;;  %5868 = vmatmul.msk.f32.gmra.mxu0 %vm209_vm1, %v5997_v56  ;;  %v6596_v56 = vld [vmem:[%s9224_s1 + $0x3c] sm:$0xf]  ;;  %v5935_v43 = vld [vmem:[%s7070_s22 + $0x171] sm:$0xff] }
 0x1f4   : > { %6033 = vmatmul.msk.f32.gmra.mxu3 %vm209_vm1, %v5999_v28  ;;  %v6001_v52 = vld [vmem:[%s7070_s22 + $0x172] sm:$0xff] }
 0x1f5   : > { %5901 = vmatmul.msk.f32.gmra.mxu1 %vm209_vm1, %v5931_v55  ;;  %v6530_v55 = vld [vmem:[%s9224_s1 + $0x38] sm:$0xf]  ;;  %6597 = vmatpush.msk.msrb.mxu3 %vm306_vm0, %v6596_v56  ;;  %v6002_v56 = vld [vmem:[%s7070_s22 + $0x182] sm:$0xff] }
 0x1f6   : > { %v2007_v26 = vpop.f32.mrf.mxu2  ;;  %6531 = vmatpush.msk.msrb.mxu2 %vm306_vm0, %v6530_v55  ;;  %v5936_v55 = vld [vmem:[%s7070_s22 + $0x181] sm:$0xff] }
 0x1f7   : > { %v2285_v31 = vpop.f32.mrf.mxu3  ;;  %v2081_v62 = vadd.f32 %v2007_v26, %v1762_v10 }
 0x1f8   : > { %v1552_v4 = vpop.f32.mrf.mxu0 }
 0x1f9   : > { %v7575_v12 = vadd.f32 %v2285_v31, %v2081_v62 }
 0x1fa   : > { %v1764_v16 = vpop.f32.mrf.mxu1 }
 0x1fb   : > { %9436 = vst [vmem:[#allocation48_spill] sm:$0xff] %v7575_v12  ;;  %5968 = vmatmul.msk.f32.gmra.mxu2 %vm209_vm1, %v5934_v44  ;;  %v1765_v41 = vadd.f32 %v1764_v16, %v1552_v4  ;;  %5869 = vmatmul.msk.f32.gmra.mxu0 %vm209_vm1, %v5998_v15  ;;  %v6431_v15 = vld [vmem:[%s9224_s1 + $0x34] sm:$0xf] }
 0x1fc   : > { %6034 = vmatmul.msk.f32.gmra.mxu3 %vm209_vm1, %v6000_v46  ;;  %6432 = vmatpush.msk.msrb.mxu0 %vm306_vm0, %v6431_v15 }
 0x1fd   : > { %5902 = vmatmul.msk.f32.gmra.mxu1 %vm209_vm1, %v5932_v23  ;;  %v6398_v23 = vld [vmem:[%s9224_s1 + $0x30] sm:$0xf] }
 0x1fe   : > { %v2010_v13 = vpop.f32.mrf.mxu2  ;;  %6465 = vmatpush.msk.msrb.mxu1 %vm306_vm0, %v6398_v23 }
 0x1ff   : > { %v2288_v1 = vpop.f32.mrf.mxu3  ;;  %v2082_v32 = vadd.f32 %v2010_v13, %v1765_v41 }
 0x200   : > { %v1555_v26 = vpop.f32.mrf.mxu0 }
 0x201   : > { %v7599_v10 = vadd.f32 %v2288_v1, %v2082_v32 }
 0x202   : > { %v1767_v31 = vpop.f32.mrf.mxu1 }
 0x203   : > { %9437 = vst [vmem:[#allocation49_spill] sm:$0xff] %v7599_v10  ;;  %5969 = vmatmul.msk.f32.gmra.mxu2 %vm209_vm1, %v5935_v43  ;;  %v1768_v62 = vadd.f32 %v1767_v31, %v1555_v26  ;;  %5870 = vmatmul.msk.f32.gmra.mxu0 %vm209_vm1, %v5999_v28  ;;  %v5937_v26 = vld [vmem:[%s7070_s22 + $0x189] sm:$0xff] }
 0x204   : > { %6035 = vmatmul.msk.f32.gmra.mxu3 %vm209_vm1, %v6001_v52  ;;  %v6003_v31 = vld [vmem:[%s7070_s22 + $0x18a] sm:$0xff] }
 0x205   : > { %5903 = vmatmul.msk.f32.gmra.mxu1 %vm209_vm1, %v5933_v38 }
 0x206   : > { %v2013_v4 = vpop.f32.mrf.mxu2 }
 0x207   : > { %v2291_v16 = vpop.f32.mrf.mxu3  ;;  %v2083_v41 = vadd.f32 %v2013_v4, %v1768_v62 }
 0x208   : > { %v1558_v1 = vpop.f32.mrf.mxu0 }
 0x209   : > { %v7607_v13 = vadd.f32 %v2291_v16, %v2083_v41 }
 0x20a   : > { %v1770_v32 = vpop.f32.mrf.mxu1 }
 0x20b   : > { %9438 = vst [vmem:[#allocation50_spill] sm:$0xff] %v7607_v13  ;;  %5970 = vmatmul.msk.f32.gmra.mxu2 %vm209_vm1, %v5936_v55  ;;  %v1771_v15 = vadd.f32 %v1770_v32, %v1558_v1  ;;  %5871 = vmatmul.msk.f32.gmra.mxu0 %vm209_vm1, %v6000_v46  ;;  %v6268_v1 = vld [vmem:[%s7070_s22 + $0x31] sm:$0xff] }
 0x20c   : > { %6036 = vmatmul.msk.f32.gmra.mxu3 %vm209_vm1, %v6002_v56  ;;  %v6202_v56 = vld [vmem:[%s7070_s22 + $0x30] sm:$0xff] }
 0x20d   : > { %5904 = vmatmul.msk.f32.gmra.mxu1 %vm209_vm1, %v5934_v44 }
 0x20e   : > { %v2016_v38 = vpop.f32.mrf.mxu2 }
 0x20f   : > { %v2294_v28 = vpop.f32.mrf.mxu3  ;;  %v2084_v23 = vadd.f32 %v2016_v38, %v1771_v15 }
 0x210   : > { %v1561_v4 = vpop.f32.mrf.mxu0 }
 0x211   : > { %v7615_v62 = vadd.f32 %v2294_v28, %v2084_v23  ;;  %v6103_v28 = vld [vmem:[%s7070_s22 + $0x19] sm:$0xff] }
 0x212   : > { %v1773_v16 = vpop.f32.mrf.mxu1  ;;  %v6070_v23 = vld [vmem:[%s7070_s22 + $0x18] sm:$0xff] }
 0x213   : > { %9439 = vst [vmem:[#allocation51_spill] sm:$0xff] %v7615_v62  ;;  %5971 = vmatmul.msk.f32.gmra.mxu2 %vm209_vm1, %v5937_v26  ;;  %v1774_v41 = vadd.f32 %v1773_v16, %v1561_v4  ;;  %5872 = vmatmul.msk.f32.gmra.mxu0 %vm209_vm1, %v6001_v52  ;;  %v6203_v4 = vld [vmem:[%s7070_s22 + $0x38] sm:$0xff] }
 0x214   : > { %6037 = vmatmul.msk.f32.gmra.mxu3 %vm209_vm1, %v6003_v31  ;;  %v6269_v16 = vld [vmem:[%s7070_s22 + $0x39] sm:$0xff] }
 0x215   : > { %5905 = vmatmul.msk.f32.gmra.mxu1 %vm209_vm1, %v5935_v43 }
 0x216   : > { %v2019_v44 = vpop.f32.mrf.mxu2 }
 0x217   : > { %v2297_v46 = vpop.f32.mrf.mxu3  ;;  %v2085_v55 = vadd.f32 %v2019_v44, %v1774_v41 }
 0x218   : > { %v1564_v15 = vpop.f32.mrf.mxu0 }
 0x219   : > { %v7623_v32 = vadd.f32 %v2297_v46, %v2085_v55  ;;  %v6104_v55 = vld [vmem:[%s7070_s22 + $0x21] sm:$0xff] }
 0x21a   : > { %v1776_v38 = vpop.f32.mrf.mxu1 }
 0x21b   : > { %9440 = vst [vmem:[#allocation52_spill] sm:$0xff] %v7623_v32  ;;  %6236 = vmatmul.msk.f32.vlgmr.msra.gmra.mxu2 %vm209_vm1, %v6202_v56  ;;  %v1777_v52 = vadd.f32 %v1776_v38, %v1564_v15  ;;  %6137 = vmatmul.msk.f32.vlgmr.msra.gmra.mxu0 %vm209_vm1, %v6103_v28 }
 0x21c   : > { %6302 = vmatmul.msk.f32.vlgmr.msra.gmra.mxu3 %vm209_vm1, %v6268_v1 }
 0x21d   : > { %6170 = vmatmul.msk.f32.vlgmr.msra.gmra.mxu1 %vm209_vm1, %v6070_v23 }
 0x21e   : > { %v2022_v43 = vpop.f32.mrf.mxu2 }
 0x21f   : > { %v2300_v26 = vpop.f32.mrf.mxu3  ;;  %v2086_v31 = vadd.f32 %v2022_v43, %v1777_v52  ;;  %v6204_v52 = vld [vmem:[%s7070_s22 + $0x48] sm:$0xff] }
 0x220   : > { %v1567_v44 = vpop.f32.mrf.mxu0  ;;  %v6270_v43 = vld [vmem:[%s7070_s22 + $0x49] sm:$0xff] }
 0x221   : > { %v7633_v41 = vadd.f32 %v2300_v26, %v2086_v31 }
 0x222   : > { %v1779_v46 = vpop.f32.mrf.mxu1 }
 0x223   : > { %9441 = vst [vmem:[#allocation53_spill] sm:$0xff] %v7633_v41  ;;  %6237 = vmatmul.msk.f32.gmra.mxu2 %vm209_vm1, %v6203_v4  ;;  %v1780_v15 = vadd.f32 %v1779_v46, %v1567_v44  ;;  %6138 = vmatmul.msk.f32.gmra.mxu0 %vm209_vm1, %v6104_v55 }
 0x224   : > { %6303 = vmatmul.msk.f32.gmra.mxu3 %vm209_vm1, %v6269_v16 }
 0x225   : > { %6171 = vmatmul.msk.f32.gmra.mxu1 %vm209_vm1, %v6071_v14 }
 0x226   : > { %v2025_v38 = vpop.f32.mrf.mxu2 }
 0x227   : > { %v2303_v28 = vpop.f32.mrf.mxu3  ;;  %v2087_v23 = vadd.f32 %v2025_v38, %v1780_v15  ;;  %v6205_v15 = vld [vmem:[%s7070_s22 + $0x50] sm:$0xff] }
 0x228   : > { %v1570_v31 = vpop.f32.mrf.mxu0  ;;  %v6271_v38 = vld [vmem:[%s7070_s22 + $0x51] sm:$0xff] }
 0x229   : > { %v7643_v26 = vadd.f32 %v2303_v28, %v2087_v23 }
 0x22a   : > { %v1782_v50 = vpop.f32.mrf.mxu1 }
 0x22b   : > { %9442 = vst [vmem:[#allocation54_spill] sm:$0xff] %v7643_v26  ;;  %6238 = vmatmul.msk.f32.gmra.mxu2 %vm209_vm1, %v6204_v52  ;;  %v1783_v44 = vadd.f32 %v1782_v50, %v1570_v31  ;;  %6139 = vmatmul.msk.f32.gmra.mxu0 %vm209_vm1, %v6268_v1 }
 0x22c   : > { %6304 = vmatmul.msk.f32.gmra.mxu3 %vm209_vm1, %v6270_v43 }
 0x22d   : > { %6172 = vmatmul.msk.f32.gmra.mxu1 %vm209_vm1, %v6202_v56 }
 0x22e   : > { %v2028_v14 = vpop.f32.mrf.mxu2 }
 0x22f   : > { %v2306_v46 = vpop.f32.mrf.mxu3  ;;  %v2088_v55 = vadd.f32 %v2028_v14, %v1783_v44  ;;  %v6206_v44 = vld [vmem:[%s7070_s22 + $0x60] sm:$0xff] }
 0x230   : > { %v1573_v23 = vpop.f32.mrf.mxu0  ;;  %v6272_v14 = vld [vmem:[%s7070_s22 + $0x61] sm:$0xff] }
 0x231   : > { %v7651_v28 = vadd.f32 %v2306_v46, %v2088_v55 }
 0x232   : > { %v1785_v36 = vpop.f32.mrf.mxu1 }
 0x233   : > { %9443 = vst [vmem:[#allocation55_spill] sm:$0xff] %v7651_v28  ;;  %6239 = vmatmul.msk.f32.gmra.mxu2 %vm209_vm1, %v6205_v15  ;;  %v1786_v50 = vadd.f32 %v1785_v36, %v1573_v23  ;;  %6140 = vmatmul.msk.f32.gmra.mxu0 %vm209_vm1, %v6269_v16 }
 0x234   : > { %6305 = vmatmul.msk.f32.gmra.mxu3 %vm209_vm1, %v6271_v38 }
 0x235   : > { %6173 = vmatmul.msk.f32.gmra.mxu1 %vm209_vm1, %v6203_v4 }
 0x236   : > { %v2031_v56 = vpop.f32.mrf.mxu2 }
 0x237   : > { %v2309_v1 = vpop.f32.mrf.mxu3  ;;  %v2089_v31 = vadd.f32 %v2031_v56, %v1786_v50  ;;  %v6207_v50 = vld [vmem:[%s7070_s22 + $0x68] sm:$0xff] }
 0x238   : > { %v1576_v55 = vpop.f32.mrf.mxu0  ;;  %v6273_v56 = vld [vmem:[%s7070_s22 + $0x69] sm:$0xff] }
 0x239   : > { %v7659_v46 = vadd.f32 %v2309_v1, %v2089_v31 }
 0x23a   : > { %v1788_v28 = vpop.f32.mrf.mxu1 }
 0x23b   : > { %9444 = vst [vmem:[#allocation56_spill] sm:$0xff] %v7659_v46  ;;  %6240 = vmatmul.msk.f32.gmra.mxu2 %vm209_vm1, %v6206_v44  ;;  %v1789_v36 = vadd.f32 %v1788_v28, %v1576_v55  ;;  %6141 = vmatmul.msk.f32.gmra.mxu0 %vm209_vm1, %v6270_v43 }
 0x23c   : > { %6306 = vmatmul.msk.f32.gmra.mxu3 %vm209_vm1, %v6272_v14 }
 0x23d   : > { %6174 = vmatmul.msk.f32.gmra.mxu1 %vm209_vm1, %v6204_v52 }
 0x23e   : > { %v2034_v4 = vpop.f32.mrf.mxu2 }
 0x23f   : > { %v2312_v16 = vpop.f32.mrf.mxu3  ;;  %v2090_v23 = vadd.f32 %v2034_v4, %v1789_v36  ;;  %v6208_v36 = vld [vmem:[%s7070_s22 + $0x78] sm:$0xff] }
 0x240   : > { %v1579_v31 = vpop.f32.mrf.mxu0  ;;  %v6274_v4 = vld [vmem:[%s7070_s22 + $0x79] sm:$0xff] }
 0x241   : > { %v7667_v1 = vadd.f32 %v2312_v16, %v2090_v23 }
 0x242   : > { %v1791_v46 = vpop.f32.mrf.mxu1 }
 0x243   : > { %9445 = vst [vmem:[#allocation57_spill] sm:$0xff] %v7667_v1  ;;  %6241 = vmatmul.msk.f32.gmra.mxu2 %vm209_vm1, %v6207_v50  ;;  %v1792_v28 = vadd.f32 %v1791_v46, %v1579_v31  ;;  %6142 = vmatmul.msk.f32.gmra.mxu0 %vm209_vm1, %v6271_v38 }
 0x244   : > { %6307 = vmatmul.msk.f32.gmra.mxu3 %vm209_vm1, %v6273_v56 }
 0x245   : > { %6175 = vmatmul.msk.f32.gmra.mxu1 %vm209_vm1, %v6205_v15 }
 0x246   : > { %v2037_v52 = vpop.f32.mrf.mxu2 }
 0x247   : > { %v2315_v43 = vpop.f32.mrf.mxu3  ;;  %v2091_v55 = vadd.f32 %v2037_v52, %v1792_v28  ;;  %v6209_v28 = vld [vmem:[%s7070_s22 + $0x80] sm:$0xff] }
 0x248   : > { %v1582_v23 = vpop.f32.mrf.mxu0  ;;  %v6275_v52 = vld [vmem:[%s7070_s22 + $0x81] sm:$0xff] }
 0x249   : > { %v7675_v16 = vadd.f32 %v2315_v43, %v2091_v55 }
 0x24a   : > { %v1794_v1 = vpop.f32.mrf.mxu1 }
 0x24b   : > { %9446 = vst [vmem:[#allocation58_spill] sm:$0xff] %v7675_v16  ;;  %6242 = vmatmul.msk.f32.gmra.mxu2 %vm209_vm1, %v6208_v36  ;;  %v1795_v46 = vadd.f32 %v1794_v1, %v1582_v23  ;;  %6143 = vmatmul.msk.f32.gmra.mxu0 %vm209_vm1, %v6272_v14 }
 0x24c   : > { %6308 = vmatmul.msk.f32.gmra.mxu3 %vm209_vm1, %v6274_v4 }
 0x24d   : > { %6176 = vmatmul.msk.f32.gmra.mxu1 %vm209_vm1, %v6206_v44 }
 0x24e   : > { %v2040_v15 = vpop.f32.mrf.mxu2 }
 0x24f   : > { %v2318_v38 = vpop.f32.mrf.mxu3  ;;  %v2092_v31 = vadd.f32 %v2040_v15, %v1795_v46  ;;  %v6210_v46 = vld [vmem:[%s7070_s22 + $0x90] sm:$0xff] }
 0x250   : > { %v1585_v55 = vpop.f32.mrf.mxu0  ;;  %v6276_v15 = vld [vmem:[%s7070_s22 + $0x91] sm:$0xff] }
 0x251   : > { %v7683_v43 = vadd.f32 %v2318_v38, %v2092_v31 }
 0x252   : > { %v1797_v16 = vpop.f32.mrf.mxu1 }
 0x253   : > { %9447 = vst [vmem:[#allocation59_spill] sm:$0xff] %v7683_v43  ;;  %6243 = vmatmul.msk.f32.gmra.mxu2 %vm209_vm1, %v6209_v28  ;;  %v1798_v1 = vadd.f32 %v1797_v16, %v1585_v55  ;;  %6144 = vmatmul.msk.f32.gmra.mxu0 %vm209_vm1, %v6273_v56 }
 0x254   : > { %6309 = vmatmul.msk.f32.gmra.mxu3 %vm209_vm1, %v6275_v52 }
 0x255   : > { %6177 = vmatmul.msk.f32.gmra.mxu1 %vm209_vm1, %v6207_v50 }
 0x256   : > { %v2043_v44 = vpop.f32.mrf.mxu2 }
 0x257   : > { %v2321_v14 = vpop.f32.mrf.mxu3  ;;  %v2093_v23 = vadd.f32 %v2043_v44, %v1798_v1  ;;  %v6211_v1 = vld [vmem:[%s7070_s22 + $0x98] sm:$0xff] }
 0x258   : > { %v1588_v31 = vpop.f32.mrf.mxu0  ;;  %v6277_v44 = vld [vmem:[%s7070_s22 + $0x99] sm:$0xff] }
 0x259   : > { %v7691_v38 = vadd.f32 %v2321_v14, %v2093_v23 }
 0x25a   : > { %v1800_v43 = vpop.f32.mrf.mxu1 }
 0x25b   : > { %9448 = vst [vmem:[#allocation60_spill] sm:$0xff] %v7691_v38  ;;  %6244 = vmatmul.msk.f32.gmra.mxu2 %vm209_vm1, %v6210_v46  ;;  %v1801_v16 = vadd.f32 %v1800_v43, %v1588_v31  ;;  %6145 = vmatmul.msk.f32.gmra.mxu0 %vm209_vm1, %v6274_v4 }
 0x25c   : > { %6310 = vmatmul.msk.f32.gmra.mxu3 %vm209_vm1, %v6276_v15 }
 0x25d   : > { %6178 = vmatmul.msk.f32.gmra.mxu1 %vm209_vm1, %v6208_v36 }
 0x25e   : > { %v2046_v50 = vpop.f32.mrf.mxu2 }
 0x25f   : > { %v2324_v56 = vpop.f32.mrf.mxu3  ;;  %v2094_v55 = vadd.f32 %v2046_v50, %v1801_v16  ;;  %v6212_v16 = vld [vmem:[%s7070_s22 + $0xa8] sm:$0xff] }
 0x260   : > { %v1591_v23 = vpop.f32.mrf.mxu0  ;;  %v6278_v50 = vld [vmem:[%s7070_s22 + $0xa9] sm:$0xff] }
 0x261   : > { %v7699_v14 = vadd.f32 %v2324_v56, %v2094_v55 }
 0x262   : > { %v1803_v38 = vpop.f32.mrf.mxu1 }
 0x263   : > { %9449 = vst [vmem:[#allocation61_spill] sm:$0xff] %v7699_v14  ;;  %6245 = vmatmul.msk.f32.gmra.mxu2 %vm209_vm1, %v6211_v1  ;;  %v1804_v43 = vadd.f32 %v1803_v38, %v1591_v23  ;;  %6146 = vmatmul.msk.f32.gmra.mxu0 %vm209_vm1, %v6275_v52 }
 0x264   : > { %6311 = vmatmul.msk.f32.gmra.mxu3 %vm209_vm1, %v6277_v44 }
 0x265   : > { %6179 = vmatmul.msk.f32.gmra.mxu1 %vm209_vm1, %v6209_v28 }
 0x266   : > { %v2049_v36 = vpop.f32.mrf.mxu2 }
 0x267   : > { %v2327_v4 = vpop.f32.mrf.mxu3  ;;  %v2095_v31 = vadd.f32 %v2049_v36, %v1804_v43  ;;  %v6213_v43 = vld [vmem:[%s7070_s22 + $0xb0] sm:$0xff] }
 0x268   : > { %v1594_v55 = vpop.f32.mrf.mxu0  ;;  %v6279_v36 = vld [vmem:[%s7070_s22 + $0xb1] sm:$0xff] }
 0x269   : > { %v7707_v56 = vadd.f32 %v2327_v4, %v2095_v31 }
 0x26a   : > { %v1806_v14 = vpop.f32.mrf.mxu1 }
 0x26b   : > { %9450 = vst [vmem:[#allocation62_spill] sm:$0xff] %v7707_v56  ;;  %6246 = vmatmul.msk.f32.gmra.mxu2 %vm209_vm1, %v6212_v16  ;;  %v1807_v38 = vadd.f32 %v1806_v14, %v1594_v55  ;;  %6147 = vmatmul.msk.f32.gmra.mxu0 %vm209_vm1, %v6276_v15 }
 0x26c   : > { %6312 = vmatmul.msk.f32.gmra.mxu3 %vm209_vm1, %v6278_v50 }
 0x26d   : > { %6180 = vmatmul.msk.f32.gmra.mxu1 %vm209_vm1, %v6210_v46 }
 0x26e   : > { %v2052_v28 = vpop.f32.mrf.mxu2 }
 0x26f   : > { %v2330_v52 = vpop.f32.mrf.mxu3  ;;  %v2096_v23 = vadd.f32 %v2052_v28, %v1807_v38  ;;  %v6214_v38 = vld [vmem:[%s7070_s22 + $0xc0] sm:$0xff] }
 0x270   : > { %v1597_v31 = vpop.f32.mrf.mxu0  ;;  %v6280_v28 = vld [vmem:[%s7070_s22 + $0xc1] sm:$0xff] }
 0x271   : > { %v7715_v4 = vadd.f32 %v2330_v52, %v2096_v23 }
 0x272   : > { %v1809_v56 = vpop.f32.mrf.mxu1 }
 0x273   : > { %9451 = vst [vmem:[#allocation63_spill] sm:$0xff] %v7715_v4  ;;  %6247 = vmatmul.msk.f32.gmra.mxu2 %vm209_vm1, %v6213_v43  ;;  %v1810_v14 = vadd.f32 %v1809_v56, %v1597_v31  ;;  %6148 = vmatmul.msk.f32.gmra.mxu0 %vm209_vm1, %v6277_v44 }
 0x274   : > { %6313 = vmatmul.msk.f32.gmra.mxu3 %vm209_vm1, %v6279_v36 }
 0x275   : > { %6181 = vmatmul.msk.f32.gmra.mxu1 %vm209_vm1, %v6211_v1 }
 0x276   : > { %v2055_v46 = vpop.f32.mrf.mxu2 }
 0x277   : > { %v2333_v15 = vpop.f32.mrf.mxu3  ;;  %v2097_v55 = vadd.f32 %v2055_v46, %v1810_v14  ;;  %v6215_v14 = vld [vmem:[%s7070_s22 + $0xc8] sm:$0xff] }
 0x278   : > { %v1600_v23 = vpop.f32.mrf.mxu0  ;;  %v6281_v46 = vld [vmem:[%s7070_s22 + $0xc9] sm:$0xff] }
 0x279   : > { %v7723_v52 = vadd.f32 %v2333_v15, %v2097_v55 }
 0x27a   : > { %v1812_v4 = vpop.f32.mrf.mxu1 }
 0x27b   : > { %9452 = vst [vmem:[#allocation64_spill] sm:$0xff] %v7723_v52  ;;  %6248 = vmatmul.msk.f32.gmra.mxu2 %vm209_vm1, %v6214_v38  ;;  %v1813_v56 = vadd.f32 %v1812_v4, %v1600_v23  ;;  %6149 = vmatmul.msk.f32.gmra.mxu0 %vm209_vm1, %v6278_v50 }
 0x27c   : > { %6314 = vmatmul.msk.f32.gmra.mxu3 %vm209_vm1, %v6280_v28 }
 0x27d   : > { %6182 = vmatmul.msk.f32.gmra.mxu1 %vm209_vm1, %v6212_v16 }
 0x27e   : > { %v2058_v1 = vpop.f32.mrf.mxu2 }
 0x27f   : > { %v2336_v44 = vpop.f32.mrf.mxu3  ;;  %v2098_v31 = vadd.f32 %v2058_v1, %v1813_v56  ;;  %v6216_v56 = vld [vmem:[%s7070_s22 + $0xd8] sm:$0xff] }
 0x280   : > { %v1603_v55 = vpop.f32.mrf.mxu0  ;;  %v6282_v1 = vld [vmem:[%s7070_s22 + $0xd9] sm:$0xff] }
 0x281   : > { %v7731_v15 = vadd.f32 %v2336_v44, %v2098_v31 }
 0x282   : > { %v1815_v52 = vpop.f32.mrf.mxu1 }
 0x283   : > { %9453 = vst [vmem:[#allocation65_spill] sm:$0xff] %v7731_v15  ;;  %6249 = vmatmul.msk.f32.gmra.mxu2 %vm209_vm1, %v6215_v14  ;;  %v1816_v4 = vadd.f32 %v1815_v52, %v1603_v55  ;;  %6150 = vmatmul.msk.f32.gmra.mxu0 %vm209_vm1, %v6279_v36 }
 0x284   : > { %6315 = vmatmul.msk.f32.gmra.mxu3 %vm209_vm1, %v6281_v46 }
 0x285   : > { %6183 = vmatmul.msk.f32.gmra.mxu1 %vm209_vm1, %v6213_v43 }
 0x286   : > { %v2061_v16 = vpop.f32.mrf.mxu2 }
 0x287   : > { %v2339_v50 = vpop.f32.mrf.mxu3  ;;  %v2099_v23 = vadd.f32 %v2061_v16, %v1816_v4  ;;  %v6217_v4 = vld [vmem:[%s7070_s22 + $0xe0] sm:$0xff] }
 0x288   : > { %v1606_v31 = vpop.f32.mrf.mxu0  ;;  %v6283_v16 = vld [vmem:[%s7070_s22 + $0xe1] sm:$0xff] }
 0x289   : > { %v7739_v44 = vadd.f32 %v2339_v50, %v2099_v23 }
 0x28a   : > { %v1818_v15 = vpop.f32.mrf.mxu1 }
 0x28b   : > { %9454 = vst [vmem:[#allocation66_spill] sm:$0xff] %v7739_v44  ;;  %6250 = vmatmul.msk.f32.gmra.mxu2 %vm209_vm1, %v6216_v56  ;;  %v1819_v52 = vadd.f32 %v1818_v15, %v1606_v31  ;;  %6151 = vmatmul.msk.f32.gmra.mxu0 %vm209_vm1, %v6280_v28 }
 0x28c   : > { %6316 = vmatmul.msk.f32.gmra.mxu3 %vm209_vm1, %v6282_v1 }
 0x28d   : > { %6184 = vmatmul.msk.f32.gmra.mxu1 %vm209_vm1, %v6214_v38 }
 0x28e   : > { %v2064_v43 = vpop.f32.mrf.mxu2 }
 0x28f   : > { %v2342_v36 = vpop.f32.mrf.mxu3  ;;  %v2100_v55 = vadd.f32 %v2064_v43, %v1819_v52  ;;  %v6218_v52 = vld [vmem:[%s7070_s22 + $0xf0] sm:$0xff] }
 0x290   : > { %v1609_v23 = vpop.f32.mrf.mxu0  ;;  %v6284_v43 = vld [vmem:[%s7070_s22 + $0xf1] sm:$0xff] }
 0x291   : > { %v7747_v50 = vadd.f32 %v2342_v36, %v2100_v55 }
 0x292   : > { %v1821_v44 = vpop.f32.mrf.mxu1 }
 0x293   : > { %9455 = vst [vmem:[#allocation67_spill] sm:$0xff] %v7747_v50  ;;  %6251 = vmatmul.msk.f32.gmra.mxu2 %vm209_vm1, %v6217_v4  ;;  %v1822_v15 = vadd.f32 %v1821_v44, %v1609_v23  ;;  %6152 = vmatmul.msk.f32.gmra.mxu0 %vm209_vm1, %v6281_v46 }
 0x294   : > { %6317 = vmatmul.msk.f32.gmra.mxu3 %vm209_vm1, %v6283_v16 }
 0x295   : > { %6185 = vmatmul.msk.f32.gmra.mxu1 %vm209_vm1, %v6215_v14 }
 0x296   : > { %v2067_v38 = vpop.f32.mrf.mxu2 }
 0x297   : > { %v2345_v28 = vpop.f32.mrf.mxu3  ;;  %v2101_v31 = vadd.f32 %v2067_v38, %v1822_v15  ;;  %v6219_v15 = vld [vmem:[%s7070_s22 + $0xf8] sm:$0xff] }
 0x298   : > { %v2705_v55 = vpop.f32.mrf.mxu0  ;;  %v6285_v38 = vld [vmem:[%s7070_s22 + $0xf9] sm:$0xff] }
 0x299   : > { %v7755_v36 = vadd.f32 %v2345_v28, %v2101_v31 }
 0x29a   : > { %v2917_v50 = vpop.f32.mrf.mxu1 }
 0x29b   : > { %9456 = vst [vmem:[#allocation68_spill] sm:$0xff] %v7755_v36  ;;  %6252 = vmatmul.msk.f32.gmra.mxu2 %vm209_vm1, %v6218_v52  ;;  %v2918_v44 = vadd.f32 %v2917_v50, %v2705_v55  ;;  %6153 = vmatmul.msk.f32.gmra.mxu0 %vm209_vm1, %v6282_v1 }
 0x29c   : > { %6318 = vmatmul.msk.f32.gmra.mxu3 %vm209_vm1, %v6284_v43 }
 0x29d   : > { %6186 = vmatmul.msk.f32.gmra.mxu1 %vm209_vm1, %v6216_v56 }
 0x29e   : > { %v3164_v14 = vpop.f32.mrf.mxu2 }
 0x29f   : > { %v3442_v46 = vpop.f32.mrf.mxu3  ;;  %v3260_v23 = vadd.f32 %v3164_v14, %v2918_v44  ;;  %v6220_v44 = vld [vmem:[%s7070_s22 + $0x108] sm:$0xff] }
 0x2a0   : > { %v2708_v31 = vpop.f32.mrf.mxu0  ;;  %v6286_v14 = vld [vmem:[%s7070_s22 + $0x109] sm:$0xff] }
 0x2a1   : > { %v7763_v28 = vadd.f32 %v3442_v46, %v3260_v23 }
 0x2a2   : > { %v2920_v36 = vpop.f32.mrf.mxu1 }
 0x2a3   : > { %9457 = vst [vmem:[#allocation69_spill] sm:$0xff] %v7763_v28  ;;  %6253 = vmatmul.msk.f32.gmra.mxu2 %vm209_vm1, %v6219_v15  ;;  %v2921_v50 = vadd.f32 %v2920_v36, %v2708_v31  ;;  %6154 = vmatmul.msk.f32.gmra.mxu0 %vm209_vm1, %v6283_v16 }
 0x2a4   : > { %6319 = vmatmul.msk.f32.gmra.mxu3 %vm209_vm1, %v6285_v38 }
 0x2a5   : > { %6187 = vmatmul.msk.f32.gmra.mxu1 %vm209_vm1, %v6217_v4 }
 0x2a6   : > { %v3167_v56 = vpop.f32.mrf.mxu2 }
 0x2a7   : > { %v3445_v1 = vpop.f32.mrf.mxu3  ;;  %v3261_v55 = vadd.f32 %v3167_v56, %v2921_v50  ;;  %v6221_v50 = vld [vmem:[%s7070_s22 + $0x110] sm:$0xff] }
 0x2a8   : > { %v2711_v23 = vpop.f32.mrf.mxu0  ;;  %v6287_v56 = vld [vmem:[%s7070_s22 + $0x111] sm:$0xff] }
 0x2a9   : > { %v7771_v46 = vadd.f32 %v3445_v1, %v3261_v55 }
 0x2aa   : > { %v2923_v26 = vpop.f32.mrf.mxu1 }
 0x2ab   : > { %9458 = vst [vmem:[#allocation70_spill] sm:$0xff] %v7771_v46  ;;  %6254 = vmatmul.msk.f32.gmra.mxu2 %vm209_vm1, %v6220_v44  ;;  %v2924_v36 = vadd.f32 %v2923_v26, %v2711_v23  ;;  %6155 = vmatmul.msk.f32.gmra.mxu0 %vm209_vm1, %v6284_v43 }
 0x2ac   : > { %6320 = vmatmul.msk.f32.gmra.mxu3 %vm209_vm1, %v6286_v14 }
 0x2ad   : > { %6188 = vmatmul.msk.f32.gmra.mxu1 %vm209_vm1, %v6218_v52 }
 0x2ae   : > { %v3170_v4 = vpop.f32.mrf.mxu2 }
 0x2af   : > { %v3448_v16 = vpop.f32.mrf.mxu3  ;;  %v3262_v31 = vadd.f32 %v3170_v4, %v2924_v36  ;;  %v6222_v36 = vld [vmem:[%s7070_s22 + $0x120] sm:$0xff] }
 0x2b0   : > { %v2714_v55 = vpop.f32.mrf.mxu0  ;;  %v6288_v4 = vld [vmem:[%s7070_s22 + $0x121] sm:$0xff] }
 0x2b1   : > { %v7779_v1 = vadd.f32 %v3448_v16, %v3262_v31 }
 0x2b2   : > { %v2926_v41 = vpop.f32.mrf.mxu1 }
 0x2b3   : > { %9459 = vst [vmem:[#allocation71_spill] sm:$0xff] %v7779_v1  ;;  %6255 = vmatmul.msk.f32.gmra.mxu2 %vm209_vm1, %v6221_v50  ;;  %v2927_v26 = vadd.f32 %v2926_v41, %v2714_v55  ;;  %6156 = vmatmul.msk.f32.gmra.mxu0 %vm209_vm1, %v6285_v38 }
 0x2b4   : > { %6321 = vmatmul.msk.f32.gmra.mxu3 %vm209_vm1, %v6287_v56 }
 0x2b5   : > { %6189 = vmatmul.msk.f32.gmra.mxu1 %vm209_vm1, %v6219_v15 }
 0x2b6   : > { %v3173_v52 = vpop.f32.mrf.mxu2 }
 0x2b7   : > { %v3451_v43 = vpop.f32.mrf.mxu3  ;;  %v3263_v23 = vadd.f32 %v3173_v52, %v2927_v26  ;;  %v6223_v26 = vld [vmem:[%s7070_s22 + $0x128] sm:$0xff] }
 0x2b8   : > { %v2717_v31 = vpop.f32.mrf.mxu0  ;;  %v6289_v52 = vld [vmem:[%s7070_s22 + $0x129] sm:$0xff] }
 0x2b9   : > { %v7787_v16 = vadd.f32 %v3451_v43, %v3263_v23 }
 0x2ba   : > { %v2929_v32 = vpop.f32.mrf.mxu1 }
 0x2bb   : > { %9460 = vst [vmem:[#allocation72_spill] sm:$0xff] %v7787_v16  ;;  %6256 = vmatmul.msk.f32.gmra.mxu2 %vm209_vm1, %v6222_v36  ;;  %v2930_v41 = vadd.f32 %v2929_v32, %v2717_v31  ;;  %6157 = vmatmul.msk.f32.gmra.mxu0 %vm209_vm1, %v6286_v14 }
 0x2bc   : > { %6322 = vmatmul.msk.f32.gmra.mxu3 %vm209_vm1, %v6288_v4 }
 0x2bd   : > { %6190 = vmatmul.msk.f32.gmra.mxu1 %vm209_vm1, %v6220_v44 }
 0x2be   : > { %v3176_v15 = vpop.f32.mrf.mxu2 }
 0x2bf   : > { %v3454_v38 = vpop.f32.mrf.mxu3  ;;  %v3264_v55 = vadd.f32 %v3176_v15, %v2930_v41  ;;  %v6224_v41 = vld [vmem:[%s7070_s22 + $0x138] sm:$0xff] }
 0x2c0   : > { %v2720_v23 = vpop.f32.mrf.mxu0  ;;  %v6290_v15 = vld [vmem:[%s7070_s22 + $0x139] sm:$0xff] }
 0x2c1   : > { %v7795_v43 = vadd.f32 %v3454_v38, %v3264_v55 }
 0x2c2   : > { %v2932_v18 = vpop.f32.mrf.mxu1 }
 0x2c3   : > { %9461 = vst [vmem:[#allocation73_spill] sm:$0xff] %v7795_v43  ;;  %6257 = vmatmul.msk.f32.gmra.mxu2 %vm209_vm1, %v6223_v26  ;;  %v2933_v32 = vadd.f32 %v2932_v18, %v2720_v23  ;;  %6158 = vmatmul.msk.f32.gmra.mxu0 %vm209_vm1, %v6287_v56 }
 0x2c4   : > { %6323 = vmatmul.msk.f32.gmra.mxu3 %vm209_vm1, %v6289_v52 }
 0x2c5   : > { %6191 = vmatmul.msk.f32.gmra.mxu1 %vm209_vm1, %v6221_v50 }
 0x2c6   : > { %v3179_v44 = vpop.f32.mrf.mxu2 }
 0x2c7   : > { %v3457_v14 = vpop.f32.mrf.mxu3  ;;  %v3265_v31 = vadd.f32 %v3179_v44, %v2933_v32  ;;  %v6225_v32 = vld [vmem:[%s7070_s22 + $0x140] sm:$0xff] }
 0x2c8   : > { %v2723_v55 = vpop.f32.mrf.mxu0  ;;  %v6291_v44 = vld [vmem:[%s7070_s22 + $0x141] sm:$0xff] }
 0x2c9   : > { %v7803_v38 = vadd.f32 %v3457_v14, %v3265_v31 }
 0x2ca   : > { %v2935_v43 = vpop.f32.mrf.mxu1 }
 0x2cb   : > { %9462 = vst [vmem:[#allocation74_spill] sm:$0xff] %v7803_v38  ;;  %6258 = vmatmul.msk.f32.gmra.mxu2 %vm209_vm1, %v6224_v41  ;;  %v2936_v18 = vadd.f32 %v2935_v43, %v2723_v55  ;;  %6159 = vmatmul.msk.f32.gmra.mxu0 %vm209_vm1, %v6288_v4 }
 0x2cc   : > { %6324 = vmatmul.msk.f32.gmra.mxu3 %vm209_vm1, %v6290_v15 }
 0x2cd   : > { %6192 = vmatmul.msk.f32.gmra.mxu1 %vm209_vm1, %v6222_v36 }
 0x2ce   : > { %v3182_v50 = vpop.f32.mrf.mxu2 }
 0x2cf   : > { %v3460_v56 = vpop.f32.mrf.mxu3  ;;  %v3266_v23 = vadd.f32 %v3182_v50, %v2936_v18  ;;  %v6226_v18 = vld [vmem:[%s7070_s22 + $0x150] sm:$0xff] }
 0x2d0   : > { %v2726_v31 = vpop.f32.mrf.mxu0  ;;  %v6292_v50 = vld [vmem:[%s7070_s22 + $0x151] sm:$0xff] }
 0x2d1   : > { %v7811_v14 = vadd.f32 %v3460_v56, %v3266_v23 }
 0x2d2   : > { %v2938_v38 = vpop.f32.mrf.mxu1 }
 0x2d3   : > { %9463 = vst [vmem:[#allocation75_spill] sm:$0xff] %v7811_v14  ;;  %6259 = vmatmul.msk.f32.gmra.mxu2 %vm209_vm1, %v6225_v32  ;;  %v2939_v43 = vadd.f32 %v2938_v38, %v2726_v31  ;;  %6160 = vmatmul.msk.f32.gmra.mxu0 %vm209_vm1, %v6289_v52 }
 0x2d4   : > { %6325 = vmatmul.msk.f32.gmra.mxu3 %vm209_vm1, %v6291_v44 }
 0x2d5   : > { %6193 = vmatmul.msk.f32.gmra.mxu1 %vm209_vm1, %v6223_v26 }
 0x2d6   : > { %v3185_v36 = vpop.f32.mrf.mxu2 }
 0x2d7   : > { %v3463_v4 = vpop.f32.mrf.mxu3  ;;  %v3267_v55 = vadd.f32 %v3185_v36, %v2939_v43  ;;  %v6227_v43 = vld [vmem:[%s7070_s22 + $0x158] sm:$0xff] }
 0x2d8   : > { %v2729_v23 = vpop.f32.mrf.mxu0  ;;  %v6293_v36 = vld [vmem:[%s7070_s22 + $0x159] sm:$0xff] }
 0x2d9   : > { %v7819_v56 = vadd.f32 %v3463_v4, %v3267_v55 }
 0x2da   : > { %v2941_v14 = vpop.f32.mrf.mxu1 }
 0x2db   : > { %9464 = vst [vmem:[#allocation76_spill] sm:$0xff] %v7819_v56  ;;  %6260 = vmatmul.msk.f32.gmra.mxu2 %vm209_vm1, %v6226_v18  ;;  %v2942_v38 = vadd.f32 %v2941_v14, %v2729_v23  ;;  %6161 = vmatmul.msk.f32.gmra.mxu0 %vm209_vm1, %v6290_v15 }
 0x2dc   : > { %6326 = vmatmul.msk.f32.gmra.mxu3 %vm209_vm1, %v6292_v50 }
 0x2dd   : > { %6194 = vmatmul.msk.f32.gmra.mxu1 %vm209_vm1, %v6224_v41 }
 0x2de   : > { %v3188_v26 = vpop.f32.mrf.mxu2 }
 0x2df   : > { %v3466_v52 = vpop.f32.mrf.mxu3  ;;  %v3268_v31 = vadd.f32 %v3188_v26, %v2942_v38  ;;  %v6228_v38 = vld [vmem:[%s7070_s22 + $0x168] sm:$0xff] }
 0x2e0   : > { %v2732_v55 = vpop.f32.mrf.mxu0  ;;  %v6294_v26 = vld [vmem:[%s7070_s22 + $0x169] sm:$0xff] }
 0x2e1   : > { %v7827_v4 = vadd.f32 %v3466_v52, %v3268_v31 }
 0x2e2   : > { %v2944_v56 = vpop.f32.mrf.mxu1 }
 0x2e3   : > { %9465 = vst [vmem:[#allocation77_spill] sm:$0xff] %v7827_v4  ;;  %6261 = vmatmul.msk.f32.gmra.mxu2 %vm209_vm1, %v6227_v43  ;;  %v2945_v14 = vadd.f32 %v2944_v56, %v2732_v55  ;;  %6162 = vmatmul.msk.f32.gmra.mxu0 %vm209_vm1, %v6291_v44 }
 0x2e4   : > { %6327 = vmatmul.msk.f32.gmra.mxu3 %vm209_vm1, %v6293_v36 }
 0x2e5   : > { %6195 = vmatmul.msk.f32.gmra.mxu1 %vm209_vm1, %v6225_v32 }
 0x2e6   : > { %v3191_v41 = vpop.f32.mrf.mxu2 }
 0x2e7   : > { %v3469_v15 = vpop.f32.mrf.mxu3  ;;  %v3269_v23 = vadd.f32 %v3191_v41, %v2945_v14  ;;  %v6229_v14 = vld [vmem:[%s7070_s22 + $0x170] sm:$0xff] }
 0x2e8   : > { %v2735_v31 = vpop.f32.mrf.mxu0  ;;  %v6295_v41 = vld [vmem:[%s7070_s22 + $0x171] sm:$0xff] }
 0x2e9   : > { %v7835_v52 = vadd.f32 %v3469_v15, %v3269_v23 }
 0x2ea   : > { %v2947_v4 = vpop.f32.mrf.mxu1 }
 0x2eb   : > { %9466 = vst [vmem:[#allocation78_spill] sm:$0xff] %v7835_v52  ;;  %6262 = vmatmul.msk.f32.gmra.mxu2 %vm209_vm1, %v6228_v38  ;;  %v2948_v56 = vadd.f32 %v2947_v4, %v2735_v31  ;;  %6163 = vmatmul.msk.f32.gmra.mxu0 %vm209_vm1, %v6292_v50 }
 0x2ec   : > { %6328 = vmatmul.msk.f32.gmra.mxu3 %vm209_vm1, %v6294_v26 }
 0x2ed   : > { %6196 = vmatmul.msk.f32.gmra.mxu1 %vm209_vm1, %v6226_v18 }
 0x2ee   : > { %v3194_v32 = vpop.f32.mrf.mxu2 }
 0x2ef   : > { %v3472_v44 = vpop.f32.mrf.mxu3  ;;  %v3270_v55 = vadd.f32 %v3194_v32, %v2948_v56  ;;  %v6230_v56 = vld [vmem:[%s7070_s22 + $0x180] sm:$0xff] }
 0x2f0   : > { %v2738_v23 = vpop.f32.mrf.mxu0  ;;  %v6296_v32 = vld [vmem:[%s7070_s22 + $0x181] sm:$0xff] }
 0x2f1   : > { %v7843_v15 = vadd.f32 %v3472_v44, %v3270_v55 }
 0x2f2   : > { %v2950_v52 = vpop.f32.mrf.mxu1 }
 0x2f3   : > { %9467 = vst [vmem:[#allocation79_spill] sm:$0xff] %v7843_v15  ;;  %6263 = vmatmul.msk.f32.gmra.mxu2 %vm209_vm1, %v6229_v14  ;;  %v2951_v4 = vadd.f32 %v2950_v52, %v2738_v23  ;;  %6164 = vmatmul.msk.f32.gmra.mxu0 %vm209_vm1, %v6293_v36 }
 0x2f4   : > { %6329 = vmatmul.msk.f32.gmra.mxu3 %vm209_vm1, %v6295_v41 }
 0x2f5   : > { %6197 = vmatmul.msk.f32.gmra.mxu1 %vm209_vm1, %v6227_v43 }
 0x2f6   : > { %v3197_v18 = vpop.f32.mrf.mxu2 }
 0x2f7   : > { %v3475_v50 = vpop.f32.mrf.mxu3  ;;  %v3271_v31 = vadd.f32 %v3197_v18, %v2951_v4  ;;  %v6231_v4 = vld [vmem:[%s7070_s22 + $0x188] sm:$0xff] }
 0x2f8   : > { %v2741_v55 = vpop.f32.mrf.mxu0  ;;  %v6297_v18 = vld [vmem:[%s7070_s22 + $0x189] sm:$0xff] }
 0x2f9   : > { %v7851_v44 = vadd.f32 %v3475_v50, %v3271_v31 }
 0x2fa   : > { %v2953_v15 = vpop.f32.mrf.mxu1 }
 0x2fb   : > { %9468 = vst [vmem:[#allocation80_spill] sm:$0xff] %v7851_v44  ;;  %6264 = vmatmul.msk.f32.gmra.mxu2 %vm209_vm1, %v6230_v56  ;;  %v2954_v52 = vadd.f32 %v2953_v15, %v2741_v55  ;;  %6165 = vmatmul.msk.f32.gmra.mxu0 %vm209_vm1, %v6294_v26 }
 0x2fc   : > { %6330 = vmatmul.msk.f32.gmra.mxu3 %vm209_vm1, %v6296_v32 }
 0x2fd   : > { %6198 = vmatmul.msk.f32.gmra.mxu1 %vm209_vm1, %v6228_v38 }
 0x2fe   : > { %v3200_v43 = vpop.f32.mrf.mxu2 }
 0x2ff   : > { %v3478_v36 = vpop.f32.mrf.mxu3  ;;  %v3272_v23 = vadd.f32 %v3200_v43, %v2954_v52  ;;  %v6232_v52 = vld [vmem:[%s7070_s22 + $0x198] sm:$0xff] }
 0x300   : > { %v2744_v31 = vpop.f32.mrf.mxu0  ;;  %v6298_v43 = vld [vmem:[%s7070_s22 + $0x199] sm:$0xff] }
 0x301   : > { %v7859_v50 = vadd.f32 %v3478_v36, %v3272_v23 }
 0x302   : > { %v2956_v44 = vpop.f32.mrf.mxu1 }
 0x303   : > { %9469 = vst [vmem:[#allocation81_spill] sm:$0xff] %v7859_v50  ;;  %6265 = vmatmul.msk.f32.gmra.mxu2 %vm209_vm1, %v6231_v4  ;;  %v2957_v15 = vadd.f32 %v2956_v44, %v2744_v31  ;;  %6166 = vmatmul.msk.f32.gmra.mxu0 %vm209_vm1, %v6295_v41 }
 0x304   : > { %6331 = vmatmul.msk.f32.gmra.mxu3 %vm209_vm1, %v6297_v18 }
 0x305   : > { %6199 = vmatmul.msk.f32.gmra.mxu1 %vm209_vm1, %v6229_v14 }
 0x306   : > { %v3203_v38 = vpop.f32.mrf.mxu2 }
 0x307   : > { %v3481_v26 = vpop.f32.mrf.mxu3  ;;  %v3273_v55 = vadd.f32 %v3203_v38, %v2957_v15  ;;  %v6233_v15 = vld [vmem:[%s7070_s22 + $0x1a0] sm:$0xff] }
 0x308   : > { %v2747_v23 = vpop.f32.mrf.mxu0  ;;  %v6299_v38 = vld [vmem:[%s7070_s22 + $0x1a1] sm:$0xff] }
 0x309   : > { %v7867_v36 = vadd.f32 %v3481_v26, %v3273_v55 }
 0x30a   : > { %v2959_v50 = vpop.f32.mrf.mxu1 }
 0x30b   : > { %9470 = vst [vmem:[#allocation82_spill] sm:$0xff] %v7867_v36  ;;  %6266 = vmatmul.msk.f32.gmra.mxu2 %vm209_vm1, %v6232_v52  ;;  %v2960_v44 = vadd.f32 %v2959_v50, %v2747_v23  ;;  %6167 = vmatmul.msk.f32.gmra.mxu0 %vm209_vm1, %v6296_v32  ;;  %v6498_v23 = vld [vmem:[%s7070_s22 + $0x31] sm:$0xff]  ;;  %v6367_v36 = vld [vmem:[%s7070_s22 + $0x21] sm:$0xff] }
 0x30c   : > { %6332 = vmatmul.msk.f32.gmra.mxu3 %vm209_vm1, %v6298_v43 }
 0x30d   : > { %6200 = vmatmul.msk.f32.gmra.mxu1 %vm209_vm1, %v6230_v56 }
 0x30e   : > { %v3206_v14 = vpop.f32.mrf.mxu2 }
 0x30f   : > { %v3484_v41 = vpop.f32.mrf.mxu3  ;;  %v3274_v31 = vadd.f32 %v3206_v14, %v2960_v44  ;;  %v6564_v44 = vld [vmem:[%s7070_s22 + $0x32] sm:$0xff] }
 0x310   : > { %v2750_v55 = vpop.f32.mrf.mxu0 }
 0x311   : > { %v7875_v26 = vadd.f32 %v3484_v41, %v3274_v31 }
 0x312   : > { %v2962_v52 = vpop.f32.mrf.mxu1 }
 0x313   : > { %9471 = vst [vmem:[#allocation83_spill] sm:$0xff] %v7875_v26  ;;  %6267 = vmatmul.msk.f32.gmra.mxu2 %vm209_vm1, %v6233_v15  ;;  %v2963_v50 = vadd.f32 %v2962_v52, %v2750_v55  ;;  %6168 = vmatmul.msk.f32.gmra.mxu0 %vm209_vm1, %v6297_v18  ;;  %v6399_v15 = vld [vmem:[%s7070_s22 + $0x1a] sm:$0xff]  ;;  %v6400_v26 = vld [vmem:[%s7070_s22 + $0x22] sm:$0xff] }
 0x314   : > { %6333 = vmatmul.msk.f32.gmra.mxu3 %vm209_vm1, %v6299_v38  ;;  %v6366_v55 = vld [vmem:[%s7070_s22 + $0x19] sm:$0xff] }
 0x315   : > { %6201 = vmatmul.msk.f32.gmra.mxu1 %vm209_vm1, %v6231_v4 }
 0x316   : > { %v3209_v56 = vpop.f32.mrf.mxu2 }
 0x317   : > { %v3487_v32 = vpop.f32.mrf.mxu3  ;;  %v3275_v43 = vadd.f32 %v3209_v56, %v2963_v50  ;;  %v6499_v50 = vld [vmem:[%s7070_s22 + $0x39] sm:$0xff] }
 0x318   : > { %v2753_v41 = vpop.f32.mrf.mxu0  ;;  %v6565_v56 = vld [vmem:[%s7070_s22 + $0x3a] sm:$0xff] }
 0x319   : > { %v7883_v14 = vadd.f32 %v3487_v32, %v3275_v43 }
 0x31a   : > { %v2965_v31 = vpop.f32.mrf.mxu1 }
 0x31b   : > { %9472 = vst [vmem:[#allocation84_spill] sm:$0xff] %v7883_v14  ;;  %6532 = vmatmul.msk.f32.vlgmr.msrb.gmra.mxu2 %vm209_vm1, %v6498_v23  ;;  %v2966_v18 = vadd.f32 %v2965_v31, %v2753_v41  ;;  %6433 = vmatmul.msk.f32.vlgmr.msrb.gmra.mxu0 %vm209_vm1, %v6399_v15 }
 0x31c   : > { %6598 = vmatmul.msk.f32.vlgmr.msrb.gmra.mxu3 %vm209_vm1, %v6564_v44 }
 0x31d   : > { %6466 = vmatmul.msk.f32.vlgmr.msrb.gmra.mxu1 %vm209_vm1, %v6366_v55 }
 0x31e   : > { %v3212_v4 = vpop.f32.mrf.mxu2 }
 0x31f   : > { %v3490_v38 = vpop.f32.mrf.mxu3  ;;  %v3276_v52 = vadd.f32 %v3212_v4, %v2966_v18  ;;  %v6500_v18 = vld [vmem:[%s7070_s22 + $0x49] sm:$0xff] }
 0x320   : > { %v2756_v43 = vpop.f32.mrf.mxu0  ;;  %v6566_v4 = vld [vmem:[%s7070_s22 + $0x4a] sm:$0xff] }
 0x321   : > { %v7893_v32 = vadd.f32 %v3490_v38, %v3276_v52 }
 0x322   : > { %v2968_v14 = vpop.f32.mrf.mxu1 }
 0x323   : > { %9473 = vst [vmem:[#allocation85_spill] sm:$0xff] %v7893_v32  ;;  %6533 = vmatmul.msk.f32.gmra.mxu2 %vm209_vm1, %v6499_v50  ;;  %v2969_v41 = vadd.f32 %v2968_v14, %v2756_v43  ;;  %6434 = vmatmul.msk.f32.gmra.mxu0 %vm209_vm1, %v6400_v26 }
 0x324   : > { %6599 = vmatmul.msk.f32.gmra.mxu3 %vm209_vm1, %v6565_v56 }
 0x325   : > { %6467 = vmatmul.msk.f32.gmra.mxu1 %vm209_vm1, %v6367_v36 }
 0x326   : > { %v3215_v31 = vpop.f32.mrf.mxu2 }
 0x327   : > { %v3493_v15 = vpop.f32.mrf.mxu3  ;;  %v3277_v55 = vadd.f32 %v3215_v31, %v2969_v41  ;;  %v6501_v41 = vld [vmem:[%s7070_s22 + $0x51] sm:$0xff] }
 0x328   : > { %v2759_v52 = vpop.f32.mrf.mxu0  ;;  %v6567_v31 = vld [vmem:[%s7070_s22 + $0x52] sm:$0xff] }
 0x329   : > { %v7903_v38 = vadd.f32 %v3493_v15, %v3277_v55 }
 0x32a   : > { %v2971_v32 = vpop.f32.mrf.mxu1 }
 0x32b   : > { %9474 = vst [vmem:[#allocation86_spill] sm:$0xff] %v7903_v38  ;;  %6534 = vmatmul.msk.f32.gmra.mxu2 %vm209_vm1, %v6500_v18  ;;  %v2972_v14 = vadd.f32 %v2971_v32, %v2759_v52  ;;  %6435 = vmatmul.msk.f32.gmra.mxu0 %vm209_vm1, %v6564_v44 }
 0x32c   : > { %6600 = vmatmul.msk.f32.gmra.mxu3 %vm209_vm1, %v6566_v4 }
 0x32d   : > { %6468 = vmatmul.msk.f32.gmra.mxu1 %vm209_vm1, %v6498_v23 }
 0x32e   : > { %v3218_v36 = vpop.f32.mrf.mxu2 }
 0x32f   : > { %v3496_v26 = vpop.f32.mrf.mxu3  ;;  %v3278_v43 = vadd.f32 %v3218_v36, %v2972_v14  ;;  %v6502_v14 = vld [vmem:[%s7070_s22 + $0x61] sm:$0xff] }
 0x330   : > { %v2762_v55 = vpop.f32.mrf.mxu0  ;;  %v6568_v36 = vld [vmem:[%s7070_s22 + $0x62] sm:$0xff] }
 0x331   : > { %v7911_v15 = vadd.f32 %v3496_v26, %v3278_v43 }
 0x332   : > { %v2974_v38 = vpop.f32.mrf.mxu1 }
 0x333   : > { %9475 = vst [vmem:[#allocation87_spill] sm:$0xff] %v7911_v15  ;;  %6535 = vmatmul.msk.f32.gmra.mxu2 %vm209_vm1, %v6501_v41  ;;  %v2975_v32 = vadd.f32 %v2974_v38, %v2762_v55  ;;  %6436 = vmatmul.msk.f32.gmra.mxu0 %vm209_vm1, %v6565_v56 }
 0x334   : > { %6601 = vmatmul.msk.f32.gmra.mxu3 %vm209_vm1, %v6567_v31 }
 0x335   : > { %6469 = vmatmul.msk.f32.gmra.mxu1 %vm209_vm1, %v6499_v50 }
 0x336   : > { %v3221_v23 = vpop.f32.mrf.mxu2 }
 0x337   : > { %v3499_v44 = vpop.f32.mrf.mxu3  ;;  %v3279_v52 = vadd.f32 %v3221_v23, %v2975_v32  ;;  %v6503_v32 = vld [vmem:[%s7070_s22 + $0x69] sm:$0xff] }
 0x338   : > { %v2765_v43 = vpop.f32.mrf.mxu0  ;;  %v6569_v23 = vld [vmem:[%s7070_s22 + $0x6a] sm:$0xff] }
 0x339   : > { %v7919_v26 = vadd.f32 %v3499_v44, %v3279_v52 }
 0x33a   : > { %v2977_v15 = vpop.f32.mrf.mxu1 }
 0x33b   : > { %9476 = vst [vmem:[#allocation88_spill] sm:$0xff] %v7919_v26  ;;  %6536 = vmatmul.msk.f32.gmra.mxu2 %vm209_vm1, %v6502_v14  ;;  %v2978_v38 = vadd.f32 %v2977_v15, %v2765_v43  ;;  %6437 = vmatmul.msk.f32.gmra.mxu0 %vm209_vm1, %v6566_v4 }
 0x33c   : > { %6602 = vmatmul.msk.f32.gmra.mxu3 %vm209_vm1, %v6568_v36 }
 0x33d   : > { %6470 = vmatmul.msk.f32.gmra.mxu1 %vm209_vm1, %v6500_v18 }
 0x33e   : > { %v3224_v50 = vpop.f32.mrf.mxu2 }
 0x33f   : > { %v3502_v56 = vpop.f32.mrf.mxu3  ;;  %v3280_v55 = vadd.f32 %v3224_v50, %v2978_v38  ;;  %v6504_v38 = vld [vmem:[%s7070_s22 + $0x79] sm:$0xff] }
 0x340   : > { %v2768_v52 = vpop.f32.mrf.mxu0  ;;  %v6570_v50 = vld [vmem:[%s7070_s22 + $0x7a] sm:$0xff] }
 0x341   : > { %v7927_v44 = vadd.f32 %v3502_v56, %v3280_v55 }
 0x342   : > { %v2980_v26 = vpop.f32.mrf.mxu1 }
 0x343   : > { %9477 = vst [vmem:[#allocation89_spill] sm:$0xff] %v7927_v44  ;;  %6537 = vmatmul.msk.f32.gmra.mxu2 %vm209_vm1, %v6503_v32  ;;  %v2981_v15 = vadd.f32 %v2980_v26, %v2768_v52  ;;  %6438 = vmatmul.msk.f32.gmra.mxu0 %vm209_vm1, %v6567_v31 }
 0x344   : > { %6603 = vmatmul.msk.f32.gmra.mxu3 %vm209_vm1, %v6569_v23 }
 0x345   : > { %6471 = vmatmul.msk.f32.gmra.mxu1 %vm209_vm1, %v6501_v41 }
 0x346   : > { %v3227_v18 = vpop.f32.mrf.mxu2 }
 0x347   : > { %v3505_v4 = vpop.f32.mrf.mxu3  ;;  %v3281_v43 = vadd.f32 %v3227_v18, %v2981_v15  ;;  %v6505_v15 = vld [vmem:[%s7070_s22 + $0x81] sm:$0xff] }
 0x348   : > { %v2771_v55 = vpop.f32.mrf.mxu0  ;;  %v6571_v18 = vld [vmem:[%s7070_s22 + $0x82] sm:$0xff] }
 0x349   : > { %v7935_v56 = vadd.f32 %v3505_v4, %v3281_v43 }
 0x34a   : > { %v2983_v44 = vpop.f32.mrf.mxu1 }
 0x34b   : > { %9478 = vst [vmem:[#allocation90_spill] sm:$0xff] %v7935_v56  ;;  %6538 = vmatmul.msk.f32.gmra.mxu2 %vm209_vm1, %v6504_v38  ;;  %v2984_v26 = vadd.f32 %v2983_v44, %v2771_v55  ;;  %6439 = vmatmul.msk.f32.gmra.mxu0 %vm209_vm1, %v6568_v36 }
 0x34c   : > { %6604 = vmatmul.msk.f32.gmra.mxu3 %vm209_vm1, %v6570_v50 }
 0x34d   : > { %6472 = vmatmul.msk.f32.gmra.mxu1 %vm209_vm1, %v6502_v14 }
 0x34e   : > { %v3230_v41 = vpop.f32.mrf.mxu2 }
 0x34f   : > { %v3508_v31 = vpop.f32.mrf.mxu3  ;;  %v3282_v52 = vadd.f32 %v3230_v41, %v2984_v26  ;;  %v6506_v26 = vld [vmem:[%s7070_s22 + $0x91] sm:$0xff] }
 0x350   : > { %v2774_v43 = vpop.f32.mrf.mxu0  ;;  %v6572_v41 = vld [vmem:[%s7070_s22 + $0x92] sm:$0xff] }
 0x351   : > { %v7943_v4 = vadd.f32 %v3508_v31, %v3282_v52 }
 0x352   : > { %v2986_v56 = vpop.f32.mrf.mxu1 }
 0x353   : > { %9479 = vst [vmem:[#allocation91_spill] sm:$0xff] %v7943_v4  ;;  %6539 = vmatmul.msk.f32.gmra.mxu2 %vm209_vm1, %v6505_v15  ;;  %v2987_v44 = vadd.f32 %v2986_v56, %v2774_v43  ;;  %6440 = vmatmul.msk.f32.gmra.mxu0 %vm209_vm1, %v6569_v23 }
 0x354   : > { %6605 = vmatmul.msk.f32.gmra.mxu3 %vm209_vm1, %v6571_v18 }
 0x355   : > { %6473 = vmatmul.msk.f32.gmra.mxu1 %vm209_vm1, %v6503_v32 }
 0x356   : > { %v3233_v14 = vpop.f32.mrf.mxu2 }
 0x357   : > { %v3511_v36 = vpop.f32.mrf.mxu3  ;;  %v3283_v55 = vadd.f32 %v3233_v14, %v2987_v44  ;;  %v6507_v44 = vld [vmem:[%s7070_s22 + $0x99] sm:$0xff] }
 0x358   : > { %v2777_v52 = vpop.f32.mrf.mxu0  ;;  %v6573_v14 = vld [vmem:[%s7070_s22 + $0x9a] sm:$0xff] }
 0x359   : > { %v7951_v31 = vadd.f32 %v3511_v36, %v3283_v55 }
 0x35a   : > { %v2989_v4 = vpop.f32.mrf.mxu1 }
 0x35b   : > { %9480 = vst [vmem:[#allocation92_spill] sm:$0xff] %v7951_v31  ;;  %6540 = vmatmul.msk.f32.gmra.mxu2 %vm209_vm1, %v6506_v26  ;;  %v2990_v56 = vadd.f32 %v2989_v4, %v2777_v52  ;;  %6441 = vmatmul.msk.f32.gmra.mxu0 %vm209_vm1, %v6570_v50 }
 0x35c   : > { %6606 = vmatmul.msk.f32.gmra.mxu3 %vm209_vm1, %v6572_v41 }
 0x35d   : > { %6474 = vmatmul.msk.f32.gmra.mxu1 %vm209_vm1, %v6504_v38 }
 0x35e   : > { %v3236_v32 = vpop.f32.mrf.mxu2 }
 0x35f   : > { %v3514_v23 = vpop.f32.mrf.mxu3  ;;  %v3284_v43 = vadd.f32 %v3236_v32, %v2990_v56  ;;  %v6508_v56 = vld [vmem:[%s7070_s22 + $0xa9] sm:$0xff] }
 0x360   : > { %v2780_v55 = vpop.f32.mrf.mxu0  ;;  %v6574_v32 = vld [vmem:[%s7070_s22 + $0xaa] sm:$0xff] }
 0x361   : > { %v7959_v36 = vadd.f32 %v3514_v23, %v3284_v43 }
 0x362   : > { %v2992_v31 = vpop.f32.mrf.mxu1 }
 0x363   : > { %9481 = vst [vmem:[#allocation93_spill] sm:$0xff] %v7959_v36  ;;  %6541 = vmatmul.msk.f32.gmra.mxu2 %vm209_vm1, %v6507_v44  ;;  %v2993_v4 = vadd.f32 %v2992_v31, %v2780_v55  ;;  %6442 = vmatmul.msk.f32.gmra.mxu0 %vm209_vm1, %v6571_v18 }
 0x364   : > { %6607 = vmatmul.msk.f32.gmra.mxu3 %vm209_vm1, %v6573_v14 }
 0x365   : > { %6475 = vmatmul.msk.f32.gmra.mxu1 %vm209_vm1, %v6505_v15 }
 0x366   : > { %v3239_v38 = vpop.f32.mrf.mxu2 }
 0x367   : > { %v3517_v50 = vpop.f32.mrf.mxu3  ;;  %v3285_v52 = vadd.f32 %v3239_v38, %v2993_v4  ;;  %v6509_v4 = vld [vmem:[%s7070_s22 + $0xb1] sm:$0xff] }
 0x368   : > { %v2783_v43 = vpop.f32.mrf.mxu0  ;;  %v6575_v38 = vld [vmem:[%s7070_s22 + $0xb2] sm:$0xff] }
 0x369   : > { %v7967_v23 = vadd.f32 %v3517_v50, %v3285_v52 }
 0x36a   : > { %v2995_v36 = vpop.f32.mrf.mxu1 }
 0x36b   : > { %9482 = vst [vmem:[#allocation94_spill] sm:$0xff] %v7967_v23  ;;  %6542 = vmatmul.msk.f32.gmra.mxu2 %vm209_vm1, %v6508_v56  ;;  %v2996_v31 = vadd.f32 %v2995_v36, %v2783_v43  ;;  %6443 = vmatmul.msk.f32.gmra.mxu0 %vm209_vm1, %v6572_v41 }
 0x36c   : > { %6608 = vmatmul.msk.f32.gmra.mxu3 %vm209_vm1, %v6574_v32 }
 0x36d   : > { %6476 = vmatmul.msk.f32.gmra.mxu1 %vm209_vm1, %v6506_v26 }
 0x36e   : > { %v3242_v15 = vpop.f32.mrf.mxu2 }
 0x36f   : > { %v3520_v18 = vpop.f32.mrf.mxu3  ;;  %v3286_v55 = vadd.f32 %v3242_v15, %v2996_v31  ;;  %v6510_v31 = vld [vmem:[%s7070_s22 + $0xc1] sm:$0xff] }
 0x370   : > { %v2786_v52 = vpop.f32.mrf.mxu0  ;;  %v6576_v15 = vld [vmem:[%s7070_s22 + $0xc2] sm:$0xff] }
 0x371   : > { %v7975_v50 = vadd.f32 %v3520_v18, %v3286_v55 }
 0x372   : > { %v2998_v23 = vpop.f32.mrf.mxu1 }
 0x373   : > { %9483 = vst [vmem:[#allocation95_spill] sm:$0xff] %v7975_v50  ;;  %6543 = vmatmul.msk.f32.gmra.mxu2 %vm209_vm1, %v6509_v4  ;;  %v2999_v36 = vadd.f32 %v2998_v23, %v2786_v52  ;;  %6444 = vmatmul.msk.f32.gmra.mxu0 %vm209_vm1, %v6573_v14 }
 0x374   : > { %6609 = vmatmul.msk.f32.gmra.mxu3 %vm209_vm1, %v6575_v38 }
 0x375   : > { %6477 = vmatmul.msk.f32.gmra.mxu1 %vm209_vm1, %v6507_v44 }
 0x376   : > { %v3245_v26 = vpop.f32.mrf.mxu2 }
 0x377   : > { %v3523_v41 = vpop.f32.mrf.mxu3  ;;  %v3287_v43 = vadd.f32 %v3245_v26, %v2999_v36  ;;  %v6511_v36 = vld [vmem:[%s7070_s22 + $0xc9] sm:$0xff] }
 0x378   : > { %v2789_v55 = vpop.f32.mrf.mxu0  ;;  %v6577_v26 = vld [vmem:[%s7070_s22 + $0xca] sm:$0xff] }
 0x379   : > { %v7983_v18 = vadd.f32 %v3523_v41, %v3287_v43 }
 0x37a   : > { %v3001_v50 = vpop.f32.mrf.mxu1 }
 0x37b   : > { %9484 = vst [vmem:[#allocation96_spill] sm:$0xff] %v7983_v18  ;;  %6544 = vmatmul.msk.f32.gmra.mxu2 %vm209_vm1, %v6510_v31  ;;  %v3002_v23 = vadd.f32 %v3001_v50, %v2789_v55  ;;  %6445 = vmatmul.msk.f32.gmra.mxu0 %vm209_vm1, %v6574_v32 }
 0x37c   : > { %6610 = vmatmul.msk.f32.gmra.mxu3 %vm209_vm1, %v6576_v15 }
 0x37d   : > { %6478 = vmatmul.msk.f32.gmra.mxu1 %vm209_vm1, %v6508_v56 }
 0x37e   : > { %v3248_v44 = vpop.f32.mrf.mxu2 }
 0x37f   : > { %v3526_v14 = vpop.f32.mrf.mxu3  ;;  %v3288_v52 = vadd.f32 %v3248_v44, %v3002_v23  ;;  %v6512_v23 = vld [vmem:[%s7070_s22 + $0xd9] sm:$0xff] }
 0x380   : > { %v2792_v43 = vpop.f32.mrf.mxu0  ;;  %v6578_v44 = vld [vmem:[%s7070_s22 + $0xda] sm:$0xff] }
 0x381   : > { %v7991_v41 = vadd.f32 %v3526_v14, %v3288_v52 }
 0x382   : > { %v3004_v18 = vpop.f32.mrf.mxu1 }
 0x383   : > { %9485 = vst [vmem:[#allocation97_spill] sm:$0xff] %v7991_v41  ;;  %6545 = vmatmul.msk.f32.gmra.mxu2 %vm209_vm1, %v6511_v36  ;;  %v3005_v50 = vadd.f32 %v3004_v18, %v2792_v43  ;;  %6446 = vmatmul.msk.f32.gmra.mxu0 %vm209_vm1, %v6575_v38 }
 0x384   : > { %6611 = vmatmul.msk.f32.gmra.mxu3 %vm209_vm1, %v6577_v26 }
 0x385   : > { %6479 = vmatmul.msk.f32.gmra.mxu1 %vm209_vm1, %v6509_v4 }
 0x386   : > { %v3251_v56 = vpop.f32.mrf.mxu2 }
 0x387   : > { %v3529_v32 = vpop.f32.mrf.mxu3  ;;  %v3289_v55 = vadd.f32 %v3251_v56, %v3005_v50  ;;  %v6513_v50 = vld [vmem:[%s7070_s22 + $0xe1] sm:$0xff] }
 0x388   : > { %v2795_v52 = vpop.f32.mrf.mxu0  ;;  %v6579_v56 = vld [vmem:[%s7070_s22 + $0xe2] sm:$0xff] }
 0x389   : > { %v7999_v14 = vadd.f32 %v3529_v32, %v3289_v55 }
 0x38a   : > { %v3007_v41 = vpop.f32.mrf.mxu1 }
 0x38b   : > { %9486 = vst [vmem:[#allocation98_spill] sm:$0xff] %v7999_v14  ;;  %6546 = vmatmul.msk.f32.gmra.mxu2 %vm209_vm1, %v6512_v23  ;;  %v3008_v18 = vadd.f32 %v3007_v41, %v2795_v52  ;;  %6447 = vmatmul.msk.f32.gmra.mxu0 %vm209_vm1, %v6576_v15 }
 0x38c   : > { %6612 = vmatmul.msk.f32.gmra.mxu3 %vm209_vm1, %v6578_v44 }
 0x38d   : > { %6480 = vmatmul.msk.f32.gmra.mxu1 %vm209_vm1, %v6510_v31 }
 0x38e   : > { %v3254_v4 = vpop.f32.mrf.mxu2 }
 0x38f   : > { %v3532_v38 = vpop.f32.mrf.mxu3  ;;  %v3290_v43 = vadd.f32 %v3254_v4, %v3008_v18  ;;  %v6514_v18 = vld [vmem:[%s7070_s22 + $0xf1] sm:$0xff] }
 0x390   : > { %v2798_v55 = vpop.f32.mrf.mxu0  ;;  %v6580_v4 = vld [vmem:[%s7070_s22 + $0xf2] sm:$0xff] }
 0x391   : > { %v8007_v32 = vadd.f32 %v3532_v38, %v3290_v43 }
 0x392   : > { %v3010_v14 = vpop.f32.mrf.mxu1 }
 0x393   : > { %9487 = vst [vmem:[#allocation99_spill] sm:$0xff] %v8007_v32  ;;  %6547 = vmatmul.msk.f32.gmra.mxu2 %vm209_vm1, %v6513_v50  ;;  %v3011_v41 = vadd.f32 %v3010_v14, %v2798_v55  ;;  %6448 = vmatmul.msk.f32.gmra.mxu0 %vm209_vm1, %v6577_v26 }
 0x394   : > { %6613 = vmatmul.msk.f32.gmra.mxu3 %vm209_vm1, %v6579_v56 }
 0x395   : > { %6481 = vmatmul.msk.f32.gmra.mxu1 %vm209_vm1, %v6511_v36 }
 0x396   : > { %v3257_v31 = vpop.f32.mrf.mxu2 }
 0x397   : > { %v3535_v15 = vpop.f32.mrf.mxu3  ;;  %v3291_v52 = vadd.f32 %v3257_v31, %v3011_v41  ;;  %v6515_v41 = vld [vmem:[%s7070_s22 + $0xf9] sm:$0xff] }
 0x398   : > { %v3895_v43 = vpop.f32.mrf.mxu0  ;;  %v6581_v31 = vld [vmem:[%s7070_s22 + $0xfa] sm:$0xff] }
 0x399   : > { %v8015_v38 = vadd.f32 %v3535_v15, %v3291_v52 }
 0x39a   : > { %v4107_v32 = vpop.f32.mrf.mxu1 }
 0x39b   : > { %9488 = vst [vmem:[#allocation100_spill] sm:$0xff] %v8015_v38  ;;  %6548 = vmatmul.msk.f32.gmra.mxu2 %vm209_vm1, %v6514_v18  ;;  %v4108_v14 = vadd.f32 %v4107_v32, %v3895_v43  ;;  %6449 = vmatmul.msk.f32.gmra.mxu0 %vm209_vm1, %v6578_v44 }
 0x39c   : > { %6614 = vmatmul.msk.f32.gmra.mxu3 %vm209_vm1, %v6580_v4 }
 0x39d   : > { %6482 = vmatmul.msk.f32.gmra.mxu1 %vm209_vm1, %v6512_v23 }
 0x39e   : > { %v4353_v36 = vpop.f32.mrf.mxu2 }
 0x39f   : > { %v4631_v26 = vpop.f32.mrf.mxu3  ;;  %v4449_v55 = vadd.f32 %v4353_v36, %v4108_v14  ;;  %v6516_v14 = vld [vmem:[%s7070_s22 + $0x109] sm:$0xff] }
 0x3a0   : > { %v3898_v52 = vpop.f32.mrf.mxu0  ;;  %v6582_v36 = vld [vmem:[%s7070_s22 + $0x10a] sm:$0xff] }
 0x3a1   : > { %v8023_v15 = vadd.f32 %v4631_v26, %v4449_v55 }
 0x3a2   : > { %v4110_v38 = vpop.f32.mrf.mxu1 }
 0x3a3   : > { %9489 = vst [vmem:[#allocation101_spill] sm:$0xff] %v8023_v15  ;;  %6549 = vmatmul.msk.f32.gmra.mxu2 %vm209_vm1, %v6515_v41  ;;  %v4111_v32 = vadd.f32 %v4110_v38, %v3898_v52  ;;  %6450 = vmatmul.msk.f32.gmra.mxu0 %vm209_vm1, %v6579_v56 }
 0x3a4   : > { %6615 = vmatmul.msk.f32.gmra.mxu3 %vm209_vm1, %v6581_v31 }
 0x3a5   : > { %6483 = vmatmul.msk.f32.gmra.mxu1 %vm209_vm1, %v6513_v50 }
 0x3a6   : > { %v4356_v23 = vpop.f32.mrf.mxu2 }
 0x3a7   : > { %v4634_v44 = vpop.f32.mrf.mxu3  ;;  %v4450_v43 = vadd.f32 %v4356_v23, %v4111_v32  ;;  %v6517_v32 = vld [vmem:[%s7070_s22 + $0x111] sm:$0xff] }
 0x3a8   : > { %v3901_v55 = vpop.f32.mrf.mxu0  ;;  %v6583_v23 = vld [vmem:[%s7070_s22 + $0x112] sm:$0xff] }
 0x3a9   : > { %v8031_v26 = vadd.f32 %v4634_v44, %v4450_v43 }
 0x3aa   : > { %v4113_v15 = vpop.f32.mrf.mxu1 }
 0x3ab   : > { %9490 = vst [vmem:[#allocation102_spill] sm:$0xff] %v8031_v26  ;;  %6550 = vmatmul.msk.f32.gmra.mxu2 %vm209_vm1, %v6516_v14  ;;  %v4114_v38 = vadd.f32 %v4113_v15, %v3901_v55  ;;  %6451 = vmatmul.msk.f32.gmra.mxu0 %vm209_vm1, %v6580_v4 }
 0x3ac   : > { %6616 = vmatmul.msk.f32.gmra.mxu3 %vm209_vm1, %v6582_v36 }
 0x3ad   : > { %6484 = vmatmul.msk.f32.gmra.mxu1 %vm209_vm1, %v6514_v18 }
 0x3ae   : > { %v4359_v50 = vpop.f32.mrf.mxu2 }
 0x3af   : > { %v4637_v56 = vpop.f32.mrf.mxu3  ;;  %v4451_v52 = vadd.f32 %v4359_v50, %v4114_v38  ;;  %v6518_v38 = vld [vmem:[%s7070_s22 + $0x121] sm:$0xff] }
 0x3b0   : > { %v3904_v43 = vpop.f32.mrf.mxu0  ;;  %v6584_v50 = vld [vmem:[%s7070_s22 + $0x122] sm:$0xff] }
 0x3b1   : > { %v8039_v44 = vadd.f32 %v4637_v56, %v4451_v52 }
 0x3b2   : > { %v4116_v26 = vpop.f32.mrf.mxu1 }
 0x3b3   : > { %9491 = vst [vmem:[#allocation103_spill] sm:$0xff] %v8039_v44  ;;  %6551 = vmatmul.msk.f32.gmra.mxu2 %vm209_vm1, %v6517_v32  ;;  %v4117_v15 = vadd.f32 %v4116_v26, %v3904_v43  ;;  %6452 = vmatmul.msk.f32.gmra.mxu0 %vm209_vm1, %v6581_v31 }
 0x3b4   : > { %6617 = vmatmul.msk.f32.gmra.mxu3 %vm209_vm1, %v6583_v23 }
 0x3b5   : > { %6485 = vmatmul.msk.f32.gmra.mxu1 %vm209_vm1, %v6515_v41 }
 0x3b6   : > { %v4362_v18 = vpop.f32.mrf.mxu2 }
 0x3b7   : > { %v4640_v4 = vpop.f32.mrf.mxu3  ;;  %v4452_v55 = vadd.f32 %v4362_v18, %v4117_v15  ;;  %v6519_v15 = vld [vmem:[%s7070_s22 + $0x129] sm:$0xff] }
 0x3b8   : > { %v3907_v52 = vpop.f32.mrf.mxu0  ;;  %v6585_v18 = vld [vmem:[%s7070_s22 + $0x12a] sm:$0xff] }
 0x3b9   : > { %v8047_v56 = vadd.f32 %v4640_v4, %v4452_v55 }
 0x3ba   : > { %v4119_v44 = vpop.f32.mrf.mxu1 }
 0x3bb   : > { %9492 = vst [vmem:[#allocation104_spill] sm:$0xff] %v8047_v56  ;;  %6552 = vmatmul.msk.f32.gmra.mxu2 %vm209_vm1, %v6518_v38  ;;  %v4120_v26 = vadd.f32 %v4119_v44, %v3907_v52  ;;  %6453 = vmatmul.msk.f32.gmra.mxu0 %vm209_vm1, %v6582_v36 }
 0x3bc   : > { %6618 = vmatmul.msk.f32.gmra.mxu3 %vm209_vm1, %v6584_v50 }
 0x3bd   : > { %6486 = vmatmul.msk.f32.gmra.mxu1 %vm209_vm1, %v6516_v14 }
 0x3be   : > { %v4365_v41 = vpop.f32.mrf.mxu2 }
 0x3bf   : > { %v4643_v31 = vpop.f32.mrf.mxu3  ;;  %v4453_v43 = vadd.f32 %v4365_v41, %v4120_v26  ;;  %v6520_v26 = vld [vmem:[%s7070_s22 + $0x139] sm:$0xff] }
 0x3c0   : > { %v3910_v55 = vpop.f32.mrf.mxu0  ;;  %v6586_v41 = vld [vmem:[%s7070_s22 + $0x13a] sm:$0xff] }
 0x3c1   : > { %v8055_v4 = vadd.f32 %v4643_v31, %v4453_v43 }
 0x3c2   : > { %v4122_v56 = vpop.f32.mrf.mxu1 }
 0x3c3   : > { %9493 = vst [vmem:[#allocation105_spill] sm:$0xff] %v8055_v4  ;;  %6553 = vmatmul.msk.f32.gmra.mxu2 %vm209_vm1, %v6519_v15  ;;  %v4123_v44 = vadd.f32 %v4122_v56, %v3910_v55  ;;  %6454 = vmatmul.msk.f32.gmra.mxu0 %vm209_vm1, %v6583_v23 }
 0x3c4   : > { %6619 = vmatmul.msk.f32.gmra.mxu3 %vm209_vm1, %v6585_v18 }
 0x3c5   : > { %6487 = vmatmul.msk.f32.gmra.mxu1 %vm209_vm1, %v6517_v32 }
 0x3c6   : > { %v4368_v14 = vpop.f32.mrf.mxu2 }
 0x3c7   : > { %v4646_v36 = vpop.f32.mrf.mxu3  ;;  %v4454_v52 = vadd.f32 %v4368_v14, %v4123_v44  ;;  %v6521_v44 = vld [vmem:[%s7070_s22 + $0x141] sm:$0xff] }
 0x3c8   : > { %v3913_v43 = vpop.f32.mrf.mxu0  ;;  %v6587_v14 = vld [vmem:[%s7070_s22 + $0x142] sm:$0xff] }
 0x3c9   : > { %v8063_v31 = vadd.f32 %v4646_v36, %v4454_v52 }
 0x3ca   : > { %v4125_v4 = vpop.f32.mrf.mxu1 }
 0x3cb   : > { %9494 = vst [vmem:[#allocation106_spill] sm:$0xff] %v8063_v31  ;;  %6554 = vmatmul.msk.f32.gmra.mxu2 %vm209_vm1, %v6520_v26  ;;  %v4126_v56 = vadd.f32 %v4125_v4, %v3913_v43  ;;  %6455 = vmatmul.msk.f32.gmra.mxu0 %vm209_vm1, %v6584_v50 }
 0x3cc   : > { %6620 = vmatmul.msk.f32.gmra.mxu3 %vm209_vm1, %v6586_v41 }
 0x3cd   : > { %6488 = vmatmul.msk.f32.gmra.mxu1 %vm209_vm1, %v6518_v38 }
 0x3ce   : > { %v4371_v32 = vpop.f32.mrf.mxu2 }
 0x3cf   : > { %v4649_v23 = vpop.f32.mrf.mxu3  ;;  %v4455_v55 = vadd.f32 %v4371_v32, %v4126_v56  ;;  %v6522_v56 = vld [vmem:[%s7070_s22 + $0x151] sm:$0xff] }
 0x3d0   : > { %v3916_v52 = vpop.f32.mrf.mxu0  ;;  %v6588_v32 = vld [vmem:[%s7070_s22 + $0x152] sm:$0xff] }
 0x3d1   : > { %v8071_v36 = vadd.f32 %v4649_v23, %v4455_v55 }
 0x3d2   : > { %v4128_v31 = vpop.f32.mrf.mxu1 }
 0x3d3   : > { %9495 = vst [vmem:[#allocation107_spill] sm:$0xff] %v8071_v36  ;;  %6555 = vmatmul.msk.f32.gmra.mxu2 %vm209_vm1, %v6521_v44  ;;  %v4129_v4 = vadd.f32 %v4128_v31, %v3916_v52  ;;  %6456 = vmatmul.msk.f32.gmra.mxu0 %vm209_vm1, %v6585_v18  ;;  %v6523_v52 = vld [vmem:[%s7070_s22 + $0x159] sm:$0xff] }
 0x3d4   : > { %6621 = vmatmul.msk.f32.gmra.mxu3 %vm209_vm1, %v6587_v14 }
 0x3d5   : > { %6489 = vmatmul.msk.f32.gmra.mxu1 %vm209_vm1, %v6519_v15 }
 0x3d6   : > { %v4374_v38 = vpop.f32.mrf.mxu2 }
 0x3d7   : > { %v4652_v50 = vpop.f32.mrf.mxu3  ;;  %v4456_v43 = vadd.f32 %v4374_v38, %v4129_v4  ;;  %v6589_v4 = vld [vmem:[%s7070_s22 + $0x15a] sm:$0xff] }
 0x3d8   : > { %v3919_v55 = vpop.f32.mrf.mxu0 }
 0x3d9   : > { %v8079_v23 = vadd.f32 %v4652_v50, %v4456_v43 }
 0x3da   : > { %v4131_v36 = vpop.f32.mrf.mxu1 }
 0x3db   : > { %9496 = vst [vmem:[#allocation108_spill] sm:$0xff] %v8079_v23  ;;  %v4132_v16 = vadd.f32 %v4131_v36, %v3919_v55  ;;  %6556 = vmatmul.msk.f32.gmra.mxu2 %vm209_vm1, %v6522_v56  ;;  %6457 = vmatmul.msk.f32.gmra.mxu0 %vm209_vm1, %v6586_v41  ;;  %v6524_v55 = vld [vmem:[%s7070_s22 + $0x169] sm:$0xff]  ;;  %v6529_v23 = vld [vmem:[%s7070_s22 + $0x1a1] sm:$0xff] }
 0x3dc   : > { %6622 = vmatmul.msk.f32.gmra.mxu3 %vm209_vm1, %v6588_v32 }
 0x3dd   : > { %6490 = vmatmul.msk.f32.gmra.mxu1 %vm209_vm1, %v6520_v26 }
 0x3de   : > { %v4377_v15 = vpop.f32.mrf.mxu2 }
 0x3df   : > { %v4655_v18 = vpop.f32.mrf.mxu3  ;;  %v4457_v31 = vadd.f32 %v4377_v15, %v4132_v16  ;;  %v6590_v15 = vld [vmem:[%s7070_s22 + $0x16a] sm:$0xff] }
 0x3e0   : > { %v3922_v50 = vpop.f32.mrf.mxu0 }
 0x3e1   : > { %v8087_v38 = vadd.f32 %v4655_v18, %v4457_v31 }
 0x3e2   : > { %v4134_v43 = vpop.f32.mrf.mxu1 }
 0x3e3   : > { %9497 = vst [vmem:[#allocation109_spill] sm:$0xff] %v8087_v38  ;;  %v4135_v36 = vadd.f32 %v4134_v43, %v3922_v50  ;;  %6557 = vmatmul.msk.f32.gmra.mxu2 %vm209_vm1, %v6523_v52  ;;  %6458 = vmatmul.msk.f32.gmra.mxu0 %vm209_vm1, %v6587_v14 }
 0x3e4   : > { %6623 = vmatmul.msk.f32.gmra.mxu3 %vm209_vm1, %v6589_v4 }
 0x3e5   : > { %6491 = vmatmul.msk.f32.gmra.mxu1 %vm209_vm1, %v6521_v44 }
 0x3e6   : > { %v4380_v26 = vpop.f32.mrf.mxu2 }
 0x3e7   : > { %v4658_v41 = vpop.f32.mrf.mxu3  ;;  %v4458_v16 = vadd.f32 %v4380_v26, %v4135_v36  ;;  %v6525_v36 = vld [vmem:[%s7070_s22 + $0x171] sm:$0xff] }
 0x3e8   : > { %v3925_v31 = vpop.f32.mrf.mxu0  ;;  %v6591_v26 = vld [vmem:[%s7070_s22 + $0x172] sm:$0xff] }
 0x3e9   : > { %v8095_v18 = vadd.f32 %v4658_v41, %v4458_v16 }
 0x3ea   : > { %v4137_v38 = vpop.f32.mrf.mxu1 }
 0x3eb   : > { %9498 = vst [vmem:[#allocation110_spill] sm:$0xff] %v8095_v18  ;;  %v4138_v50 = vadd.f32 %v4137_v38, %v3925_v31  ;;  %6558 = vmatmul.msk.f32.gmra.mxu2 %vm209_vm1, %v6524_v55  ;;  %6459 = vmatmul.msk.f32.gmra.mxu0 %vm209_vm1, %v6588_v32 }
 0x3ec   : > { %6624 = vmatmul.msk.f32.gmra.mxu3 %vm209_vm1, %v6590_v15 }
 0x3ed   : > { %6492 = vmatmul.msk.f32.gmra.mxu1 %vm209_vm1, %v6522_v56 }
 0x3ee   : > { %v4383_v44 = vpop.f32.mrf.mxu2 }
 0x3ef   : > { %v4661_v14 = vpop.f32.mrf.mxu3  ;;  %v4459_v43 = vadd.f32 %v4383_v44, %v4138_v50  ;;  %v6526_v50 = vld [vmem:[%s7070_s22 + $0x181] sm:$0xff] }
 0x3f0   : > { %v3928_v16 = vpop.f32.mrf.mxu0  ;;  %v6592_v44 = vld [vmem:[%s7070_s22 + $0x182] sm:$0xff] }
 0x3f1   : > { %v8103_v41 = vadd.f32 %v4661_v14, %v4459_v43 }
 0x3f2   : > { %v4140_v18 = vpop.f32.mrf.mxu1 }
 0x3f3   : > { %9499 = vst [vmem:[#allocation111_spill] sm:$0xff] %v8103_v41  ;;  %v4141_v38 = vadd.f32 %v4140_v18, %v3928_v16  ;;  %6559 = vmatmul.msk.f32.gmra.mxu2 %vm209_vm1, %v6525_v36  ;;  %6460 = vmatmul.msk.f32.gmra.mxu0 %vm209_vm1, %v6589_v4 }
 0x3f4   : > { %6625 = vmatmul.msk.f32.gmra.mxu3 %vm209_vm1, %v6591_v26 }
 0x3f5   : > { %6493 = vmatmul.msk.f32.gmra.mxu1 %vm209_vm1, %v6523_v52 }
 0x3f6   : > { %v4386_v56 = vpop.f32.mrf.mxu2 }
 0x3f7   : > { %v4664_v32 = vpop.f32.mrf.mxu3  ;;  %v4460_v31 = vadd.f32 %v4386_v56, %v4141_v38  ;;  %v6527_v38 = vld [vmem:[%s7070_s22 + $0x189] sm:$0xff] }
 0x3f8   : > { %v3931_v43 = vpop.f32.mrf.mxu0  ;;  %v6593_v56 = vld [vmem:[%s7070_s22 + $0x18a] sm:$0xff] }
 0x3f9   : > { %v8111_v14 = vadd.f32 %v4664_v32, %v4460_v31 }
 0x3fa   : > { %v4143_v41 = vpop.f32.mrf.mxu1 }
 0x3fb   : > { %9500 = vst [vmem:[#allocation112_spill] sm:$0xff] %v8111_v14  ;;  %v4144_v18 = vadd.f32 %v4143_v41, %v3931_v43  ;;  %6560 = vmatmul.msk.f32.gmra.mxu2 %vm209_vm1, %v6526_v50  ;;  %6461 = vmatmul.msk.f32.gmra.mxu0 %vm209_vm1, %v6590_v15 }
 0x3fc   : > { %6626 = vmatmul.msk.f32.gmra.mxu3 %vm209_vm1, %v6592_v44 }
 0x3fd   : > { %6494 = vmatmul.msk.f32.gmra.mxu1 %vm209_vm1, %v6524_v55 }
 0x3fe   : > { %v4389_v52 = vpop.f32.mrf.mxu2 }
 0x3ff   : > { %v4667_v4 = vpop.f32.mrf.mxu3  ;;  %v4461_v16 = vadd.f32 %v4389_v52, %v4144_v18  ;;  %v6528_v18 = vld [vmem:[%s7070_s22 + $0x199] sm:$0xff] }
 0x400   : > { %v3934_v31 = vpop.f32.mrf.mxu0  ;;  %v6594_v52 = vld [vmem:[%s7070_s22 + $0x19a] sm:$0xff] }
 0x401   : > { %v8119_v32 = vadd.f32 %v4667_v4, %v4461_v16 }
 0x402   : > { %v4146_v14 = vpop.f32.mrf.mxu1 }
 0x403   : > { %9501 = vst [vmem:[#allocation113_spill] sm:$0xff] %v8119_v32  ;;  %v4147_v41 = vadd.f32 %v4146_v14, %v3934_v31  ;;  %6561 = vmatmul.msk.f32.gmra.mxu2 %vm209_vm1, %v6527_v38  ;;  %6462 = vmatmul.msk.f32.gmra.mxu0 %vm209_vm1, %v6591_v26 }
 0x404   : > { %6627 = vmatmul.msk.f32.gmra.mxu3 %vm209_vm1, %v6593_v56 }
 0x405   : > { %6495 = vmatmul.msk.f32.gmra.mxu1 %vm209_vm1, %v6525_v36 }
 0x406   : > { %v4392_v55 = vpop.f32.mrf.mxu2 }
 0x407   : > { %v4670_v15 = vpop.f32.mrf.mxu3  ;;  %v4462_v43 = vadd.f32 %v4392_v55, %v4147_v41  ;;  %v6595_v41 = vld [vmem:[%s7070_s22 + $0x1a2] sm:$0xff]  ;;  %s8675_s22 = scalar_lea.vmem [#allocation2], %s5637_s21 }
 0x408   : > { %v3937_v16 = vpop.f32.mrf.mxu0  ;;  %s5568_s26 = sshll.u32 %s8675_s22, 4  ;;  %s5569_s26 = int_to_ptr.vmem [resolvable:$true] %s5568_s26 }
 0x409   : > { %v8127_v4 = vadd.f32 %v4670_v15, %v4462_v43 }
 0x40a   : > { %v4149_v32 = vpop.f32.mrf.mxu1 }
 0x40b   : > { %9502 = vst [vmem:[#allocation114_spill] sm:$0xff] %v8127_v4  ;;  %v4150_v14 = vadd.f32 %v4149_v32, %v3937_v16  ;;  %6562 = vmatmul.msk.f32.gmra.mxu2 %vm209_vm1, %v6528_v18  ;;  %6463 = vmatmul.msk.f32.gmra.mxu0 %vm209_vm1, %v6592_v44  ;;  %v1192_v16 = vadd.f32 %v7214_v63, %v7206_v54 }
 0x40c   : > { %6628 = vmatmul.msk.f32.gmra.mxu3 %vm209_vm1, %v6594_v52  ;;  %v1230_v52 = vmul.f32 %v7206_v54, %v7206_v54  ;;  %v9556_v54 = vld [vmem:[#allocation113_spill] sm:$0xff] }
 0x40d   : > { %6496 = vmatmul.msk.f32.gmra.mxu1 %vm209_vm1, %v6526_v50  ;;  %v1231_v50 = vmul.f32 %v7214_v63, %v7214_v63 }
 0x40e   : > { %v4395_v36 = vpop.f32.mrf.mxu2 }
 0x40f   : > { %v4673_v26 = vpop.f32.mrf.mxu3  ;;  %v4463_v31 = vadd.f32 %v4395_v36, %v4150_v14 }
 0x410   : > { %v3940_v15 = vpop.f32.mrf.mxu0 }
 0x411   : > { %v8135_v55 = vadd.f32 %v4673_v26, %v4463_v31  ;;  %v1193_v26 = vadd.f32 %v1192_v16, %v7222_v8  ;;  %v1233_v31 = vmul.f32 %v7230_v24, %v7230_v24 }
 0x412   : > { %v4152_v43 = vpop.f32.mrf.mxu1 }
 0x413   : > { %9503 = vst [vmem:[#allocation115_spill] sm:$0xff] %v8135_v55  ;;  %v4153_v4 = vadd.f32 %v4152_v43, %v3940_v15  ;;  %6563 = vmatmul.msk.f32.gmra.mxu2 %vm209_vm1, %v6529_v23  ;;  %6464 = vmatmul.msk.f32.gmra.mxu0 %vm209_vm1, %v6593_v56  ;;  %v1232_v23 = vmul.f32 %v7222_v8, %v7222_v8 }
 0x414   : > { %6629 = vmatmul.msk.f32.gmra.mxu3 %vm209_vm1, %v6595_v41  ;;  %v1194_v15 = vadd.f32 %v1193_v26, %v7230_v24  ;;  %v1234_v43 = vmul.f32 %v7238_v33, %v7238_v33 }
 0x415   : > { %6497 = vmatmul.msk.f32.gmra.mxu1 %vm209_vm1, %v6527_v38  ;;  %v1262_v38 = vadd.f32 %v1231_v50, %v1230_v52 }
 0x416   : > { %v4398_v44 = vpop.f32.mrf.mxu2  ;;  %v1195_v63 = vadd.f32 %v1194_v15, %v7238_v33 }
 0x417   : > { %v4676_v32 = vpop.f32.mrf.mxu3  ;;  %v4464_v18 = vadd.f32 %v4398_v44, %v4153_v4  ;;  %v1263_v41 = vadd.f32 %v1262_v38, %v1232_v23  ;;  %v1236_v23 = vmul.f32 %v7254_v51, %v7254_v51 }
 0x418   : > { %v3943_v56 = vpop.f32.mrf.mxu0  ;;  %v1196_v8 = vadd.f32 %v1195_v63, %v7246_v42  ;;  %v1238_v63 = vmul.f32 %v7270_v7, %v7270_v7 }
 0x419   : > { %v8149_v14 = vadd.f32 %v4676_v32, %v4464_v18  ;;  %v1264_v44 = vadd.f32 %v1263_v41, %v1233_v31  ;;  %v1235_v32 = vmul.f32 %v7246_v42, %v7246_v42  ;;  %v1237_v41 = vmul.f32 %v7262_v61, %v7262_v61 }
 0x41a   : > { %v4155_v36 = vpop.f32.mrf.mxu1  ;;  %v1197_v31 = vadd.f32 %v1196_v8, %v7254_v51 }
 0x41b   : > { %v4156_v4 = vadd.f32 %v4155_v36, %v3943_v56  ;;  %v1265_v16 = vadd.f32 %v1264_v44, %v1234_v43 }
 0x41d   : > { %v1266_v26 = vadd.f32 %v1265_v16, %v1235_v32 }
 0x41e   : > { %v4401_v18 = vpop.f32.mrf.mxu2 }
 0x41f   : > { %v4679_v50 = vpop.f32.mrf.mxu3  ;;  %v4465_v52 = vadd.f32 %v4401_v18, %v4156_v4  ;;  %v1267_v33 = vadd.f32 %v1266_v26, %v1236_v23  ;;  %v1198_v4 = vadd.f32 %v1197_v31, %v7262_v61  ;;  %v1239_v18 = vmul.f32 %v7278_v25, %v7278_v25 }
 0x420   : > { %v3946_v36 = vpop.f32.mrf.mxu0  ;;  %v1240_v23 = vmul.f32 %v7286_v35, %v7286_v35 }
 0x421   : > { %v8163_v56 = vadd.f32 %v4679_v50, %v4465_v52  ;;  %v1268_v43 = vadd.f32 %v1267_v33, %v1237_v41  ;;  %v1199_v44 = vadd.f32 %v1198_v4, %v7270_v7  ;;  %v1241_v41 = vmul.f32 %v7294_v45, %v7294_v45 }
 0x422   : > { %v4158_v38 = vpop.f32.mrf.mxu1 }
 0x423   : > { %v4159_v15 = vadd.f32 %v4158_v38, %v3946_v36  ;;  %v1269_v8 = vadd.f32 %v1268_v43, %v1238_v63  ;;  %v1200_v16 = vadd.f32 %v1199_v44, %v7278_v25  ;;  %v1242_v63 = vmul.f32 %v7318_v60, %v7318_v60 }
 0x425   : > { %v1270_v31 = vadd.f32 %v1269_v8, %v1239_v18  ;;  %v1201_v33 = vadd.f32 %v1200_v16, %v7286_v35 }
 0x426   : > { %v4404_v50 = vpop.f32.mrf.mxu2 }
 0x427   : > { %v4682_v32 = vpop.f32.mrf.mxu3  ;;  %v4466_v52 = vadd.f32 %v4404_v50, %v4159_v15  ;;  %v1271_v7 = vadd.f32 %v1270_v31, %v1240_v23  ;;  %v1202_v15 = vadd.f32 %v1201_v33, %v7294_v45  ;;  %v1243_v50 = vmul.f32 %v7326_v11, %v7326_v11 }
 0x428   : > { %v3949_v38 = vpop.f32.mrf.mxu0  ;;  %v1244_v23 = vmul.f32 %v7334_v27, %v7334_v27 }
 0x429   : > { %v8177_v36 = vadd.f32 %v4682_v32, %v4466_v52  ;;  %v1272_v43 = vadd.f32 %v1271_v7, %v1241_v41  ;;  %v1203_v44 = vadd.f32 %v1202_v15, %v7318_v60  ;;  %v1245_v15 = vmul.f32 %v7341_v37, %v7341_v37 }
 0x42a   : > { %v4161_v26 = vpop.f32.mrf.mxu1 }
 0x42b   : > { %v4162_v4 = vadd.f32 %v4161_v26, %v3949_v38  ;;  %v1273_v8 = vadd.f32 %v1272_v43, %v1242_v63  ;;  %v1204_v16 = vadd.f32 %v1203_v44, %v7326_v11  ;;  %v2419_v38 = vmul.f32 %v7495_v21, %v7495_v21 }
 0x42c   : > { %v2418_v63 = vmul.f32 %v7487_v22, %v7487_v22  ;;  %v2420_v43 = vmul.f32 %v7503_v53, %v7503_v53 }
 0x42d   : > { %v1274_v33 = vadd.f32 %v1273_v8, %v1243_v50  ;;  %v1205_v41 = vadd.f32 %v1204_v16, %v7334_v27  ;;  %v2380_v50 = vadd.f32 %v7495_v21, %v7487_v22  ;;  %v2421_v8 = vmul.f32 %v7511_v5, %v7511_v5 }
 0x42e   : > { %v4407_v32 = vpop.f32.mrf.mxu2 }
 0x42f   : > { %v4685_v18 = vpop.f32.mrf.mxu3  ;;  %v4467_v52 = vadd.f32 %v4407_v32, %v4162_v4  ;;  %v1275_v44 = vadd.f32 %v1274_v33, %v1244_v23  ;;  %v1206_v32 = vadd.f32 %v1205_v41, %v7341_v37  ;;  %v2381_v33 = vadd.f32 %v2380_v50, %v7503_v53 }
 0x430   : > { %v3952_v7 = vpop.f32.mrf.mxu0  ;;  %v2422_v37 = vmul.f32 %v7519_v30, %v7519_v30 }
 0x431   : > { %v8193_v26 = vadd.f32 %v4685_v18, %v4467_v52  ;;  %v1246_v18 = vmul.f32 %v7351_v48, %v7351_v48  ;;  %v2450_v52 = vadd.f32 %v2419_v38, %v2418_v63  ;;  %v1276_v16 = vadd.f32 %v1275_v44, %v1245_v15 }
 0x432   : > { %v4164_v31 = vpop.f32.mrf.mxu1  ;;  %v1248_v15 = vmul.f32 %v7370_v3, %v7370_v3  ;;  %v2382_v63 = vadd.f32 %v2381_v33, %v7511_v5  ;;  %v9506_v5 = vld [vmem:[#allocation52_spill] sm:$0xff] }
 0x433   : > { %v4165_v4 = vadd.f32 %v4164_v31, %v3952_v7  ;;  %v1207_v7 = vadd.f32 %v1206_v32, %v7351_v48  ;;  %v1247_v31 = vmul.f32 %v7361_v57, %v7361_v57  ;;  %v2451_v41 = vadd.f32 %v2450_v52, %v2420_v43 }
 0x434   : > { %v1277_v21 = vadd.f32 %v1276_v16, %v1246_v18  ;;  %v2423_v32 = vmul.f32 %v7527_v49, %v7527_v49  ;;  %v2383_v18 = vadd.f32 %v2382_v63, %v7519_v30 }
 0x435   : > { %v1208_v38 = vadd.f32 %v1207_v7, %v7361_v57  ;;  %v2452_v44 = vadd.f32 %v2451_v41, %v2421_v8  ;;  %v2424_v8 = vmul.f32 %v7535_v17, %v7535_v17 }
 0x436   : > { %v4410_v27 = vpop.f32.mrf.mxu2  ;;  %v1278_v52 = vadd.f32 %v1277_v21, %v1247_v31  ;;  %v2384_v21 = vadd.f32 %v2383_v18, %v7527_v49 }
 0x437   : > { %v4688_v23 = vpop.f32.mrf.mxu3  ;;  %v4468_v11 = vadd.f32 %v4410_v27, %v4165_v4  ;;  %v1209_v53 = vadd.f32 %v1208_v38, %v7370_v3  ;;  %v1249_v27 = vmul.f32 %v7379_v20, %v7379_v20  ;;  %v2453_v16 = vadd.f32 %v2452_v44, %v2422_v37 }
 0x438   : > { %v3955_v50 = vpop.f32.mrf.mxu0  ;;  %v1279_v7 = vadd.f32 %v1278_v52, %v1248_v15  ;;  %v1251_v37 = vmul.f32 %v7398_v47, %v7398_v47  ;;  %v2385_v15 = vadd.f32 %v2384_v21, %v7535_v17 }
 0x439   : > { %v8221_v22 = vadd.f32 %v4688_v23, %v4468_v11  ;;  %v1210_v33 = vadd.f32 %v1209_v53, %v7379_v20  ;;  %v1250_v11 = vmul.f32 %v7389_v34, %v7389_v34  ;;  %v2454_v31 = vadd.f32 %v2453_v16, %v2423_v32  ;;  %v9532_v20 = vld [vmem:[#allocation104_spill] sm:$0xff] }
 0x43a   : > { %v4167_v43 = vpop.f32.mrf.mxu1  ;;  %v2425_v23 = vmul.f32 %v7543_v40, %v7543_v40  ;;  %v1280_v41 = vadd.f32 %v1279_v7, %v1249_v27  ;;  %v1252_v27 = vmul.f32 %v7407_v59, %v7407_v59  ;;  %v2386_v18 = vadd.f32 %v2385_v15, %v7543_v40  ;;  %v9505_v40 = vld [vmem:[#allocation33_spill] sm:$0xff] }
 0x43b   : > { %v4168_v4 = vadd.f32 %v4167_v43, %v3955_v50  ;;  %v1211_v38 = vadd.f32 %v1210_v33, %v7389_v34  ;;  %v2455_v53 = vadd.f32 %v2454_v31, %v2424_v8  ;;  %v2426_v50 = vmul.f32 %v7551_v58, %v7551_v58 }
 0x43c   : > { %v1281_v52 = vadd.f32 %v1280_v41, %v1250_v11  ;;  %v2427_v7 = vmul.f32 %v7559_v2, %v7559_v2  ;;  %v1253_v11 = vmul.f32 %v7415_v6, %v7415_v6  ;;  %v2387_v41 = vadd.f32 %v2386_v18, %v7551_v58 }
 0x43d   : > { %v1212_v32 = vadd.f32 %v1211_v38, %v7398_v47  ;;  %v2456_v16 = vadd.f32 %v2455_v53, %v2425_v23  ;;  %v2428_v23 = vmul.f32 %v7567_v29, %v7567_v29  ;;  %v1254_v15 = vmul.f32 %v7423_v19, %v7423_v19  ;;  %v9530_v47 = vld [vmem:[#allocation103_spill] sm:$0xff] }
 0x43e   : > { %v4413_v63 = vpop.f32.mrf.mxu2  ;;  %v1282_v31 = vadd.f32 %v1281_v52, %v1251_v37  ;;  %v2388_v53 = vadd.f32 %v2387_v41, %v7559_v2  ;;  %v2431_v2 = vmul.f32 %v7607_v13, %v7607_v13  ;;  %v1258_v17 = vmul.f32 %v9505_v40, %v9505_v40 }
 0x43f   : > { %v4691_v44 = vpop.f32.mrf.mxu3  ;;  %v4469_v43 = vadd.f32 %v4413_v63, %v4168_v4  ;;  %v1213_v4 = vadd.f32 %v1212_v32, %v7407_v59  ;;  %v2457_v38 = vadd.f32 %v2456_v16, %v2426_v50  ;;  %v1255_v50 = vmul.f32 %v7431_v39, %v7431_v39  ;;  %v9529_v59 = vld [vmem:[#allocation101_spill] sm:$0xff] }
 0x440   : > { %v8249_v21 = vpop.f32.mrf.mxu0  ;;  %v1283_v63 = vadd.f32 %v1282_v31, %v1252_v27  ;;  %v2389_v16 = vadd.f32 %v2388_v53, %v7567_v29  ;;  %v4800_v3 = vmul.f32 %v9532_v20, %v9532_v20 }
 0x441   : > { %v8247_v33 = vadd.f32 %v4691_v44, %v4469_v43  ;;  %v1214_v44 = vadd.f32 %v1213_v4, %v7415_v6  ;;  %v2458_v37 = vadd.f32 %v2457_v38, %v2427_v7  ;;  %v2429_v43 = vmul.f32 %v7575_v12, %v7575_v12 }
 0x442   : > { %v8251_v8 = vpop.f32.mrf.mxu1  ;;  %v1284_v52 = vadd.f32 %v1283_v63, %v1253_v11  ;;  %v2430_v4 = vmul.f32 %v7599_v10, %v7599_v10  ;;  %v1256_v11 = vmul.f32 %v7439_v9, %v7439_v9  ;;  %v3609_v38 = vmul.f32 %v7771_v46, %v7771_v46 }
 0x443   : > { %v1215_v32 = vadd.f32 %v1214_v44, %v7423_v19  ;;  %v2459_v31 = vadd.f32 %v2458_v37, %v2428_v23  ;;  %v2390_v63 = vadd.f32 %v2389_v16, %v7575_v12  ;;  %v1257_v16 = vmul.f32 %v7447_v0, %v7447_v0 }
 0x444   : > { %v1285_v7 = vadd.f32 %v1284_v52, %v1254_v15  ;;  %v3608_v52 = vmul.f32 %v7763_v28, %v7763_v28  ;;  %v2432_v12 = vmul.f32 %v7615_v62, %v7615_v62 }
 0x445   : > { %v1216_v41 = vadd.f32 %v1215_v32, %v7431_v39  ;;  %v2460_v44 = vadd.f32 %v2459_v31, %v2429_v43  ;;  %v3610_v32 = vmul.f32 %v7779_v1, %v7779_v1  ;;  %v2391_v43 = vadd.f32 %v2390_v63, %v7599_v10  ;;  %v9510_v39 = vld [vmem:[#allocation54_spill] sm:$0xff] }
 0x446   : > { %v8268_v18 = vpop.f32.mrf.mxu2  ;;  %v1286_v37 = vadd.f32 %v1285_v7, %v1255_v50  ;;  %v3570_v50 = vadd.f32 %v7771_v46, %v7763_v28  ;;  %v3640_v7 = vadd.f32 %v3609_v38, %v3608_v52 }
 0x447   : > { %v8270_v27 = vpop.f32.mrf.mxu3  ;;  %v1217_v15 = vadd.f32 %v1216_v41, %v7439_v9  ;;  %v2461_v31 = vadd.f32 %v2460_v44, %v2430_v4  ;;  %v9504_v41 = vld [vmem:[#allocation72_spill] sm:$0xff]  ;;  %v2392_v49 = vadd.f32 %v2391_v43, %v7607_v13  ;;  %v2433_v4 = vmul.f32 %v9506_v5, %v9506_v5 }
 0x448   : > { %v8283_v53 = vpop.f32.mrf.mxu0  ;;  %v1287_v29 = vadd.f32 %v1286_v37, %v1256_v11  ;;  %v3611_v58 = vmul.f32 %v9504_v41, %v9504_v41  ;;  %v3571_v11 = vadd.f32 %v3570_v50, %v7779_v1  ;;  %v3641_v44 = vadd.f32 %v3640_v7, %v3610_v32  ;;  %v9507_v37 = vld [vmem:[#allocation73_spill] sm:$0xff]  ;;  %v9509_v32 = vld [vmem:[#allocation74_spill] sm:$0xff] }
 0x449   : > { %v2462_v30 = vadd.f32 %v2461_v31, %v2431_v2  ;;  %v1218_v63 = vadd.f32 %v1217_v15, %v7447_v0  ;;  %v3612_v38 = vmul.f32 %v9507_v37, %v9507_v37  ;;  %v2393_v10 = vadd.f32 %v2392_v49, %v7615_v62  ;;  %v9508_v2 = vld [vmem:[#allocation53_spill] sm:$0xff] }
 0x44a   : > { %v8285_v23 = vpop.f32.mrf.mxu1  ;;  %v1288_v28 = vadd.f32 %v1287_v29, %v1257_v16  ;;  %v2434_v31 = vmul.f32 %v9508_v2, %v9508_v2  ;;  %v3572_v15 = vadd.f32 %v3571_v11, %v9504_v41  ;;  %v3642_v50 = vadd.f32 %v3641_v44, %v3611_v58  ;;  %v9512_v58 = vld [vmem:[#allocation75_spill] sm:$0xff] }
 0x44b   : > { %v2463_v43 = vadd.f32 %v2462_v30, %v2432_v12  ;;  %v1219_v13 = vadd.f32 %v1218_v63, %v9505_v40  ;;  %v3613_v7 = vmul.f32 %v9509_v32, %v9509_v32  ;;  %v2394_v0 = vadd.f32 %v2393_v10, %v9506_v5  ;;  %v9511_v12 = vld [vmem:[#allocation34_spill] sm:$0xff]  ;;  %v9514_v41 = vld [vmem:[#allocation35_spill] sm:$0xff]  ;;  %v9515_v40 = vld [vmem:[#allocation76_spill] sm:$0xff] }
 0x44c   : > { %v1289_v1 = vadd.f32 %v1288_v28, %v1258_v17  ;;  %v2435_v29 = vmul.f32 %v9510_v39, %v9510_v39  ;;  %v3573_v63 = vadd.f32 %v3572_v15, %v9507_v37  ;;  %v3643_v11 = vadd.f32 %v3642_v50, %v3612_v38 }
 0x44d   : > { %v2464_v9 = vadd.f32 %v2463_v43, %v2433_v4  ;;  %v1220_v16 = vadd.f32 %v1219_v13, %v9511_v12  ;;  %v3614_v44 = vmul.f32 %v9512_v58, %v9512_v58  ;;  %v1259_v17 = vmul.f32 %v9511_v12, %v9511_v12  ;;  %v9513_v4 = vld [vmem:[#allocation55_spill] sm:$0xff]  ;;  %v9516_v12 = vld [vmem:[#allocation56_spill] sm:$0xff] }
 0x44e   : > { %v8310_v52 = vpop.f32.mrf.mxu2  ;;  %v2395_v10 = vadd.f32 %v2394_v0, %v9508_v2  ;;  %v2436_v43 = vmul.f32 %v9513_v4, %v9513_v4  ;;  %v3574_v62 = vadd.f32 %v3573_v63, %v9509_v32  ;;  %v3644_v13 = vadd.f32 %v3643_v11, %v3613_v7  ;;  %v9517_v2 = vld [vmem:[#allocation77_spill] sm:$0xff]  ;;  %v9518_v32 = vld [vmem:[#allocation36_spill] sm:$0xff] }
 0x44f   : > { %v8312_v46 = vpop.f32.mrf.mxu3  ;;  %v2465_v28 = vadd.f32 %v2464_v9, %v2434_v31  ;;  %v1221_v5 = vadd.f32 %v1220_v16, %v9514_v41  ;;  %v3615_v38 = vmul.f32 %v9515_v40, %v9515_v40  ;;  %v1260_v15 = vmul.f32 %v9514_v41, %v9514_v41 }
 0x450   : > { %v8324_v49 = vpop.f32.mrf.mxu0  ;;  %v2396_v50 = vadd.f32 %v2395_v10, %v9510_v39  ;;  %v2437_v9 = vmul.f32 %v9516_v12, %v9516_v12  ;;  %v3575_v0 = vadd.f32 %v3574_v62, %v9512_v58  ;;  %v3645_v31 = vadd.f32 %v3644_v13, %v3614_v44  ;;  %v9521_v13 = vld [vmem:[#allocation78_spill] sm:$0xff] }
 0x451   : > { %v2466_v37 = vadd.f32 %v2465_v28, %v2435_v29  ;;  %v3616_v16 = vmul.f32 %v9517_v2, %v9517_v2  ;;  %v1290_v11 = vadd.f32 %v1289_v1, %v1259_v17  ;;  %v8354_v19 = vadd.f32 %v1221_v5, %v9518_v32  ;;  %v9520_v28 = vld [vmem:[#allocation57_spill] sm:$0xff] }
 0x452   : > { %v8326_v30 = vpop.f32.mrf.mxu1  ;;  %v2397_v10 = vadd.f32 %v2396_v50, %v9513_v4  ;;  %v2438_v39 = vmul.f32 %v9520_v28, %v9520_v28  ;;  %v3576_v62 = vadd.f32 %v3575_v0, %v9515_v40  ;;  %v3646_v44 = vadd.f32 %v3645_v31, %v3615_v38  ;;  %v9523_v50 = vld [vmem:[#allocation58_spill] sm:$0xff]  ;;  %v9524_v0 = vld [vmem:[#allocation79_spill] sm:$0xff] }
 0x453   : > { %9519 = vst [vmem:[#allocation116_spill] sm:$0xff] %v8354_v19  ;;  %v2467_v29 = vadd.f32 %v2466_v37, %v2436_v43  ;;  %v3617_v58 = vmul.f32 %v9521_v13, %v9521_v13  ;;  %v8362_v41 = vadd.f32 %v1290_v11, %v1260_v15  ;;  %v2439_v37 = vmul.f32 %v9523_v50, %v9523_v50  ;;  %v9526_v11 = vld [vmem:[#allocation102_spill] sm:$0xff] }
 0x454   : > { %v2398_v6 = vadd.f32 %v2397_v10, %v9516_v12  ;;  %v3577_v43 = vadd.f32 %v3576_v62, %v9517_v2  ;;  %v3647_v4 = vadd.f32 %v3646_v44, %v3616_v16  ;;  %v3618_v38 = vmul.f32 %v9524_v0, %v9524_v0  ;;  %v9527_v62 = vld [vmem:[#allocation80_spill] sm:$0xff]  ;;  %v9528_v2 = vld [vmem:[#allocation59_spill] sm:$0xff] }
 0x455   : > { %9522 = vst [vmem:[#allocation117_spill] sm:$0xff] %v8362_v41  ;;  %v2468_v1 = vadd.f32 %v2467_v29, %v2437_v9  ;;  %v8377_v15 = vmul.f32 %v9518_v32, %v9518_v32  ;;  %v4798_v10 = vmul.f32 %v9526_v11, %v9526_v11  ;;  %v3619_v16 = vmul.f32 %v9527_v62, %v9527_v62 }
 0x456   : > { %v8349_v63 = vpop.f32.mrf.mxu2  ;;  %v2399_v9 = vadd.f32 %v2398_v6, %v9520_v28  ;;  %v3578_v40 = vadd.f32 %v3577_v43, %v9521_v13  ;;  %v3648_v12 = vadd.f32 %v3647_v4, %v3617_v58  ;;  %v2440_v31 = vmul.f32 %v9528_v2, %v9528_v2  ;;  %v9531_v43 = vld [vmem:[#allocation81_spill] sm:$0xff] }
 0x457   : > { %v8351_v7 = vpop.f32.mrf.mxu3  ;;  %9525 = vst [vmem:[#allocation118_spill] sm:$0xff] %v8377_v15  ;;  %v2469_v29 = vadd.f32 %v2468_v1, %v2438_v39  ;;  %v4797_v32 = vmul.f32 %v9529_v59, %v9529_v59  ;;  %v4799_v6 = vmul.f32 %v9530_v47, %v9530_v47  ;;  %v3620_v58 = vmul.f32 %v9531_v43, %v9531_v43  ;;  %v9561_v15 = vld [vmem:[#allocation92_spill] sm:$0xff] }
 0x458   : > { %v8365_v17 = vpop.f32.mrf.mxu0  ;;  %v2400_v44 = vadd.f32 %v2399_v9, %v9523_v50  ;;  %v3579_v39 = vadd.f32 %v3578_v40, %v9524_v0  ;;  %v3649_v1 = vadd.f32 %v3648_v12, %v3618_v38  ;;  %v4759_v50 = vadd.f32 %v9526_v11, %v9529_v59 }
 0x459   : > { %v2470_v28 = vadd.f32 %v2469_v29, %v2439_v37  ;;  %v4829_v34 = vadd.f32 %v4798_v10, %v4797_v32  ;;  %v9533_v37 = vld [vmem:[#allocation60_spill] sm:$0xff]  ;;  %v9534_v29 = vld [vmem:[#allocation82_spill] sm:$0xff]  ;;  %v4809_v19 = vmul.f32 %v9556_v54, %v9556_v54 }
 0x45a   : > { %v8367_v5 = vpop.f32.mrf.mxu1  ;;  %v2401_v9 = vadd.f32 %v2400_v44, %v9528_v2  ;;  %v2441_v40 = vmul.f32 %v9533_v37, %v9533_v37  ;;  %v3580_v12 = vadd.f32 %v3579_v39, %v9527_v62  ;;  %v3650_v38 = vadd.f32 %v3649_v1, %v3619_v16  ;;  %v9535_v2 = vld [vmem:[#allocation105_spill] sm:$0xff]  ;;  %v9536_v16 = vld [vmem:[#allocation83_spill] sm:$0xff] }
 0x45b   : > { %v3621_v0 = vmul.f32 %v9534_v29, %v9534_v29  ;;  %v2471_v57 = vadd.f32 %v2470_v28, %v2440_v31  ;;  %v4760_v48 = vadd.f32 %v4759_v50, %v9530_v47  ;;  %v4830_v44 = vadd.f32 %v4829_v34, %v4799_v6  ;;  %v9537_v62 = vld [vmem:[#allocation61_spill] sm:$0xff]  ;;  %v9538_v31 = vld [vmem:[#allocation106_spill] sm:$0xff] }
 0x45c   : > { %v4801_v11 = vmul.f32 %v9535_v2, %v9535_v2  ;;  %v2402_v59 = vadd.f32 %v2401_v9, %v9533_v37  ;;  %v3581_v60 = vadd.f32 %v3580_v12, %v9531_v43  ;;  %v3651_v39 = vadd.f32 %v3650_v38, %v3620_v58  ;;  %v9539_v9 = vld [vmem:[#allocation84_spill] sm:$0xff]  ;;  %v9540_v37 = vld [vmem:[#allocation107_spill] sm:$0xff] }
 0x45d   : > { %v3622_v1 = vmul.f32 %v9536_v16, %v9536_v16  ;;  %v2442_v28 = vmul.f32 %v9537_v62, %v9537_v62  ;;  %v4761_v34 = vadd.f32 %v4760_v48, %v9532_v20  ;;  %v4831_v50 = vadd.f32 %v4830_v44, %v4800_v3  ;;  %v9541_v48 = vld [vmem:[#allocation62_spill] sm:$0xff] }
 0x45e   : > { %v8395_v4 = vpop.f32.mrf.mxu2  ;;  %v4802_v6 = vmul.f32 %v9538_v31, %v9538_v31  ;;  %v2472_v47 = vadd.f32 %v2471_v57, %v2441_v40  ;;  %v3582_v45 = vadd.f32 %v3581_v60, %v9534_v29  ;;  %v3652_v35 = vadd.f32 %v3651_v39, %v3621_v0  ;;  %v9542_v40 = vld [vmem:[#allocation85_spill] sm:$0xff] }
 0x45f   : > { %v8397_v13 = vpop.f32.mrf.mxu3  ;;  %v3623_v12 = vmul.f32 %v9539_v9, %v9539_v9  ;;  %v2403_v58 = vadd.f32 %v2402_v59, %v9537_v62  ;;  %v4762_v38 = vadd.f32 %v4761_v34, %v9535_v2  ;;  %v4832_v43 = vadd.f32 %v4831_v50, %v4801_v11  ;;  %v9543_v50 = vld [vmem:[#allocation108_spill] sm:$0xff] }
 0x460   : > { %v8412_v32 = vpop.f32.mrf.mxu0  ;;  %v4803_v25 = vmul.f32 %v9540_v37, %v9540_v37  ;;  %v2443_v3 = vmul.f32 %v9541_v48, %v9541_v48  ;;  %v3583_v44 = vadd.f32 %v3582_v45, %v9536_v16  ;;  %v3653_v57 = vadd.f32 %v3652_v35, %v3622_v1  ;;  %v9544_v35 = vld [vmem:[#allocation86_spill] sm:$0xff]  ;;  %v9545_v16 = vld [vmem:[#allocation63_spill] sm:$0xff] }
 0x461   : > { %v3624_v60 = vmul.f32 %v9542_v40, %v9542_v40  ;;  %v2473_v59 = vadd.f32 %v2472_v47, %v2442_v28  ;;  %v4763_v34 = vadd.f32 %v4762_v38, %v9538_v31  ;;  %v4833_v11 = vadd.f32 %v4832_v43, %v4802_v6  ;;  %v9546_v28 = vld [vmem:[#allocation109_spill] sm:$0xff] }
 0x462   : > { %v8414_v10 = vpop.f32.mrf.mxu1  ;;  %v4804_v2 = vmul.f32 %v9543_v50, %v9543_v50  ;;  %v2404_v20 = vadd.f32 %v2403_v58, %v9541_v48  ;;  %v3584_v29 = vadd.f32 %v3583_v44, %v9539_v9  ;;  %v3654_v45 = vadd.f32 %v3653_v57, %v3623_v12  ;;  %v9547_v57 = vld [vmem:[#allocation87_spill] sm:$0xff] }
 0x463   : > { %v3625_v1 = vmul.f32 %v9544_v35, %v9544_v35  ;;  %v2444_v62 = vmul.f32 %v9545_v16, %v9545_v16  ;;  %v4764_v61 = vadd.f32 %v4763_v34, %v9540_v37  ;;  %v4834_v47 = vadd.f32 %v4833_v11, %v4803_v25  ;;  %v9548_v25 = vld [vmem:[#allocation110_spill] sm:$0xff]  ;;  %v9549_v37 = vld [vmem:[#allocation64_spill] sm:$0xff] }
 0x464   : > { %v4805_v43 = vmul.f32 %v9546_v28, %v9546_v28  ;;  %v2474_v58 = vadd.f32 %v2473_v59, %v2443_v3  ;;  %v3585_v44 = vadd.f32 %v3584_v29, %v9542_v40  ;;  %v3655_v12 = vadd.f32 %v3654_v45, %v3624_v60  ;;  %v9550_v59 = vld [vmem:[#allocation88_spill] sm:$0xff] }
 0x465   : > { %v3626_v31 = vmul.f32 %v9547_v57, %v9547_v57  ;;  %v2405_v9 = vadd.f32 %v2404_v20, %v9545_v16  ;;  %v4765_v48 = vadd.f32 %v4764_v61, %v9543_v50  ;;  %v4835_v34 = vadd.f32 %v4834_v47, %v4804_v2  ;;  %v9551_v20 = vld [vmem:[#allocation111_spill] sm:$0xff]  ;;  %v9552_v16 = vld [vmem:[#allocation89_spill] sm:$0xff] }
 0x466   : > { %v8437_v0 = vpop.f32.mrf.mxu2  ;;  %v4806_v11 = vmul.f32 %v9548_v25, %v9548_v25  ;;  %v2445_v51 = vmul.f32 %v9549_v37, %v9549_v37  ;;  %v3586_v42 = vadd.f32 %v3585_v44, %v9544_v35  ;;  %v3656_v3 = vadd.f32 %v3655_v12, %v3625_v1  ;;  %v9553_v12 = vld [vmem:[#allocation65_spill] sm:$0xff] }
 0x467   : > { %v8439_v39 = vpop.f32.mrf.mxu3  ;;  %v3627_v29 = vmul.f32 %v9550_v59, %v9550_v59  ;;  %v2475_v60 = vadd.f32 %v2474_v58, %v2444_v62  ;;  %v4766_v45 = vadd.f32 %v4765_v48, %v9546_v28  ;;  %v4836_v40 = vadd.f32 %v4835_v34, %v4805_v43  ;;  %v9554_v58 = vld [vmem:[#allocation112_spill] sm:$0xff] }
 0x468   : > { %v8453_v6 = vpop.f32.mrf.mxu0  ;;  %v4807_v61 = vmul.f32 %v9551_v20, %v9551_v20  ;;  %v2406_v2 = vadd.f32 %v2405_v9, %v9549_v37  ;;  %v3587_v47 = vadd.f32 %v3586_v42, %v9547_v57  ;;  %v3657_v50 = vadd.f32 %v3656_v3, %v3626_v31  ;;  %v9555_v3 = vld [vmem:[#allocation90_spill] sm:$0xff] }
 0x469   : > { %v3628_v24 = vmul.f32 %v9552_v16, %v9552_v16  ;;  %v2446_v62 = vmul.f32 %v9553_v12, %v9553_v12  ;;  %v4767_v48 = vadd.f32 %v4766_v45, %v9548_v25  ;;  %v4837_v43 = vadd.f32 %v4836_v40, %v4806_v11  ;;  %v9557_v11 = vld [vmem:[#allocation66_spill] sm:$0xff]  ;;  %v9560_v25 = vld [vmem:[#allocation67_spill] sm:$0xff] }
 0x46a   : > { %v8455_v38 = vpop.f32.mrf.mxu1  ;;  %v4808_v34 = vmul.f32 %v9554_v58, %v9554_v58  ;;  %v2476_v9 = vadd.f32 %v2475_v60, %v2445_v51  ;;  %v3588_v42 = vadd.f32 %v3587_v47, %v9550_v59  ;;  %v3658_v31 = vadd.f32 %v3657_v50, %v3627_v29  ;;  %v9558_v60 = vld [vmem:[#allocation91_spill] sm:$0xff] }
 0x46b   : > { %v3629_v28 = vmul.f32 %v9555_v3, %v9555_v3  ;;  %v2407_v57 = vadd.f32 %v2406_v2, %v9553_v12  ;;  %v4768_v35 = vadd.f32 %v4767_v48, %v9551_v20  ;;  %v4838_v37 = vadd.f32 %v4837_v43, %v4807_v61  ;;  %v9559_v43 = vld [vmem:[#allocation114_spill] sm:$0xff] }
 0x46c   : > { %v2447_v51 = vmul.f32 %v9557_v11, %v9557_v11  ;;  %v3589_v50 = vadd.f32 %v3588_v42, %v9552_v16  ;;  %v3659_v29 = vadd.f32 %v3658_v31, %v3628_v24  ;;  %v3630_v47 = vmul.f32 %v9558_v60, %v9558_v60 }
 0x46d   : > { %v2477_v2 = vadd.f32 %v2476_v9, %v2446_v62  ;;  %v4769_v48 = vadd.f32 %v4768_v35, %v9554_v58  ;;  %v4839_v61 = vadd.f32 %v4838_v37, %v4808_v34  ;;  %v4810_v20 = vmul.f32 %v9559_v43, %v9559_v43  ;;  %v9562_v58 = vld [vmem:[#allocation93_spill] sm:$0xff] }
 0x46e   : > { %v8476_v44 = vpop.f32.mrf.mxu2  ;;  %v2448_v59 = vmul.f32 %v9560_v25, %v9560_v25  ;;  %v3590_v12 = vadd.f32 %v3589_v50, %v9555_v3  ;;  %v3660_v41 = vadd.f32 %v3659_v29, %v3629_v28  ;;  %v3631_v42 = vmul.f32 %v9561_v15, %v9561_v15 }
 0x46f   : > { %v8478_v1 = vpop.f32.mrf.mxu3  ;;  %v2408_v24 = vadd.f32 %v2407_v57, %v9557_v11  ;;  %v4770_v31 = vadd.f32 %v4769_v48, %v9556_v54  ;;  %v4840_v62 = vadd.f32 %v4839_v61, %v4809_v19  ;;  %v4811_v37 = vmul.f32 %v8135_v55, %v8135_v55 }
 0x470   : > { %v8492_v45 = vpop.f32.mrf.mxu0  ;;  %v2478_v35 = vadd.f32 %v2477_v2, %v2447_v51  ;;  %v3591_v34 = vadd.f32 %v3590_v12, %v9558_v60  ;;  %v3661_v9 = vadd.f32 %v3660_v41, %v3630_v47  ;;  %v3632_v16 = vmul.f32 %v9562_v58, %v9562_v58  ;;  %v9563_v47 = vld [vmem:[#allocation94_spill] sm:$0xff] }
 0x471   : > { %v2409_v29 = vadd.f32 %v2408_v24, %v9560_v25  ;;  %v4771_v57 = vadd.f32 %v4770_v31, %v9559_v43  ;;  %v4841_v48 = vadd.f32 %v4840_v62, %v4810_v20  ;;  %v4812_v19 = vmul.f32 %v8149_v14, %v8149_v14  ;;  %v9564_v62 = vld [vmem:[#allocation68_spill] sm:$0xff] }
 0x472   : > { %v8494_v40 = vpop.f32.mrf.mxu1  ;;  %v2479_v61 = vadd.f32 %v2478_v35, %v2448_v59  ;;  %v3592_v51 = vadd.f32 %v3591_v34, %v9561_v15  ;;  %v3662_v12 = vadd.f32 %v3661_v9, %v3631_v42  ;;  %v4171_v41 = vadd.f32 %v8251_v8, %v8249_v21  ;;  %v9565_v8 = vld [vmem:[#allocation95_spill] sm:$0xff] }
 0x473   : > { %v3633_v2 = vmul.f32 %v9563_v47, %v9563_v47  ;;  %v4772_v54 = vadd.f32 %v4771_v57, %v8135_v55  ;;  %v4842_v60 = vadd.f32 %v4841_v48, %v4811_v37  ;;  %v4813_v24 = vmul.f32 %v8163_v56, %v8163_v56 }
 0x474   : > { %v2449_v59 = vmul.f32 %v9564_v62, %v9564_v62  ;;  %v3593_v42 = vadd.f32 %v3592_v51, %v9562_v58  ;;  %v3663_v35 = vadd.f32 %v3662_v12, %v3632_v16  ;;  %v4174_v21 = vadd.f32 %v8285_v23, %v8283_v53 }
 0x475   : > { %v3634_v34 = vmul.f32 %v9565_v8, %v9565_v8  ;;  %v4773_v37 = vadd.f32 %v4772_v54, %v8149_v14  ;;  %v4843_v9 = vadd.f32 %v4842_v60, %v4812_v19  ;;  %v4814_v57 = vmul.f32 %v8177_v36, %v8177_v36 }
 0x476   : > { %v8516_v50 = vpop.f32.mrf.mxu2  ;;  %v8545_v48 = vadd.f32 %v2409_v29, %v9564_v62  ;;  %v3594_v55 = vadd.f32 %v3593_v42, %v9563_v47  ;;  %v4470_v51 = vadd.f32 %v8268_v18, %v4171_v41  ;;  %v4177_v16 = vadd.f32 %v8326_v30, %v8324_v49  ;;  %v9566_v30 = vld [vmem:[#allocation96_spill] sm:$0xff] }
 0x477   : > { %v8518_v28 = vpop.f32.mrf.mxu3  ;;  %v3664_v53 = vadd.f32 %v3663_v35, %v3633_v2  ;;  %v4774_v23 = vadd.f32 %v4773_v37, %v8163_v56  ;;  %v4844_v12 = vadd.f32 %v4843_v9, %v4813_v24  ;;  %v4815_v54 = vmul.f32 %v8193_v26, %v8193_v26 }
 0x478   : > { %v8532_v20 = vpop.f32.mrf.mxu0  ;;  %v8554_v60 = vadd.f32 %v2479_v61, %v2449_v59  ;;  %v3595_v19 = vadd.f32 %v3594_v55, %v9565_v8  ;;  %v4471_v29 = vadd.f32 %v8310_v52, %v4174_v21  ;;  %v4180_v42 = vadd.f32 %v8367_v5, %v8365_v17  ;;  %v9567_v59 = vld [vmem:[#allocation97_spill] sm:$0xff] }
 0x479   : > { %v3665_v49 = vadd.f32 %v3664_v53, %v3634_v34  ;;  %v3635_v2 = vmul.f32 %v9566_v30, %v9566_v30  ;;  %v4775_v24 = vadd.f32 %v4774_v23, %v8177_v36  ;;  %v4845_v35 = vadd.f32 %v4844_v12, %v4814_v57 }
 0x47a   : > { %v4191_v31 = vpop.f32.mrf.mxu1  ;;  %v4816_v61 = vmul.f32 %v8221_v22, %v8221_v22  ;;  %v8568_v55 = vadd.f32 %v8270_v27, %v4470_v51  ;;  %v4472_v52 = vadd.f32 %v8349_v63, %v4177_v16  ;;  %v4183_v17 = vadd.f32 %v8414_v10, %v8412_v32  ;;  %v9568_v16 = vld [vmem:[#allocation98_spill] sm:$0xff] }
 0x47b   : > { %v3596_v5 = vadd.f32 %v3595_v19, %v9566_v30  ;;  %v3636_v21 = vmul.f32 %v9567_v59, %v9567_v59  ;;  %v4776_v34 = vadd.f32 %v4775_v24, %v8193_v26  ;;  %v4846_v37 = vadd.f32 %v4845_v35, %v4815_v54 }
 0x47c   : > { %v4817_v53 = vmul.f32 %v8247_v33, %v8247_v33  ;;  %v8580_v27 = vadd.f32 %v8312_v46, %v4471_v29  ;;  %v4473_v63 = vadd.f32 %v8395_v4, %v4180_v42  ;;  %v4186_v32 = vadd.f32 %v8455_v38, %v8453_v6 }
 0x47d   : > { %v3666_v10 = vadd.f32 %v3665_v49, %v3635_v2  ;;  %v3597_v51 = vadd.f32 %v3596_v5, %v9567_v59  ;;  %v3637_v23 = vmul.f32 %v9568_v16, %v9568_v16  ;;  %v4777_v12 = vadd.f32 %v4776_v34, %v8221_v22 }
 0x47e   : > { %v4437_v18 = vpop.f32.mrf.mxu2  ;;  %v4847_v54 = vadd.f32 %v4846_v37, %v4816_v61  ;;  %v4818_v19 = vmul.f32 %v8568_v55, %v8568_v55  ;;  %v8592_v46 = vadd.f32 %v8351_v7, %v4472_v52  ;;  %v4474_v4 = vadd.f32 %v8437_v0, %v4183_v17  ;;  %v9569_v52 = vld [vmem:[#allocation99_spill] sm:$0xff] }
 0x47f   : > { %v8560_v41 = vpop.f32.mrf.mxu3  ;;  %v3667_v29 = vadd.f32 %v3666_v10, %v3636_v21  ;;  %v3598_v6 = vadd.f32 %v3597_v51, %v9568_v16  ;;  %v4778_v38 = vadd.f32 %v4777_v12, %v8247_v33  ;;  %v4189_v42 = vadd.f32 %v8494_v40, %v8492_v45 }
 0x480   : > { %v3982_v9 = vpop.f32.mrf.mxu0  ;;  %v4848_v49 = vadd.f32 %v4847_v54, %v4817_v53  ;;  %v4819_v2 = vmul.f32 %v8580_v27, %v8580_v27  ;;  %v8602_v24 = vadd.f32 %v8397_v13, %v4473_v63  ;;  %v4475_v7 = vadd.f32 %v8476_v44, %v4186_v32  ;;  %v9570_v44 = vld [vmem:[#allocation100_spill] sm:$0xff] }
 0x481   : > { %v3668_v0 = vadd.f32 %v3667_v29, %v3637_v23  ;;  %v3638_v17 = vmul.f32 %v9569_v52, %v9569_v52  ;;  %v4779_v5 = vadd.f32 %v4778_v38, %v8568_v55  ;;  %v4192_v21 = vadd.f32 %v4191_v31, %v8532_v20  ;;  %v9571_v29 = vld [vmem:[#allocation118_spill] sm:$0xff] }
 0x482   : > { %v4194_v57 = vpop.f32.mrf.mxu1  ;;  %v3599_v45 = vadd.f32 %v3598_v6, %v9569_v52  ;;  %v4849_v40 = vadd.f32 %v4848_v49, %v4818_v19  ;;  %v4820_v34 = vmul.f32 %v8592_v46, %v8592_v46  ;;  %v8613_v13 = vadd.f32 %v8439_v39, %v4474_v4  ;;  %v9572_v6 = vld [vmem:[#allocation117_spill] sm:$0xff] }
 0x483   : > { %v3639_v37 = vmul.f32 %v9570_v44, %v9570_v44  ;;  %v4780_v53 = vadd.f32 %v4779_v5, %v8580_v27  ;;  %v4476_v63 = vadd.f32 %v8516_v50, %v4189_v42  ;;  %v4195_v32 = vadd.f32 %v4194_v57, %v3982_v9 }
 0x484   : > { %v3600_v20 = vadd.f32 %v3599_v45, %v9570_v44  ;;  %v4850_v31 = vadd.f32 %v4849_v40, %v4819_v2  ;;  %v4821_v23 = vmul.f32 %v8602_v24, %v8602_v24  ;;  %v8623_v12 = vadd.f32 %v8478_v1, %v4475_v7 }
 0x485   : > { %v3669_v39 = vadd.f32 %v3668_v0, %v3638_v17  ;;  %v4781_v54 = vadd.f32 %v4780_v53, %v8592_v46  ;;  %v4477_v19 = vadd.f32 %v4437_v18, %v4192_v21  ;;  %v1292_v50 = vadd.f32 %v9572_v6, %v9571_v29 }
 0x486   : > { %v4440_v35 = vpop.f32.mrf.mxu2  ;;  %v2411_v9 = vrot.slane %v8545_v48, 4  ;;  %v4851_v57 = vadd.f32 %v4850_v31, %v4820_v34  ;;  %v4822_v38 = vmul.f32 %v8613_v13, %v8613_v13  ;;  %v8633_v1 = vadd.f32 %v8518_v28, %v4476_v63 }
 0x487   : > { %v4718_v61 = vpop.f32.mrf.mxu3  ;;  %v3670_v42 = vadd.f32 %v3669_v39, %v3639_v37  ;;  %v4782_v49 = vadd.f32 %v4781_v54, %v8602_v24  ;;  %v4478_v2 = vadd.f32 %v4440_v35, %v4195_v32  ;;  %v2481_v7 = vrot.slane %v8554_v60, 4 }
 0x488   : > { %v3985_v10 = vpop.f32.mrf.mxu0  ;;  %v3601_v18 = vrot.slane %v3600_v20, 4  ;;  %v4852_v0 = vadd.f32 %v4851_v57, %v4821_v23  ;;  %v4823_v17 = vmul.f32 %v8623_v12, %v8623_v12  ;;  %v8640_v40 = vadd.f32 %v8560_v41, %v4477_v19  ;;  %v9575_v23 = vld [vmem:[#allocation116_spill] sm:$0xff] }
 0x489   : > { %v4783_v45 = vadd.f32 %v4782_v49, %v8613_v13  ;;  %v1293_v37 = vrot.slane %v1292_v50, 4  ;;  %v2412_v28 = vadd.f32 %v2411_v9, %v8545_v48  ;;  %v3671_v35 = vrot.slane %v3670_v42, 4 }
 0x48a   : > { %v4197_v51 = vpop.f32.mrf.mxu1  ;;  %9573 = vst [vmem:[#allocation90_spill] sm:$0xff] %v8640_v40  ;;  %v4853_v53 = vadd.f32 %v4852_v0, %v4822_v38  ;;  %v4824_v32 = vmul.f32 %v8633_v1, %v8633_v1  ;;  %v9576_v39 = vrot.slane %v9575_v23, 4  ;;  %v2482_v54 = vadd.f32 %v2481_v7, %v8554_v60 }
 0x48b   : > { %v4198_v4 = vadd.f32 %v4197_v51, %v3985_v10  ;;  %v4784_v63 = vadd.f32 %v4783_v45, %v8623_v12  ;;  %v8646_v10 = vadd.f32 %v4718_v61, %v4478_v2  ;;  %v3602_v19 = vadd.f32 %v3601_v18, %v3600_v20 }
 0x48c   : > { %v1224_v41 = vadd.f32 %v9576_v39, %v9575_v23  ;;  %v4825_v29 = vmul.f32 %v8640_v40, %v8640_v40  ;;  %v1294_v61 = vadd.f32 %v1293_v37, %v1292_v50  ;;  %v2413_v57 = vrot.slane %v2412_v28, 2 }
 0x48d   : > { %9574 = vst [vmem:[#allocation66_spill] sm:$0xff] %v8646_v10  ;;  %v4785_v48 = vadd.f32 %v4784_v63, %v8633_v1  ;;  %v3672_v38 = vadd.f32 %v3671_v35, %v3670_v42  ;;  %v4826_v0 = vmul.f32 %v8646_v10, %v8646_v10  ;;  %v2483_v20 = vrot.slane %v2482_v54, 2 }
 0x48e   : > { %v4443_v5 = vpop.f32.mrf.mxu2  ;;  %v1225_v60 = vrot.slane %v1224_v41, 2  ;;  %v3603_v7 = vrot.slane %v3602_v19, 2  ;;  %v2414_v42 = vadd.f32 %v2413_v57, %v2412_v28 }
 0x48f   : > { %v4721_v21 = vpop.f32.mrf.mxu3  ;;  %v4479_v34 = vadd.f32 %v4443_v5, %v4198_v4  ;;  %v4854_v4 = vadd.f32 %v4853_v53, %v4823_v17  ;;  %v4786_v2 = vadd.f32 %v4785_v48, %v8640_v40  ;;  %v3673_v37 = vrot.slane %v3672_v38, 2 }
 0x490   : > { %v3988_v51 = vpop.f32.mrf.mxu0 }
 0x491   : > { %v8655_v6 = vadd.f32 %v4721_v21, %v4479_v34  ;;  %v4855_v49 = vadd.f32 %v4854_v4, %v4824_v32  ;;  %v4787_v45 = vadd.f32 %v4786_v2, %v8646_v10  ;;  %v1295_v34 = vrot.slane %v1294_v61, 2 }
 0x492   : > { %v4200_v31 = vpop.f32.mrf.mxu1  ;;  %v1226_v32 = vadd.f32 %v1225_v60, %v1224_v41 }
 0x493   : > { %v4201_v9 = vadd.f32 %v4200_v31, %v3988_v51  ;;  %v4856_v5 = vadd.f32 %v4855_v49, %v4825_v29  ;;  %v4827_v21 = vmul.f32 %v8655_v6, %v8655_v6  ;;  %v4788_v35 = vadd.f32 %v4787_v45, %v8655_v6 }
 0x494   : > { %v2484_v51 = vadd.f32 %v2483_v20, %v2482_v54  ;;  %v3604_v31 = vadd.f32 %v3603_v7, %v3602_v19  ;;  %v1296_v48 = vadd.f32 %v1295_v34, %v1294_v61  ;;  %v2415_v29 = vrot.slane %v2414_v42, 1 }
 0x495   : > { %v4857_v53 = vadd.f32 %v4856_v5, %v4826_v0  ;;  %v3674_v49 = vadd.f32 %v3673_v37, %v3672_v38  ;;  %v1227_v40 = vrot.slane %v1226_v32, 1 }
 0x496   : > { %v4446_v18 = vpop.f32.mrf.mxu2  ;;  %v1297_v0 = vrot.slane %v1296_v48, 1  ;;  %v2416_v5 = vadd.f32 %v2415_v29, %v2414_v42 }
 0x497   : > { %v4724_v17 = vpop.f32.mrf.mxu3  ;;  %v4480_v50 = vadd.f32 %v4446_v18, %v4201_v9  ;;  %v4858_v23 = vadd.f32 %v4857_v53, %v4827_v21  ;;  %v2485_v9 = vrot.slane %v2484_v51, 1  ;;  %v3605_v18 = vrot.slane %v3604_v31, 1 }
 0x498   : > { %v3675_v45 = vrot.slane %v3674_v49, 1  ;;  %v1228_v54 = vadd.f32 %v1227_v40, %v1226_v32  ;;  %v1298_v61 = vadd.f32 %v1297_v0, %v1296_v48 }
 0x499   : > { %v4758_v63 = vadd.f32 %v4724_v17, %v4480_v50  ;;  %v2486_v19 = vadd.f32 %v2485_v9, %v2484_v51  ;;  %v3606_v60 = vadd.f32 %v3605_v18, %v3604_v31 }
 0x49a   : > { %v2417_v21 = vadd.f32 %v2416_v5, %v1228_v54  ;;  %v3676_v38 = vadd.f32 %v3675_v45, %v3674_v49 }
 0x49b   : > { %v4789_v39 = vadd.f32 %v4788_v35, %v4758_v63  ;;  %v4828_v4 = vmul.f32 %v4758_v63, %v4758_v63  ;;  %v2487_v37 = vadd.f32 %v2486_v19, %v1298_v61  ;;  %v9578_v19 = vld [vmem:[#allocation6_spill] sm:$0xff] }
 0x49c   : > { %v3607_v53 = vadd.f32 %v3606_v60, %v2417_v21  ;;  %v9581_v21 = vld [vmem:[#allocation9_spill] sm:$0xff] }
 0x49d   : > { %v4790_v2 = vrot.slane %v4789_v39, 4  ;;  %v4859_v10 = vadd.f32 %v4858_v23, %v4828_v4 }
 0x49f   : > { %v4791_v28 = vadd.f32 %v4790_v2, %v4789_v39  ;;  %v4860_v57 = vrot.slane %v4859_v10, 4  ;;  %v3677_v39 = vadd.f32 %v3676_v38, %v2487_v37 }
 0x4a1   : > { %v4792_v17 = vrot.slane %v4791_v28, 2  ;;  %v4861_v41 = vadd.f32 %v4860_v57, %v4859_v10 }
 0x4a3   : > { %v4793_v20 = vadd.f32 %v4792_v17, %v4791_v28  ;;  %v4862_v7 = vrot.slane %v4861_v41, 2 }
 0x4a5   : > { %v4794_v50 = vrot.slane %v4793_v20, 1  ;;  %v4863_v34 = vadd.f32 %v4862_v7, %v4861_v41  ;;  %v9577_v41 = vld [vmem:[#allocation5_spill] sm:$0xff]  ;;  %v9580_v7 = vld [vmem:[#allocation8_spill] sm:$0xff] }
 0x4a7   : > { %v4795_v35 = vadd.f32 %v4794_v50, %v4793_v20  ;;  %v4864_v23 = vrot.slane %v4863_v34, 1 }
 0x4a9   : > { %v4796_v42 = vadd.f32 %v4795_v35, %v3607_v53  ;;  %v4865_v4 = vadd.f32 %v4864_v23, %v4863_v34  ;;  %v9582_v34 = vld [vmem:[#allocation10_spill] sm:$0xff] }
 0x4ab   : > { %v4866_v29 = vadd.f32 %v4865_v4, %v3677_v39  ;;  %v8664_v40 = vmul.f32 0.0009765625, %v4796_v42  ;;  %v9583_v39 = vld [vmem:[#allocation11_spill] sm:$0xff] }
 0x4ad   : > { %v4901_v10 = vmul.f32 0.0009765625, %v4866_v29  ;;  %v4902_v32 = vmul.f32 %v8664_v40, %v8664_v40  ;;  %v5458_v57 = vsub.f32 %v4758_v63, %v8664_v40  ;;  %v5457_v17 = vsub.f32 %v8655_v6, %v8664_v40  ;;  %v9579_v63 = vld [vmem:[#allocation7_spill] sm:$0xff]  ;;  %v9584_v29 = vld [vmem:[#allocation12_spill] sm:$0xff] }
 0x4ae   : > { %v4947_v54 = vsub.f32 %v9577_v41, %v8664_v40  ;;  %v4948_v60 = vsub.f32 %v9578_v19, %v8664_v40  ;;  %v4949_v20 = vsub.f32 %v9579_v63, %v8664_v40  ;;  %v4950_v61 = vsub.f32 %v9580_v7, %v8664_v40 }
 0x4af   : > { %v4903_v51 = vsub.f32 %v4901_v10, %v4902_v32  ;;  %v4951_v38 = vsub.f32 %v9581_v21, %v8664_v40  ;;  %v4952_v37 = vsub.f32 %v9582_v34, %v8664_v40  ;;  %v4953_v42 = vsub.f32 %v9583_v39, %v8664_v40  ;;  %v9590_v34 = vld [vmem:[#allocation18_spill] sm:$0xff] }
 0x4b0   : > { %v4954_v10 = vsub.f32 %v9584_v29, %v8664_v40  ;;  %v9592_v29 = vld [vmem:[#allocation20_spill] sm:$0xff] }
 0x4b1   : > { %v4904_v31 = vadd.f32 1e-05, %v4903_v51  ;;  %v9585_v51 = vld [vmem:[#allocation13_spill] sm:$0xff] }
 0x4b3   : > { %6902 = vrsqrt.f32 %v4904_v31  ;;  %vm4911_vm3 = vweird.f32 %v4904_v31 }
 0x4b9   : > { %v6903_v48 = vpop.eup %6902 }
 0x4ba   : > { %v4906_v49 = vmul.f32 %v6903_v48, %v4904_v31  ;;  %vm4912_vm2 = vweird.f32 %v6903_v48  ;;  %v4955_v31 = vsub.f32 %v9585_v51, %v8664_v40 }
 0x4bb   : > { %vm4913_vm4 = vmor %vm4911_vm3, %vm4912_vm2 }
 0x4bc   : > { %v4907_v2 = vmul.f32 %v6903_v48, %v4906_v49 }
 0x4be   : > { %v4908_v9 = vmul.f32 0.5, %v4907_v2 }
 0x4c0   : > { %v4909_v18 = vsub.f32 1.5, %v4908_v9 }
 0x4c2   : > { %v4910_v28 = vmul.f32 %v6903_v48, %v4909_v18 }
 0x4c4   : > { %v8672_v0 = vsel %vm4913_vm4, %v6903_v48, %v4910_v28  ;;  %v9586_v48 = vld [vmem:[#allocation14_spill] sm:$0xff] }
 0x4c5   : > { %v5490_v5 = vmul.f32 %v5458_v57, %v8672_v0  ;;  %v4979_v50 = vmul.f32 %v4947_v54, %v8672_v0  ;;  %v4980_v53 = vmul.f32 %v4948_v60, %v8672_v0  ;;  %v4981_v35 = vmul.f32 %v4949_v20, %v8672_v0  ;;  %v9588_v60 = vld [vmem:[#allocation16_spill] sm:$0xff] }
 0x4c6   : > { %v4982_v23 = vmul.f32 %v4950_v61, %v8672_v0  ;;  %v4983_v4 = vmul.f32 %v4951_v38, %v8672_v0  ;;  %v4984_v32 = vmul.f32 %v4952_v37, %v8672_v0  ;;  %v4956_v49 = vsub.f32 %v9586_v48, %v8664_v40  ;;  %v9589_v61 = vld [vmem:[#allocation17_spill] sm:$0xff] }
 0x4c7   : > { %v5522_v45 = vmax.f32 %v5490_v5, 0.0  ;;  %v4985_v2 = vmul.f32 %v4953_v42, %v8672_v0  ;;  %v5011_v9 = vmax.f32 %v4979_v50, 0.0  ;;  %v4986_v18 = vmul.f32 %v4954_v10, %v8672_v0 }
 0x4c8   : > { %v5012_v28 = vmax.f32 %v4980_v53, 0.0  ;;  %v5013_v57 = vmax.f32 %v4981_v35, 0.0  ;;  %v5014_v5 = vmax.f32 %v4982_v23, 0.0  ;;  %v4987_v54 = vmul.f32 %v4955_v31, %v8672_v0  ;;  %v9591_v23 = vld [vmem:[#allocation19_spill] sm:$0xff]  ;;  %v9593_v31 = vld [vmem:[#allocation21_spill] sm:$0xff] }
 0x4c9   : > { %6853 = vst [vmem:[%s8675_s22 + $0x3f8] sm:$0xff] %v5522_v45  ;;  %v9587_v45 = vld [vmem:[#allocation15_spill] sm:$0xff]  ;;  %v5015_v19 = vmax.f32 %v4983_v4, 0.0  ;;  %v4958_v63 = vsub.f32 %v9588_v60, %v8664_v40  ;;  %v4988_v20 = vmul.f32 %v4956_v49, %v8672_v0  ;;  %v5016_v7 = vmax.f32 %v4984_v32, 0.0 }
 0x4ca   : > { %v4957_v41 = vsub.f32 %v9587_v45, %v8664_v40  ;;  %5043 = vst [vmem:[%s8675_s22] sm:$0xff] %v5011_v9  ;;  %v4959_v21 = vsub.f32 %v9589_v61, %v8664_v40  ;;  %v5017_v50 = vmax.f32 %v4985_v2, 0.0  ;;  %v4960_v37 = vsub.f32 %v9590_v34, %v8664_v40  ;;  %v9594_v9 = vld [vmem:[#allocation22_spill] sm:$0xff] }
 0x4cb   : > { %5044 = vst [vmem:[%s8675_s22 + $0x8] sm:$0xff] %v5012_v28  ;;  %v4990_v53 = vmul.f32 %v4958_v63, %v8672_v0  ;;  %v5018_v35 = vmax.f32 %v4986_v18, 0.0  ;;  %v4961_v39 = vsub.f32 %v9591_v23, %v8664_v40  ;;  %v5019_v4 = vmax.f32 %v4987_v54, 0.0 }
 0x4cc   : > { %v4989_v38 = vmul.f32 %v4957_v41, %v8672_v0  ;;  %5045 = vst [vmem:[%s8675_s22 + $0x10] sm:$0xff] %v5013_v57  ;;  %v4991_v42 = vmul.f32 %v4959_v21, %v8672_v0  ;;  %v4962_v10 = vsub.f32 %v9592_v29, %v8664_v40  ;;  %v4992_v32 = vmul.f32 %v4960_v37, %v8672_v0 }
 0x4cd   : > { %5046 = vst [vmem:[%s8675_s22 + $0x18] sm:$0xff] %v5014_v5  ;;  %v5020_v51 = vmax.f32 %v4988_v20, 0.0  ;;  %v4963_v48 = vsub.f32 %v9593_v31, %v8664_v40  ;;  %v4993_v49 = vmul.f32 %v4961_v39, %v8672_v0  ;;  %v4964_v18 = vsub.f32 %v9594_v9, %v8664_v40  ;;  %v9595_v5 = vld [vmem:[#allocation23_spill] sm:$0xff] }
 0x4ce   : > { %5047 = vst [vmem:[%s8675_s22 + $0x20] sm:$0xff] %v5015_v19  ;;  %v5021_v2 = vmax.f32 %v4989_v38, 0.0  ;;  %v4994_v28 = vmul.f32 %v4962_v10, %v8672_v0  ;;  %v5022_v57 = vmax.f32 %v4990_v53, 0.0  ;;  %v4965_v45 = vsub.f32 %v9595_v5, %v8664_v40  ;;  %v9596_v19 = vld [vmem:[#allocation24_spill] sm:$0xff] }
 0x4cf   : > { %5048 = vst [vmem:[%s8675_s22 + $0x28] sm:$0xff] %v5016_v7  ;;  %v4995_v41 = vmul.f32 %v4963_v48, %v8672_v0  ;;  %v5023_v54 = vmax.f32 %v4991_v42, 0.0  ;;  %v4966_v60 = vsub.f32 %v9596_v19, %v8664_v40  ;;  %v4996_v63 = vmul.f32 %v4964_v18, %v8672_v0  ;;  %v9597_v7 = vld [vmem:[#allocation25_spill] sm:$0xff] }
 0x4d0   : > { %5049 = vst [vmem:[%s8675_s22 + $0x30] sm:$0xff] %v5017_v50  ;;  %v5024_v20 = vmax.f32 %v4992_v32, 0.0  ;;  %v4967_v61 = vsub.f32 %v9597_v7, %v8664_v40  ;;  %v4997_v21 = vmul.f32 %v4965_v45, %v8672_v0  ;;  %v5025_v38 = vmax.f32 %v4993_v49, 0.0  ;;  %v9598_v50 = vld [vmem:[#allocation26_spill] sm:$0xff] }
 0x4d1   : > { %5050 = vst [vmem:[%s8675_s22 + $0x38] sm:$0xff] %v5018_v35  ;;  %v4968_v34 = vsub.f32 %v9598_v50, %v8664_v40  ;;  %v4998_v37 = vmul.f32 %v4966_v60, %v8672_v0  ;;  %v5026_v53 = vmax.f32 %v4994_v28, 0.0  ;;  %v9599_v35 = vld [vmem:[#allocation27_spill] sm:$0xff]  ;;  %v5027_v42 = vmax.f32 %v4995_v41, 0.0 }
 0x4d2   : > { %5051 = vst [vmem:[%s8675_s22 + $0x40] sm:$0xff] %v5019_v4  ;;  %v4969_v23 = vsub.f32 %v9599_v35, %v8664_v40  ;;  %v4999_v39 = vmul.f32 %v4967_v61, %v8672_v0  ;;  %v9600_v4 = vld [vmem:[#allocation28_spill] sm:$0xff]  ;;  %v5028_v32 = vmax.f32 %v4996_v63, 0.0  ;;  %v5029_v49 = vmax.f32 %v4997_v21, 0.0 }
 0x4d3   : > { %5052 = vst [vmem:[%s8675_s22 + $0x48] sm:$0xff] %v5020_v51  ;;  %v4970_v29 = vsub.f32 %v9600_v4, %v8664_v40  ;;  %v5000_v10 = vmul.f32 %v4968_v34, %v8672_v0  ;;  %v9601_v51 = vld [vmem:[#allocation29_spill] sm:$0xff]  ;;  %v5030_v28 = vmax.f32 %v4998_v37, 0.0 }
 0x4d4   : > { %5053 = vst [vmem:[%s8675_s22 + $0x50] sm:$0xff] %v5021_v2  ;;  %v4971_v31 = vsub.f32 %v9601_v51, %v8664_v40  ;;  %v5001_v48 = vmul.f32 %v4969_v23, %v8672_v0  ;;  %v9602_v2 = vld [vmem:[#allocation30_spill] sm:$0xff]  ;;  %v5031_v41 = vmax.f32 %v4999_v39, 0.0 }
 0x4d5   : > { %5054 = vst [vmem:[%s8675_s22 + $0x58] sm:$0xff] %v5022_v57  ;;  %v4972_v9 = vsub.f32 %v9602_v2, %v8664_v40  ;;  %v5002_v18 = vmul.f32 %v4970_v29, %v8672_v0  ;;  %v9603_v57 = vld [vmem:[#allocation31_spill] sm:$0xff]  ;;  %v5032_v63 = vmax.f32 %v5000_v10, 0.0 }
 0x4d6   : > { %5055 = vst [vmem:[%s8675_s22 + $0x60] sm:$0xff] %v5023_v54  ;;  %v4973_v5 = vsub.f32 %v9603_v57, %v8664_v40  ;;  %v5003_v45 = vmul.f32 %v4971_v31, %v8672_v0  ;;  %v9604_v54 = vld [vmem:[#allocation32_spill] sm:$0xff]  ;;  %v5033_v21 = vmax.f32 %v5001_v48, 0.0 }
 0x4d7   : > { %5056 = vst [vmem:[%s8675_s22 + $0x68] sm:$0xff] %v5024_v20  ;;  %v4974_v19 = vsub.f32 %v9604_v54, %v8664_v40  ;;  %v5004_v60 = vmul.f32 %v4972_v9, %v8672_v0  ;;  %v9605_v20 = vld [vmem:[#allocation33_spill] sm:$0xff]  ;;  %v5034_v37 = vmax.f32 %v5002_v18, 0.0 }
 0x4d8   : > { %5057 = vst [vmem:[%s8675_s22 + $0x70] sm:$0xff] %v5025_v38  ;;  %v4975_v7 = vsub.f32 %v9605_v20, %v8664_v40  ;;  %v5005_v61 = vmul.f32 %v4973_v5, %v8672_v0  ;;  %v9606_v38 = vld [vmem:[#allocation34_spill] sm:$0xff]  ;;  %v5035_v39 = vmax.f32 %v5003_v45, 0.0 }
 0x4d9   : > { %5058 = vst [vmem:[%s8675_s22 + $0x78] sm:$0xff] %v5026_v53  ;;  %v4976_v50 = vsub.f32 %v9606_v38, %v8664_v40  ;;  %v5006_v34 = vmul.f32 %v4974_v19, %v8672_v0  ;;  %v9607_v53 = vld [vmem:[#allocation35_spill] sm:$0xff]  ;;  %v5036_v10 = vmax.f32 %v5004_v60, 0.0 }
 0x4da   : > { %5059 = vst [vmem:[%s8675_s22 + $0x80] sm:$0xff] %v5027_v42  ;;  %v4977_v35 = vsub.f32 %v9607_v53, %v8664_v40  ;;  %v5007_v23 = vmul.f32 %v4975_v7, %v8672_v0  ;;  %v9608_v42 = vld [vmem:[#allocation36_spill] sm:$0xff]  ;;  %v5037_v48 = vmax.f32 %v5005_v61, 0.0 }
 0x4db   : > { %5060 = vst [vmem:[%s8675_s22 + $0x88] sm:$0xff] %v5028_v32  ;;  %v4978_v4 = vsub.f32 %v9608_v42, %v8664_v40  ;;  %v5008_v29 = vmul.f32 %v4976_v50, %v8672_v0  ;;  %v9609_v32 = vld [vmem:[#allocation37_spill] sm:$0xff]  ;;  %v5038_v18 = vmax.f32 %v5006_v34, 0.0 }
 0x4dc   : > { %5061 = vst [vmem:[%s8675_s22 + $0x90] sm:$0xff] %v5029_v49  ;;  %v5107_v51 = vsub.f32 %v9609_v32, %v8664_v40  ;;  %v5009_v31 = vmul.f32 %v4977_v35, %v8672_v0  ;;  %v9610_v49 = vld [vmem:[#allocation38_spill] sm:$0xff]  ;;  %v5039_v5 = vmax.f32 %v5007_v23, 0.0 }
 0x4dd   : > { %5062 = vst [vmem:[%s8675_s22 + $0x98] sm:$0xff] %v5030_v28  ;;  %v5108_v2 = vsub.f32 %v9610_v49, %v8664_v40  ;;  %v5010_v9 = vmul.f32 %v4978_v4, %v8672_v0  ;;  %v9611_v28 = vld [vmem:[#allocation39_spill] sm:$0xff]  ;;  %v5040_v19 = vmax.f32 %v5008_v29, 0.0 }
 0x4de   : > { %5063 = vst [vmem:[%s8675_s22 + $0xa0] sm:$0xff] %v5031_v41  ;;  %v5109_v57 = vsub.f32 %v9611_v28, %v8664_v40  ;;  %v5139_v45 = vmul.f32 %v5107_v51, %v8672_v0  ;;  %v9612_v41 = vld [vmem:[#allocation40_spill] sm:$0xff]  ;;  %v5041_v7 = vmax.f32 %v5009_v31, 0.0 }
 0x4df   : > { %5064 = vst [vmem:[%s8675_s22 + $0xa8] sm:$0xff] %v5032_v63  ;;  %v5110_v54 = vsub.f32 %v9612_v41, %v8664_v40  ;;  %v5140_v60 = vmul.f32 %v5108_v2, %v8672_v0  ;;  %v9613_v63 = vld [vmem:[#allocation41_spill] sm:$0xff]  ;;  %v5042_v50 = vmax.f32 %v5010_v9, 0.0 }
 0x4e0   : > { %5065 = vst [vmem:[%s8675_s22 + $0xb0] sm:$0xff] %v5033_v21  ;;  %v5111_v20 = vsub.f32 %v9613_v63, %v8664_v40  ;;  %v5141_v61 = vmul.f32 %v5109_v57, %v8672_v0  ;;  %v9614_v21 = vld [vmem:[#allocation42_spill] sm:$0xff]  ;;  %v5171_v23 = vmax.f32 %v5139_v45, 0.0  ;;  %v9620_v45 = vld [vmem:[#allocation48_spill] sm:$0xff] }
 0x4e1   : > { %5066 = vst [vmem:[%s8675_s22 + $0xb8] sm:$0xff] %v5034_v37  ;;  %v5112_v38 = vsub.f32 %v9614_v21, %v8664_v40  ;;  %v5142_v34 = vmul.f32 %v5110_v54, %v8672_v0  ;;  %v9615_v37 = vld [vmem:[#allocation43_spill] sm:$0xff]  ;;  %v5172_v29 = vmax.f32 %v5140_v60, 0.0  ;;  %v5118_v41 = vsub.f32 %v9620_v45, %v8664_v40  ;;  %v9621_v60 = vld [vmem:[#allocation49_spill] sm:$0xff] }
 0x4e2   : > { %5067 = vst [vmem:[%s8675_s22 + $0xc0] sm:$0xff] %v5035_v39  ;;  %v5113_v53 = vsub.f32 %v9615_v37, %v8664_v40  ;;  %v5143_v35 = vmul.f32 %v5111_v20, %v8672_v0  ;;  %v9616_v39 = vld [vmem:[#allocation44_spill] sm:$0xff]  ;;  %v5173_v31 = vmax.f32 %v5141_v61, 0.0  ;;  %v5119_v63 = vsub.f32 %v9621_v60, %v8664_v40  ;;  %v9622_v61 = vld [vmem:[#allocation50_spill] sm:$0xff] }
 0x4e3   : > { %5068 = vst [vmem:[%s8675_s22 + $0xc8] sm:$0xff] %v5036_v10  ;;  %v5114_v42 = vsub.f32 %v9616_v39, %v8664_v40  ;;  %v5144_v4 = vmul.f32 %v5112_v38, %v8672_v0  ;;  %v9617_v10 = vld [vmem:[#allocation45_spill] sm:$0xff]  ;;  %v5174_v9 = vmax.f32 %v5142_v34, 0.0  ;;  %v5120_v21 = vsub.f32 %v9622_v61, %v8664_v40  ;;  %v9623_v34 = vld [vmem:[#allocation51_spill] sm:$0xff] }
 0x4e4   : > { %5069 = vst [vmem:[%s8675_s22 + $0xd0] sm:$0xff] %v5037_v48  ;;  %v5115_v32 = vsub.f32 %v9617_v10, %v8664_v40  ;;  %v5145_v51 = vmul.f32 %v5113_v53, %v8672_v0  ;;  %v9618_v48 = vld [vmem:[#allocation46_spill] sm:$0xff]  ;;  %v5150_v38 = vmul.f32 %v5118_v41, %v8672_v0  ;;  %v5121_v37 = vsub.f32 %v9623_v34, %v8664_v40 }
 0x4e5   : > { %5070 = vst [vmem:[%s8675_s22 + $0xd8] sm:$0xff] %v5038_v18  ;;  %v5116_v49 = vsub.f32 %v9618_v48, %v8664_v40  ;;  %v5146_v2 = vmul.f32 %v5114_v42, %v8672_v0  ;;  %v9619_v18 = vld [vmem:[#allocation47_spill] sm:$0xff]  ;;  %v5151_v53 = vmul.f32 %v5119_v63, %v8672_v0  ;;  %v5152_v42 = vmul.f32 %v5120_v21, %v8672_v0 }
 0x4e6   : > { %5071 = vst [vmem:[%s8675_s22 + $0xe0] sm:$0xff] %v5039_v5  ;;  %v5117_v28 = vsub.f32 %v9619_v18, %v8664_v40  ;;  %v5147_v57 = vmul.f32 %v5115_v32, %v8672_v0  ;;  %v5175_v5 = vmax.f32 %v5143_v35, 0.0  ;;  %v5153_v32 = vmul.f32 %v5121_v37, %v8672_v0 }
 0x4e7   : > { %5072 = vst [vmem:[%s8675_s22 + $0xe8] sm:$0xff] %v5040_v19  ;;  %v5148_v54 = vmul.f32 %v5116_v49, %v8672_v0  ;;  %v5176_v19 = vmax.f32 %v5144_v4, 0.0 }
 0x4e8   : > { %5073 = vst [vmem:[%s8675_s22 + $0xf0] sm:$0xff] %v5041_v7  ;;  %v5149_v20 = vmul.f32 %v5117_v28, %v8672_v0  ;;  %v5177_v7 = vmax.f32 %v5145_v51, 0.0  ;;  %v5179_v35 = vmax.f32 %v5147_v57, 0.0  ;;  %v5183_v57 = vmax.f32 %v5151_v53, 0.0 }
 0x4e9   : > { %5074 = vst [vmem:[%s8675_s22 + $0xf8] sm:$0xff] %v5042_v50  ;;  %v5178_v50 = vmax.f32 %v5146_v2, 0.0  ;;  %v5180_v4 = vmax.f32 %v5148_v54, 0.0  ;;  %v5182_v2 = vmax.f32 %v5150_v38, 0.0  ;;  %v5184_v54 = vmax.f32 %v5152_v42, 0.0 }
 0x4ea   : > { %6694 = vst [vmem:[%s8675_s22 + $0x100] sm:$0xff] %v5171_v23  ;;  %v9624_v23 = vld [vmem:[#allocation52_spill] sm:$0xff]  ;;  %v5181_v51 = vmax.f32 %v5149_v20, 0.0  ;;  %v5185_v20 = vmax.f32 %v5153_v32, 0.0 }
 0x4eb   : > { %6695 = vst [vmem:[%s8675_s22 + $0x108] sm:$0xff] %v5172_v29  ;;  %v5122_v39 = vsub.f32 %v9624_v23, %v8664_v40  ;;  %v9625_v29 = vld [vmem:[#allocation53_spill] sm:$0xff] }
 0x4ec   : > { %6696 = vst [vmem:[%s8675_s22 + $0x110] sm:$0xff] %v5173_v31  ;;  %v5123_v10 = vsub.f32 %v9625_v29, %v8664_v40  ;;  %v9626_v31 = vld [vmem:[#allocation54_spill] sm:$0xff] }
 0x4ed   : > { %6697 = vst [vmem:[%s8675_s22 + $0x118] sm:$0xff] %v5174_v9  ;;  %v5124_v48 = vsub.f32 %v9626_v31, %v8664_v40  ;;  %v5154_v49 = vmul.f32 %v5122_v39, %v8672_v0  ;;  %v9627_v9 = vld [vmem:[#allocation55_spill] sm:$0xff] }
 0x4ee   : > { %6698 = vst [vmem:[%s8675_s22 + $0x120] sm:$0xff] %v5175_v5  ;;  %v5125_v18 = vsub.f32 %v9627_v9, %v8664_v40  ;;  %v5155_v28 = vmul.f32 %v5123_v10, %v8672_v0  ;;  %v9628_v5 = vld [vmem:[#allocation56_spill] sm:$0xff] }
 0x4ef   : > { %6699 = vst [vmem:[%s8675_s22 + $0x128] sm:$0xff] %v5176_v19  ;;  %v5126_v45 = vsub.f32 %v9628_v5, %v8664_v40  ;;  %v5156_v41 = vmul.f32 %v5124_v48, %v8672_v0  ;;  %v9629_v19 = vld [vmem:[#allocation57_spill] sm:$0xff]  ;;  %v5186_v38 = vmax.f32 %v5154_v49, 0.0 }
 0x4f0   : > { %6700 = vst [vmem:[%s8675_s22 + $0x130] sm:$0xff] %v5177_v7  ;;  %v5127_v60 = vsub.f32 %v9629_v19, %v8664_v40  ;;  %v5157_v63 = vmul.f32 %v5125_v18, %v8672_v0  ;;  %v9630_v7 = vld [vmem:[#allocation58_spill] sm:$0xff]  ;;  %v5187_v53 = vmax.f32 %v5155_v28, 0.0 }
 0x4f1   : > { %6701 = vst [vmem:[%s8675_s22 + $0x138] sm:$0xff] %v5178_v50  ;;  %v5128_v61 = vsub.f32 %v9630_v7, %v8664_v40  ;;  %v5158_v21 = vmul.f32 %v5126_v45, %v8672_v0  ;;  %v9631_v50 = vld [vmem:[#allocation59_spill] sm:$0xff]  ;;  %v5188_v42 = vmax.f32 %v5156_v41, 0.0 }
 0x4f2   : > { %6702 = vst [vmem:[%s8675_s22 + $0x140] sm:$0xff] %v5179_v35  ;;  %v5129_v34 = vsub.f32 %v9631_v50, %v8664_v40  ;;  %v5159_v37 = vmul.f32 %v5127_v60, %v8672_v0  ;;  %v9632_v35 = vld [vmem:[#allocation60_spill] sm:$0xff]  ;;  %v5189_v32 = vmax.f32 %v5157_v63, 0.0 }
 0x4f3   : > { %6703 = vst [vmem:[%s8675_s22 + $0x148] sm:$0xff] %v5180_v4  ;;  %v5130_v23 = vsub.f32 %v9632_v35, %v8664_v40  ;;  %v5160_v39 = vmul.f32 %v5128_v61, %v8672_v0  ;;  %v9633_v4 = vld [vmem:[#allocation61_spill] sm:$0xff]  ;;  %v5190_v49 = vmax.f32 %v5158_v21, 0.0  ;;  %v5137_v21 = vsub.f32 %v9560_v25, %v8664_v40  ;;  %v9639_v25 = vld [vmem:[#allocation70_spill] sm:$0xff] }
 0x4f4   : > { %6704 = vst [vmem:[%s8675_s22 + $0x150] sm:$0xff] %v5181_v51  ;;  %v5131_v29 = vsub.f32 %v9633_v4, %v8664_v40  ;;  %v5161_v10 = vmul.f32 %v5129_v34, %v8672_v0  ;;  %v9634_v51 = vld [vmem:[#allocation62_spill] sm:$0xff]  ;;  %v5191_v28 = vmax.f32 %v5159_v37, 0.0  ;;  %v5138_v34 = vsub.f32 %v9564_v62, %v8664_v40  ;;  %v9640_v62 = vld [vmem:[#allocation71_spill] sm:$0xff] }
 0x4f5   : > { %6705 = vst [vmem:[%s8675_s22 + $0x158] sm:$0xff] %v5182_v2  ;;  %v5132_v31 = vsub.f32 %v9634_v51, %v8664_v40  ;;  %v5162_v48 = vmul.f32 %v5130_v23, %v8672_v0  ;;  %v9635_v2 = vld [vmem:[#allocation63_spill] sm:$0xff]  ;;  %v5192_v41 = vmax.f32 %v5160_v39, 0.0  ;;  %v5169_v23 = vmul.f32 %v5137_v21, %v8672_v0 }
 0x4f6   : > { %6706 = vst [vmem:[%s8675_s22 + $0x160] sm:$0xff] %v5183_v57  ;;  %v5133_v9 = vsub.f32 %v9635_v2, %v8664_v40  ;;  %v5163_v18 = vmul.f32 %v5131_v29, %v8672_v0  ;;  %v9636_v57 = vld [vmem:[#allocation64_spill] sm:$0xff]  ;;  %v5193_v63 = vmax.f32 %v5161_v10, 0.0  ;;  %v5170_v4 = vmul.f32 %v5138_v34, %v8672_v0 }
 0x4f7   : > { %6707 = vst [vmem:[%s8675_s22 + $0x168] sm:$0xff] %v5184_v54  ;;  %v5134_v5 = vsub.f32 %v9636_v57, %v8664_v40  ;;  %v5164_v45 = vmul.f32 %v5132_v31, %v8672_v0  ;;  %v9637_v54 = vld [vmem:[#allocation65_spill] sm:$0xff]  ;;  %v5194_v61 = vmax.f32 %v5162_v48, 0.0  ;;  %v5269_v10 = vsub.f32 %v9640_v62, %v8664_v40  ;;  %v9641_v31 = vld [vmem:[#allocation72_spill] sm:$0xff] }
 0x4f8   : > { %6708 = vst [vmem:[%s8675_s22 + $0x170] sm:$0xff] %v5185_v20  ;;  %v5135_v19 = vsub.f32 %v9637_v54, %v8664_v40  ;;  %v5165_v60 = vmul.f32 %v5133_v9, %v8672_v0  ;;  %v5136_v20 = vsub.f32 %v9557_v11, %v8664_v40  ;;  %v5195_v50 = vmax.f32 %v5163_v18, 0.0  ;;  %v9638_v11 = vld [vmem:[#allocation69_spill] sm:$0xff]  ;;  %v9649_v62 = vld [vmem:[#allocation80_spill] sm:$0xff] }
 0x4f9   : > { %6709 = vst [vmem:[%s8675_s22 + $0x178] sm:$0xff] %v5186_v38  ;;  %v5166_v7 = vmul.f32 %v5134_v5, %v8672_v0  ;;  %v5267_v35 = vsub.f32 %v9638_v11, %v8664_v40  ;;  %v5270_v48 = vsub.f32 %v9641_v31, %v8664_v40  ;;  %v9642_v9 = vld [vmem:[#allocation73_spill] sm:$0xff]  ;;  %v5301_v57 = vmul.f32 %v5269_v10, %v8672_v0  ;;  %v9643_v5 = vld [vmem:[#allocation74_spill] sm:$0xff] }
 0x4fa   : > { %6710 = vst [vmem:[%s8675_s22 + $0x180] sm:$0xff] %v5187_v53  ;;  %v5167_v38 = vmul.f32 %v5135_v19, %v8672_v0  ;;  %v5168_v37 = vmul.f32 %v5136_v20, %v8672_v0  ;;  %v5196_v53 = vmax.f32 %v5164_v45, 0.0  ;;  %v5197_v39 = vmax.f32 %v5165_v60, 0.0  ;;  %v9644_v19 = vld [vmem:[#allocation75_spill] sm:$0xff]  ;;  %v9647_v11 = vld [vmem:[#allocation78_spill] sm:$0xff]  ;;  %v9650_v31 = vld [vmem:[#allocation81_spill] sm:$0xff] }
 0x4fb   : > { %6711 = vst [vmem:[%s8675_s22 + $0x188] sm:$0xff] %v5188_v42  ;;  %v5268_v42 = vsub.f32 %v9639_v25, %v8664_v40  ;;  %v5198_v29 = vmax.f32 %v5166_v7, 0.0  ;;  %v5299_v51 = vmul.f32 %v5267_v35, %v8672_v0  ;;  %v5271_v18 = vsub.f32 %v9642_v9, %v8664_v40  ;;  %v9645_v7 = vld [vmem:[#allocation76_spill] sm:$0xff]  ;;  %v9648_v25 = vld [vmem:[#allocation79_spill] sm:$0xff]  ;;  %v9651_v9 = vld [vmem:[#allocation82_spill] sm:$0xff] }
 0x4fc   : > { %6712 = vst [vmem:[%s8675_s22 + $0x190] sm:$0xff] %v5189_v32  ;;  %v5199_v32 = vmax.f32 %v5167_v38, 0.0  ;;  %v5272_v45 = vsub.f32 %v9643_v5, %v8664_v40  ;;  %v5302_v54 = vmul.f32 %v5270_v48, %v8672_v0  ;;  %v5273_v60 = vsub.f32 %v9644_v19, %v8664_v40  ;;  %v9652_v5 = vld [vmem:[#allocation83_spill] sm:$0xff]  ;;  %v9653_v19 = vld [vmem:[#allocation84_spill] sm:$0xff] }
 0x4fd   : > { %6713 = vst [vmem:[%s8675_s22 + $0x198] sm:$0xff] %v5190_v49  ;;  %v5200_v49 = vmax.f32 %v5168_v37, 0.0  ;;  %v5300_v2 = vmul.f32 %v5268_v42, %v8672_v0  ;;  %v5331_v20 = vmax.f32 %v5299_v51, 0.0  ;;  %v5276_v35 = vsub.f32 %v9647_v11, %v8664_v40  ;;  %v9656_v11 = vld [vmem:[#allocation87_spill] sm:$0xff] }
 0x4fe   : > { %6714 = vst [vmem:[%s8675_s22 + $0x1a0] sm:$0xff] %v5191_v28  ;;  %v5201_v28 = vmax.f32 %v5169_v23, 0.0  ;;  %v5304_v21 = vmul.f32 %v5272_v45, %v8672_v0  ;;  %v5305_v37 = vmul.f32 %v5273_v60, %v8672_v0  ;;  %v5277_v42 = vsub.f32 %v9648_v25, %v8664_v40  ;;  %v9657_v25 = vld [vmem:[#allocation88_spill] sm:$0xff] }
 0x4ff   : > { %6715 = vst [vmem:[%s8675_s22 + $0x1a8] sm:$0xff] %v5192_v41  ;;  %v5202_v41 = vmax.f32 %v5170_v4, 0.0  ;;  %v5332_v38 = vmax.f32 %v5300_v2, 0.0  ;;  %v5278_v10 = vsub.f32 %v9649_v62, %v8664_v40  ;;  %v5279_v48 = vsub.f32 %v9650_v31, %v8664_v40  ;;  %v9658_v62 = vld [vmem:[#allocation89_spill] sm:$0xff] }
 0x500   : > { %6716 = vst [vmem:[%s8675_s22 + $0x1b0] sm:$0xff] %v5193_v63  ;;  %v5303_v63 = vmul.f32 %v5271_v18, %v8672_v0  ;;  %v5336_v51 = vmax.f32 %v5304_v21, 0.0  ;;  %v5337_v2 = vmax.f32 %v5305_v37, 0.0  ;;  %v5280_v18 = vsub.f32 %v9651_v9, %v8664_v40 }
 0x501   : > { %6717 = vst [vmem:[%s8675_s22 + $0x1b8] sm:$0xff] %v5194_v61  ;;  %v5274_v61 = vsub.f32 %v9645_v7, %v8664_v40  ;;  %v5281_v45 = vsub.f32 %v9652_v5, %v8664_v40  ;;  %v5282_v60 = vsub.f32 %v9653_v19, %v8664_v40  ;;  %v9654_v7 = vld [vmem:[#allocation85_spill] sm:$0xff]  ;;  %v5288_v31 = vsub.f32 %v9555_v3, %v8664_v40 }
 0x502   : > { %6718 = vst [vmem:[%s8675_s22 + $0x1c0] sm:$0xff] %v5195_v50  ;;  %v9646_v50 = vld [vmem:[#allocation77_spill] sm:$0xff]  ;;  %v5291_v3 = vsub.f32 %v9562_v58, %v8664_v40  ;;  %v5292_v19 = vsub.f32 %v9563_v47, %v8664_v40  ;;  %v5294_v58 = vsub.f32 %v9566_v30, %v8664_v40  ;;  %v5295_v47 = vsub.f32 %v9567_v59, %v8664_v40 }
 0x503   : > { %6719 = vst [vmem:[%s8675_s22 + $0x1c8] sm:$0xff] %v5196_v53  ;;  %v5275_v34 = vsub.f32 %v9646_v50, %v8664_v40  ;;  %v5333_v53 = vmax.f32 %v5301_v57, 0.0  ;;  %v5306_v23 = vmul.f32 %v5274_v61, %v8672_v0  ;;  %v5283_v61 = vsub.f32 %v9654_v7, %v8664_v40  ;;  %v9655_v50 = vld [vmem:[#allocation86_spill] sm:$0xff] }
 0x504   : > { %6720 = vst [vmem:[%s8675_s22 + $0x1d0] sm:$0xff] %v5197_v39  ;;  %v5334_v39 = vmax.f32 %v5302_v54, 0.0  ;;  %v5313_v21 = vmul.f32 %v5281_v45, %v8672_v0  ;;  %v5314_v37 = vmul.f32 %v5282_v60, %v8672_v0  ;;  %v5320_v5 = vmul.f32 %v5288_v31, %v8672_v0  ;;  %v9663_v31 = vld [vmem:[#allocation104_spill] sm:$0xff] }
 0x505   : > { %6721 = vst [vmem:[%s8675_s22 + $0x1d8] sm:$0xff] %v5198_v29  ;;  %v5307_v4 = vmul.f32 %v5275_v34, %v8672_v0  ;;  %v5335_v29 = vmax.f32 %v5303_v63, 0.0  ;;  %v5338_v57 = vmax.f32 %v5306_v23, 0.0  ;;  %v5312_v63 = vmul.f32 %v5280_v18, %v8672_v0 }
 0x506   : > { %6722 = vst [vmem:[%s8675_s22 + $0x1e0] sm:$0xff] %v5199_v32  ;;  %v5308_v32 = vmul.f32 %v5276_v35, %v8672_v0  ;;  %v5284_v34 = vsub.f32 %v9655_v50, %v8664_v40  ;;  %v5285_v35 = vsub.f32 %v9656_v11, %v8664_v40  ;;  %v5315_v23 = vmul.f32 %v5283_v61, %v8672_v0 }
 0x507   : > { %6723 = vst [vmem:[%s8675_s22 + $0x1e8] sm:$0xff] %v5200_v49  ;;  %v5309_v49 = vmul.f32 %v5277_v42, %v8672_v0  ;;  %v5339_v54 = vmax.f32 %v5307_v4, 0.0  ;;  %v5286_v42 = vsub.f32 %v9657_v25, %v8664_v40  ;;  %v5324_v61 = vmul.f32 %v5292_v19, %v8672_v0 }
 0x508   : > { %6724 = vst [vmem:[%s8675_s22 + $0x1f0] sm:$0xff] %v5201_v28  ;;  %v5310_v28 = vmul.f32 %v5278_v10, %v8672_v0  ;;  %v5316_v4 = vmul.f32 %v5284_v34, %v8672_v0  ;;  %v5287_v10 = vsub.f32 %v9658_v62, %v8664_v40  ;;  %v5326_v34 = vmul.f32 %v5294_v58, %v8672_v0 }
 0x509   : > { %6725 = vst [vmem:[%s8675_s22 + $0x1f8] sm:$0xff] %v5202_v41  ;;  %v5311_v41 = vmul.f32 %v5279_v48, %v8672_v0  ;;  %v5318_v48 = vmul.f32 %v5286_v42, %v8672_v0  ;;  %v5297_v30 = vsub.f32 %v9569_v52, %v8664_v40  ;;  %v5298_v59 = vsub.f32 %v9570_v44, %v8664_v40  ;;  %v9661_v52 = vld [vmem:[#allocation102_spill] sm:$0xff]  ;;  %v9662_v44 = vld [vmem:[#allocation103_spill] sm:$0xff] }
 0x50a   : > { %6758 = vst [vmem:[%s8675_s22 + $0x200] sm:$0xff] %v5331_v20  ;;  %v5340_v20 = vmax.f32 %v5308_v32, 0.0  ;;  %v5317_v32 = vmul.f32 %v5285_v35, %v8672_v0  ;;  %v5319_v18 = vmul.f32 %v5287_v10, %v8672_v0  ;;  %v5348_v45 = vmax.f32 %v5316_v4, 0.0 }
 0x50b   : > { %6759 = vst [vmem:[%s8675_s22 + $0x208] sm:$0xff] %v5332_v38  ;;  %v5341_v38 = vmax.f32 %v5309_v49, 0.0  ;;  %v5346_v49 = vmax.f32 %v5314_v37, 0.0  ;;  %v5329_v25 = vmul.f32 %v5297_v30, %v8672_v0  ;;  %v5428_v4 = vsub.f32 %v9661_v52, %v8664_v40  ;;  %v9670_v30 = vld [vmem:[#allocation111_spill] sm:$0xff] }
 0x50c   : > { %6760 = vst [vmem:[%s8675_s22 + $0x210] sm:$0xff] %v5333_v53  ;;  %v5342_v53 = vmax.f32 %v5310_v28, 0.0  ;;  %v5347_v28 = vmax.f32 %v5315_v23, 0.0  ;;  %v5351_v7 = vmax.f32 %v5319_v18, 0.0  ;;  %v5356_v23 = vmax.f32 %v5324_v61, 0.0  ;;  %v9668_v61 = vld [vmem:[#allocation109_spill] sm:$0xff] }
 0x50d   : > { %6761 = vst [vmem:[%s8675_s22 + $0x218] sm:$0xff] %v5334_v39  ;;  %v5343_v39 = vmax.f32 %v5311_v41, 0.0  ;;  %v5358_v62 = vmax.f32 %v5326_v34, 0.0  ;;  %v5429_v10 = vsub.f32 %v9662_v44, %v8664_v40 }
 0x50e   : > { %6762 = vst [vmem:[%s8675_s22 + $0x220] sm:$0xff] %v5335_v29  ;;  %v5344_v29 = vmax.f32 %v5312_v63, 0.0  ;;  %v5350_v63 = vmax.f32 %v5318_v48, 0.0  ;;  %v5430_v48 = vsub.f32 %v9663_v31, %v8664_v40 }
 0x50f   : > { %6763 = vst [vmem:[%s8675_s22 + $0x228] sm:$0xff] %v5336_v51  ;;  %v5345_v51 = vmax.f32 %v5313_v21, 0.0  ;;  %v5352_v21 = vmax.f32 %v5320_v5, 0.0  ;;  %v9665_v5 = vld [vmem:[#allocation106_spill] sm:$0xff] }
 0x510   : > { %6764 = vst [vmem:[%s8675_s22 + $0x230] sm:$0xff] %v5337_v2  ;;  %v9659_v2 = vld [vmem:[#allocation91_spill] sm:$0xff] }
 0x511   : > { %6765 = vst [vmem:[%s8675_s22 + $0x238] sm:$0xff] %v5338_v57  ;;  %v5289_v9 = vsub.f32 %v9659_v2, %v8664_v40  ;;  %v5290_v57 = vsub.f32 %v9561_v15, %v8664_v40  ;;  %v5293_v15 = vsub.f32 %v9565_v8, %v8664_v40  ;;  %v5296_v8 = vsub.f32 %v9568_v16, %v8664_v40  ;;  %v9660_v16 = vld [vmem:[#allocation101_spill] sm:$0xff] }
 0x512   : > { %6766 = vst [vmem:[%s8675_s22 + $0x240] sm:$0xff] %v5339_v54  ;;  %v5349_v54 = vmax.f32 %v5317_v32, 0.0  ;;  %v5460_v2 = vmul.f32 %v5428_v4, %v8672_v0 }
 0x513   : > { %6767 = vst [vmem:[%s8675_s22 + $0x248] sm:$0xff] %v5340_v20  ;;  %v5321_v41 = vmul.f32 %v5289_v9, %v8672_v0  ;;  %v5322_v60 = vmul.f32 %v5290_v57, %v8672_v0  ;;  %v5323_v20 = vmul.f32 %v5291_v3, %v8672_v0  ;;  %v5328_v35 = vmul.f32 %v5296_v8, %v8672_v0  ;;  %v9664_v9 = vld [vmem:[#allocation105_spill] sm:$0xff] }
 0x514   : > { %6768 = vst [vmem:[%s8675_s22 + $0x250] sm:$0xff] %v5341_v38  ;;  %v5325_v38 = vmul.f32 %v5293_v15, %v8672_v0  ;;  %v5431_v18 = vsub.f32 %v9664_v9, %v8664_v40  ;;  %v5461_v57 = vmul.f32 %v5429_v10, %v8672_v0  ;;  %v9667_v15 = vld [vmem:[#allocation108_spill] sm:$0xff]  ;;  %v5492_v58 = vmax.f32 %v5460_v2, 0.0  ;;  %v9673_v10 = vld [vmem:[#allocation115_spill] sm:$0xff] }
 0x515   : > { %6769 = vst [vmem:[%s8675_s22 + $0x258] sm:$0xff] %v5342_v53  ;;  %v5353_v50 = vmax.f32 %v5321_v41, 0.0  ;;  %v5354_v37 = vmax.f32 %v5322_v60, 0.0  ;;  %v5327_v53 = vmul.f32 %v5295_v47, %v8672_v0  ;;  %v5355_v11 = vmax.f32 %v5323_v20, 0.0 }
 0x516   : > { %6770 = vst [vmem:[%s8675_s22 + $0x260] sm:$0xff] %v5343_v39  ;;  %v5427_v39 = vsub.f32 %v9660_v16, %v8664_v40  ;;  %v5357_v42 = vmax.f32 %v5325_v38, 0.0  ;;  %v5462_v41 = vmul.f32 %v5430_v48, %v8672_v0  ;;  %v5463_v60 = vmul.f32 %v5431_v18, %v8672_v0 }
 0x517   : > { %6771 = vst [vmem:[%s8675_s22 + $0x268] sm:$0xff] %v5344_v29  ;;  %v5330_v29 = vmul.f32 %v5298_v59, %v8672_v0  ;;  %v5359_v32 = vmax.f32 %v5327_v53, 0.0  ;;  %v5434_v20 = vsub.f32 %v9667_v15, %v8664_v40  ;;  %v5493_v38 = vmax.f32 %v5461_v57, 0.0 }
 0x518   : > { %6772 = vst [vmem:[%s8675_s22 + $0x270] sm:$0xff] %v5345_v51  ;;  %v5459_v51 = vmul.f32 %v5427_v39, %v8672_v0  ;;  %v5437_v53 = vsub.f32 %v9670_v30, %v8664_v40  ;;  %v5495_v59 = vmax.f32 %v5463_v60, 0.0  ;;  %v5442_v48 = vsub.f32 %v8149_v14, %v8664_v40  ;;  %v9674_v30 = vld [vmem:[#allocation90_spill] sm:$0xff] }
 0x519   : > { %6773 = vst [vmem:[%s8675_s22 + $0x278] sm:$0xff] %v5346_v49  ;;  %v5360_v49 = vmax.f32 %v5328_v35, 0.0  ;;  %v5362_v3 = vmax.f32 %v5330_v29, 0.0  ;;  %v5466_v34 = vmul.f32 %v5434_v20, %v8672_v0  ;;  %v9671_v35 = vld [vmem:[#allocation112_spill] sm:$0xff]  ;;  %v5440_v29 = vsub.f32 %v9559_v43, %v8664_v40 }
 0x51a   : > { %6774 = vst [vmem:[%s8675_s22 + $0x280] sm:$0xff] %v5347_v28  ;;  %v5361_v28 = vmax.f32 %v5329_v25, 0.0  ;;  %v9672_v25 = vld [vmem:[#allocation113_spill] sm:$0xff]  ;;  %v5469_v52 = vmul.f32 %v5437_v53, %v8672_v0  ;;  %v5443_v43 = vsub.f32 %v8163_v56, %v8664_v40  ;;  %v5474_v57 = vmul.f32 %v5442_v48, %v8672_v0 }
 0x51b   : > { %6775 = vst [vmem:[%s8675_s22 + $0x288] sm:$0xff] %v5348_v45  ;;  %v5432_v45 = vsub.f32 %v9665_v5, %v8664_v40  ;;  %v5498_v44 = vmax.f32 %v5466_v34, 0.0  ;;  %v5445_v14 = vsub.f32 %v8193_v26, %v8664_v40  ;;  %v5446_v56 = vsub.f32 %v8221_v22, %v8664_v40 }
 0x51c   : > { %6776 = vst [vmem:[%s8675_s22 + $0x290] sm:$0xff] %v5349_v54  ;;  %v9666_v54 = vld [vmem:[#allocation107_spill] sm:$0xff]  ;;  %v5501_v18 = vmax.f32 %v5469_v52, 0.0  ;;  %v5448_v26 = vsub.f32 %v8568_v55, %v8664_v40  ;;  %v5506_v15 = vmax.f32 %v5474_v57, 0.0  ;;  %v5449_v22 = vsub.f32 %v8580_v27, %v8664_v40 }
 0x51d   : > { %6777 = vst [vmem:[%s8675_s22 + $0x298] sm:$0xff] %v5350_v63  ;;  %v5433_v19 = vsub.f32 %v9666_v54, %v8664_v40  ;;  %v5491_v63 = vmax.f32 %v5459_v51, 0.0  ;;  %v5451_v55 = vsub.f32 %v8602_v24, %v8664_v40  ;;  %v5452_v27 = vsub.f32 %v8613_v13, %v8664_v40 }
 0x51e   : > { %6778 = vst [vmem:[%s8675_s22 + $0x2a0] sm:$0xff] %v5351_v7  ;;  %v5464_v7 = vmul.f32 %v5432_v45, %v8672_v0  ;;  %v5475_v45 = vmul.f32 %v5443_v43, %v8672_v0  ;;  %v5454_v34 = vsub.f32 %v8633_v1, %v8664_v40  ;;  %v5455_v53 = vsub.f32 %v9674_v30, %v8664_v40 }
 0x51f   : > { %6779 = vst [vmem:[%s8675_s22 + $0x2a8] sm:$0xff] %v5352_v21  ;;  %v5435_v21 = vsub.f32 %v9668_v61, %v8664_v40  ;;  %v5465_v47 = vmul.f32 %v5433_v19, %v8672_v0  ;;  %v5477_v19 = vmul.f32 %v5445_v14, %v8672_v0  ;;  %v5489_v52 = vmul.f32 %v5457_v17, %v8672_v0 }
 0x520   : > { %6780 = vst [vmem:[%s8675_s22 + $0x2b0] sm:$0xff] %v5353_v50  ;;  %v9669_v50 = vld [vmem:[#allocation110_spill] sm:$0xff]  ;;  %v5496_v39 = vmax.f32 %v5464_v7, 0.0  ;;  %v5507_v7 = vmax.f32 %v5475_v45, 0.0  ;;  %v5486_v1 = vmul.f32 %v5454_v34, %v8672_v0 }
 0x521   : > { %6781 = vst [vmem:[%s8675_s22 + $0x2b8] sm:$0xff] %v5354_v37  ;;  %v5436_v8 = vsub.f32 %v9669_v50, %v8664_v40  ;;  %v5494_v37 = vmax.f32 %v5462_v41, 0.0  ;;  %v5497_v4 = vmax.f32 %v5465_v47, 0.0  ;;  %v5509_v47 = vmax.f32 %v5477_v19, 0.0 }
 0x522   : > { %6782 = vst [vmem:[%s8675_s22 + $0x2c0] sm:$0xff] %v5355_v11  ;;  %v5467_v11 = vmul.f32 %v5435_v21, %v8672_v0  ;;  %v5481_v21 = vmul.f32 %v5449_v22, %v8672_v0  ;;  %v5453_v50 = vsub.f32 %v8623_v12, %v8664_v40 }
 0x523   : > { %6783 = vst [vmem:[%s8675_s22 + $0x2c8] sm:$0xff] %v5356_v23  ;;  %v5438_v23 = vsub.f32 %v9671_v35, %v8664_v40  ;;  %v5468_v16 = vmul.f32 %v5436_v8, %v8672_v0  ;;  %v5483_v8 = vmul.f32 %v5451_v55, %v8672_v0 }
 0x524   : > { %6784 = vst [vmem:[%s8675_s22 + $0x2d0] sm:$0xff] %v5357_v42  ;;  %v5439_v42 = vsub.f32 %v9672_v25, %v8664_v40  ;;  %v5499_v31 = vmax.f32 %v5467_v11, 0.0  ;;  %v5485_v11 = vmul.f32 %v5453_v50, %v8672_v0  ;;  %v5513_v12 = vmax.f32 %v5481_v21, 0.0 }
 0x525   : > { %6785 = vst [vmem:[%s8675_s22 + $0x2d8] sm:$0xff] %v5358_v62  ;;  %v5470_v62 = vmul.f32 %v5438_v23, %v8672_v0  ;;  %v5500_v2 = vmax.f32 %v5468_v16, 0.0  ;;  %v5487_v16 = vmul.f32 %v5455_v53, %v8672_v0 }
 0x526   : > { %6786 = vst [vmem:[%s8675_s22 + $0x2e0] sm:$0xff] %v5359_v32  ;;  %v5441_v32 = vsub.f32 %v9673_v10, %v8664_v40  ;;  %v5471_v51 = vmul.f32 %v5439_v42, %v8672_v0  ;;  %v5521_v10 = vmax.f32 %v5489_v52, 0.0 }
 0x527   : > { %6787 = vst [vmem:[%s8675_s22 + $0x2e8] sm:$0xff] %v5360_v49  ;;  %v5472_v49 = vmul.f32 %v5440_v29, %v8672_v0  ;;  %v5502_v5 = vmax.f32 %v5470_v62, 0.0  ;;  %v5518_v29 = vmax.f32 %v5486_v1, 0.0  ;;  %v5519_v62 = vmax.f32 %v5487_v16, 0.0 }
 0x528   : > { %6788 = vst [vmem:[%s8675_s22 + $0x2f0] sm:$0xff] %v5361_v28  ;;  %v5473_v9 = vmul.f32 %v5441_v32, %v8672_v0  ;;  %v5444_v28 = vsub.f32 %v8177_v36, %v8664_v40  ;;  %v5447_v36 = vsub.f32 %v8247_v33, %v8664_v40  ;;  %v5450_v33 = vsub.f32 %v8592_v46, %v8664_v40 }
 0x529   : > { %6789 = vst [vmem:[%s8675_s22 + $0x2f8] sm:$0xff] %v5362_v3  ;;  %v5503_v3 = vmax.f32 %v5471_v51, 0.0  ;;  %v5504_v54 = vmax.f32 %v5472_v49, 0.0 }
 0x52a   : > { %6822 = vst [vmem:[%s8675_s22 + $0x300] sm:$0xff] %v5491_v63  ;;  %v5476_v41 = vmul.f32 %v5444_v28, %v8672_v0  ;;  %v5505_v60 = vmax.f32 %v5473_v9, 0.0  ;;  %v5478_v63 = vmul.f32 %v5446_v56, %v8672_v0  ;;  %v5479_v20 = vmul.f32 %v5447_v36, %v8672_v0 }
 0x52b   : > { %6823 = vst [vmem:[%s8675_s22 + $0x308] sm:$0xff] %v5492_v58  ;;  %v5480_v58 = vmul.f32 %v5448_v26, %v8672_v0 }
 0x52c   : > { %6824 = vst [vmem:[%s8675_s22 + $0x310] sm:$0xff] %v5493_v38  ;;  %v5508_v61 = vmax.f32 %v5476_v41, 0.0  ;;  %v5482_v38 = vmul.f32 %v5450_v33, %v8672_v0  ;;  %v5510_v46 = vmax.f32 %v5478_v63, 0.0  ;;  %v5511_v24 = vmax.f32 %v5479_v20, 0.0 }
 0x52d   : > { %6825 = vst [vmem:[%s8675_s22 + $0x318] sm:$0xff] %v5494_v37  ;;  %v5484_v37 = vmul.f32 %v5452_v27, %v8672_v0  ;;  %v5512_v13 = vmax.f32 %v5480_v58, 0.0 }
 0x52e   : > { %6826 = vst [vmem:[%s8675_s22 + $0x320] sm:$0xff] %v5495_v59  ;;  %v9675_v59 = vld [vmem:[#allocation66_spill] sm:$0xff]  ;;  %v5514_v23 = vmax.f32 %v5482_v38, 0.0 }
 0x52f   : > { %6827 = vst [vmem:[%s8675_s22 + $0x328] sm:$0xff] %v5496_v39  ;;  %v5456_v35 = vsub.f32 %v9675_v59, %v8664_v40  ;;  %v5515_v39 = vmax.f32 %v5483_v8, 0.0  ;;  %v5516_v42 = vmax.f32 %v5484_v37, 0.0 }
 0x530   : > { %6828 = vst [vmem:[%s8675_s22 + $0x330] sm:$0xff] %v5497_v4  ;;  %v5517_v4 = vmax.f32 %v5485_v11, 0.0 }
 0x531   : > { %6829 = vst [vmem:[%s8675_s22 + $0x338] sm:$0xff] %v5498_v44  ;;  %v5488_v25 = vmul.f32 %v5456_v35, %v8672_v0 }
 0x532   : > { %6830 = vst [vmem:[%s8675_s22 + $0x340] sm:$0xff] %v5499_v31 }
 0x533   : > { %6831 = vst [vmem:[%s8675_s22 + $0x348] sm:$0xff] %v5500_v2  ;;  %v5520_v44 = vmax.f32 %v5488_v25, 0.0 }
 0x534   : > { %6832 = vst [vmem:[%s8675_s22 + $0x350] sm:$0xff] %v5501_v18 }
 0x535   : > { %6833 = vst [vmem:[%s8675_s22 + $0x358] sm:$0xff] %v5502_v5 }
 0x536   : > { %6834 = vst [vmem:[%s8675_s22 + $0x360] sm:$0xff] %v5503_v3 }
 0x537   : > { %6835 = vst [vmem:[%s8675_s22 + $0x368] sm:$0xff] %v5504_v54 }
 0x538   : > { %6836 = vst [vmem:[%s8675_s22 + $0x370] sm:$0xff] %v5505_v60 }
 0x539   : > { %6837 = vst [vmem:[%s8675_s22 + $0x378] sm:$0xff] %v5506_v15 }
 0x53a   : > { %6838 = vst [vmem:[%s8675_s22 + $0x380] sm:$0xff] %v5507_v7 }
 0x53b   : > { %6839 = vst [vmem:[%s8675_s22 + $0x388] sm:$0xff] %v5508_v61 }
 0x53c   : > { %6840 = vst [vmem:[%s8675_s22 + $0x390] sm:$0xff] %v5509_v47 }
 0x53d   : > { %6841 = vst [vmem:[%s8675_s22 + $0x398] sm:$0xff] %v5510_v46 }
 0x53e   : > { %6842 = vst [vmem:[%s8675_s22 + $0x3a0] sm:$0xff] %v5511_v24 }
 0x53f   : > { %6843 = vst [vmem:[%s8675_s22 + $0x3a8] sm:$0xff] %v5512_v13 }
 0x540   : > { %6844 = vst [vmem:[%s8675_s22 + $0x3b0] sm:$0xff] %v5513_v12 }
 0x541   : > { %6845 = vst [vmem:[%s8675_s22 + $0x3b8] sm:$0xff] %v5514_v23 }
 0x542   : > { %6846 = vst [vmem:[%s8675_s22 + $0x3c0] sm:$0xff] %v5515_v39 }
 0x543   : > { %6847 = vst [vmem:[%s8675_s22 + $0x3c8] sm:$0xff] %v5516_v42 }
 0x544   : > { %6848 = vst [vmem:[%s8675_s22 + $0x3d0] sm:$0xff] %v5517_v4 }
 0x545   : > { %6849 = vst [vmem:[%s8675_s22 + $0x3d8] sm:$0xff] %v5518_v29 }
 0x546   : > { %6850 = vst [vmem:[%s8675_s22 + $0x3e0] sm:$0xff] %v5519_v62 }
 0x547   : > { %6851 = vst [vmem:[%s8675_s22 + $0x3e8] sm:$0xff] %v5520_v44 }
 0x548   : > { %6852 = vst [vmem:[%s8675_s22 + $0x3f0] sm:$0xff] %v5521_v10 }
 0x549   : > { %6931 = shalt.err (!%p6928_p3)
}
 0x54a   : > { %s6968_s8 = smov 128   ;;  %s6969_s14 = smov 8  }
 0x54b   : > { %6861 = dma.vmem_to_hbm [thread:$0]  (%p7023_p5), %s5569_s26, 16384, %s5571_s27, %s5556_s28, %s6968_s8, %s6968_s8, %s6969_s14  }
 0x54c PF: > { %p6867_p4 = scmp.ge.s32.totalorder %s6966_s12, 2  ;;  %s5585_s16 = sand.u32 1, %s6954_s9  }
 0x54d   : > { %s5586_s17 = scalar_lea.sflag [#allocation3], %s5585_s16 }
 0x54e   : > { %p6864_p7 = pnand %p6867_p4, %p7027_p6 }
 0x550   : > { %p6865_p8 = pneg %p6864_p7 }
 0x552   : > { %6949 = dma.done.wait (%p6865_p8), %s5586_s17, 16384  }
 0x553   : > { %6951 = vsyncadd (%p6865_p8), %s5586_s17, 4294950912  ;;  %p12_p9 = scmp.ge.s32.totalorder %s7010_s15, 4   ;;  %s9676_s9 = smov %s6958_s10 }
 0x554   : > { %s9677_s10 = smov %s6962_s11  ;;  %s9678_s11 = smov %s7021_s18 }
 0x555   : > { %s9679_s12 = smov %s7010_s15  ;;  %14 = sbr.rel (!%p12_p9) target bundleno = 3 (0x3), region = 83 }
 0x55a   :  { %5592 = vsyncpa [#allocation3], 1 }
 0x55b   :  { %5594 = vsyncpa [#allocation3 + $0x1], 1 }

</bundles_post_ra>
